<compile_context>
chip_gen: v6e
topology: v6e:2x2x1
jax: 0.10.0
libtpu: 0.0.40
codegen_flags: <defaults>
</compile_context>

<pallas_src>
import functools

import jax
import jax.numpy as jnp
from jax.experimental import pallas as pl
from jax.experimental.pallas import tpu as pltpu


def _round_up(x, m):
    return (x + m - 1) // m * m


def _vmem_limit(footprint_bytes):
    # Footprint-derived scoped-VMEM limit: >= actual use + margin, <= 48 MiB so it fits
    # comfortably under v7x's 64 MiB/TC while not starving neighbouring fusions.
    return int(min(max(footprint_bytes + (8 << 20), 20 << 20), 48 << 20))


# ============================================================================
# Direct convolution kernel (3x3, stride 1, 'same' padding)
#   grid = (Nb, Ho); one output row per step.
#   inputs: kh row-blocks of the spatially padded NHWC activation (same array, H-shifted
#           index maps), the full weight tensor (kh,kw,C,N), bias (1,N), optional residual.
#   out[w, :] = act( sum_{di,dj} xpad[h+di, w+dj, :] @ W[di,dj] + bias (+ residual) )
# ============================================================================
def _direct_conv_kernel(*refs, kh, kw, Wo, act, has_res):
    xs = refs[:kh]
    w_ref = refs[kh]
    b_ref = refs[kh + 1]
    if has_res:
        r_ref = refs[kh + 2]
        o_ref = refs[kh + 3]
    else:
        r_ref = None
        o_ref = refs[kh + 2]

    acc = None
    for di in range(kh):
        x = xs[di][0, 0]                                   # (Wp, C) bf16
        for dj in range(kw):
            p = jnp.dot(x, w_ref[di, dj],
                        preferred_element_type=jnp.float32)  # (Wp, N) f32
            p = p[dj:dj + Wo, :]                              # static W-tap shift
            acc = p if acc is None else acc + p

    y = acc + b_ref[...]                                      # (Wo, N) + (1, N)
    if r_ref is not None:
        y = y + r_ref[0, 0].astype(jnp.float32)
    if act == "relu":
        y = jnp.maximum(y, 0.0)
    elif act == "tanh":
        y = jnp.tanh(y)
    o_ref[0, 0] = y.astype(o_ref.dtype)


@functools.partial(
    jax.jit, static_argnames=("kh", "kw", "act", "do_upsample", "out_dtype"))
def _conv_direct_impl(x, skip, w, bias, res, *, kh, kw, act, do_upsample, out_dtype):
    # Skip-concat + bilinear upsample are traced here so XLA fuses them into the
    # padded-activation producer feeding the pallas_call (no standalone HBM pass).
    if skip is not None:
        x = jnp.concatenate([x, skip], axis=-1)
    if do_upsample:
        x = upsample_bilinear_2x(x)
    x = x.astype(jnp.bfloat16)

    Nb, H, W, C = x.shape
    ph, pw = (kh - 1) // 2, (kw - 1) // 2
    Ho, Wo = H, W                                   # stride 1, 'same'
    Hp, Wp = H + 2 * ph, W + 2 * pw
    N = w.shape[-1]

    xp = jnp.pad(x, ((0, 0), (ph, ph), (pw, pw), (0, 0)))

    in_specs = [pl.BlockSpec((1, 1, Wp, C),
                             (lambda n, h, di=di: (n, h + di, 0, 0)))
                for di in range(kh)]
    in_specs += [
        pl.BlockSpec((kh, kw, C, N), lambda n, h: (0, 0, 0, 0)),   # weights: VMEM-resident
        pl.BlockSpec((1, N), lambda n, h: (0, 0)),                 # bias
    ]
    inputs = [xp] * kh + [w, bias]
    if res is not None:
        in_specs.append(pl.BlockSpec((1, 1, Wo, N), lambda n, h: (n, h, 0, 0)))
        inputs.append(res.astype(jnp.bfloat16))
    out_spec = pl.BlockSpec((1, 1, Wo, N), lambda n, h: (n, h, 0, 0))

    # Footprint-derived VMEM limit (inputs/outputs are double-buffered by the pipeline).
    row_b = Wp * C * 2
    w_b = kh * kw * C * N * 2
    out_b = Wo * N * jnp.dtype(out_dtype).itemsize
    res_b = Wo * N * 2 if res is not None else 0
    footprint = 2 * (kh * row_b + w_b + N * 4 + out_b + res_b)

    return pl.pallas_call(
        functools.partial(_direct_conv_kernel, kh=kh, kw=kw, Wo=Wo, act=act,
                          has_res=res is not None),
        out_shape=jax.ShapeDtypeStruct((Nb, Ho, Wo, N), out_dtype),
        grid=(Nb, Ho),
        in_specs=in_specs,
        out_specs=out_spec,
        compiler_params=pltpu.CompilerParams(
            dimension_semantics=("parallel", "parallel"),
            vmem_limit_bytes=_vmem_limit(footprint)),
    )(*inputs)


def conv_direct(x, p, *, act="relu", residual=None, skip=None, upsample=False,
                out_dtype=jnp.bfloat16):
    return _conv_direct_impl(x, skip, p["w"], p["b"], residual,
                             kh=p["kh"], kw=p["kw"], act=act,
                             do_upsample=upsample, out_dtype=out_dtype)


# ============================================================================
# Matmul path (im2col) for the 7x7 stem, stride-2 3x3 convs and 1x1 convs.
#   out = act((A @ B) + bias); bias is loaded into the accumulator at k == 0.
# ============================================================================
def _mm_kernel(a_ref, b_ref, bias_ref, o_ref, acc_ref, *, act):
    @pl.when(pl.program_id(2) == 0)
    def _():
        acc_ref[...] = jnp.broadcast_to(bias_ref[...], acc_ref.shape)

    acc_ref[...] += jnp.dot(a_ref[...], b_ref[...],
                            preferred_element_type=jnp.float32)

    @pl.when(pl.program_id(2) == pl.num_programs(2) - 1)
    def _():
        y = acc_ref[...]
        if act == "relu":
            y = jnp.maximum(y, 0.0)
        elif act == "tanh":
            y = jnp.tanh(y)
        o_ref[...] = y.astype(o_ref.dtype)


_MM_VMEM_BUDGET = 28 << 20     # working-set budget: fits every TPU generation


def _pick_tiles(M, Kp, Np, out_bytes):
    if Np % 128 == 0:
        tn = next(t for t in (512, 256, 128) if Np % t == 0)
    else:
        tn = Np                                   # N < 128: single full-dim block
    M8 = _round_up(M, 8)
    tm = next((t for t in (1024, 512, 256, 128, 64, 32, 16, 8) if M8 >= t), 8)

    def footprint(tm_, tk_):
        a = tm_ * tk_ * 2
        b = tk_ * tn * 2
        o = tm_ * tn * out_bytes
        acc = tm_ * tn * 4
        return 2 * (a + b + tn * 4 + o) + acc

    while True:
        tk = next((t for t in (Kp, 2048, 1024, 512, 256, 128)
                   if t <= Kp and Kp % t == 0 and footprint(tm, t) <= _MM_VMEM_BUDGET),
                  None)
        if tk is not None:
            return tm, tk, tn, footprint(tm, tk)
        if tm > 8:
            tm //= 2
        else:
            return tm, 128, tn, footprint(tm, 128)


def _fused_matmul(a, b, bias, *, act, out_dtype, M, N, Kp, Np):
    """a:(M,Kp) bf16; b:(Kp,Np) bf16; bias:(1,Np) f32."""
    tm, tk, tn, fp = _pick_tiles(M, Kp, Np, jnp.dtype(out_dtype).itemsize)
    Mp = _round_up(M, tm)
    if Mp != M:
        a = jnp.pad(a, ((0, Mp - M), (0, 0)))

    grid = (Mp // tm, Np // tn, Kp // tk)
    out = pl.pallas_call(
        functools.partial(_mm_kernel, act=act),
        out_shape=jax.ShapeDtypeStruct((Mp, Np), out_dtype),
        grid=grid,
        in_specs=[pl.BlockSpec((tm, tk), lambda i, j, k: (i, k)),
                  pl.BlockSpec((tk, tn), lambda i, j, k: (k, j)),
                  pl.BlockSpec((1, tn), lambda i, j, k: (0, j))],
        out_specs=pl.BlockSpec((tm, tn), lambda i, j, k: (i, j)),
        scratch_shapes=[pltpu.VMEM((tm, tn), jnp.float32)],
        compiler_params=pltpu.CompilerParams(
            dimension_semantics=("parallel", "parallel", "arbitrary"),
            vmem_limit_bytes=_vmem_limit(fp)),
    )(a, b, bias)
    if Mp != M:
        out = out[:M]
    if Np != N:
        out = out[:, :N]
    return out


@functools.partial(
    jax.jit,
    static_argnames=("kh", "kw", "stride", "padding", "act", "out_dtype",
                     "K", "N", "Kp", "Np"))
def _conv_mm_impl(x, w, bias, *, kh, kw, stride, padding, act, out_dtype,
                  K, N, Kp, Np):
    Nb, H, W, _C = x.shape
    Ho = (H + 2 * padding - kh) // stride + 1
    Wo = (W + 2 * padding - kw) // stride + 1

    if kh == 1 and kw == 1 and padding == 0:
        xs = x[:, ::stride, ::stride, :] if stride != 1 else x
        if Kp != K:
            xs = jnp.pad(xs, ((0, 0), (0, 0), (0, 0), (0, Kp - K)))
        a = xs.reshape(Nb * Ho * Wo, Kp)
    else:
        # TODO(synk): im2col is still materialized for strided / 7x7 convs, but is now
        #             built directly at the padded K width (no second pad pass).
        xp = jnp.pad(x, ((0, 0), (padding, padding), (padding, padding), (0, 0)))
        cols = []
        for di in range(kh):
            for dj in range(kw):
                cols.append(xp[:, di:di + stride * (Ho - 1) + 1:stride,
                               dj:dj + stride * (Wo - 1) + 1:stride, :])
        if Kp != K:
            cols.append(jnp.zeros((Nb, Ho, Wo, Kp - K), x.dtype))
        a = jnp.concatenate(cols, axis=-1).reshape(Nb * Ho * Wo, Kp)
    a = a.astype(jnp.bfloat16)

    out = _fused_matmul(a, w, bias, act=act, out_dtype=out_dtype,
                        M=Nb * Ho * Wo, N=N, Kp=Kp, Np=Np)
    return out.reshape(Nb, Ho, Wo, N)


def conv_mm(x, p, *, stride=1, padding=1, act="relu", out_dtype=jnp.bfloat16):
    return _conv_mm_impl(x, p["w"], p["b"],
                         kh=p["kh"], kw=p["kw"], stride=stride, padding=padding,
                         act=act, out_dtype=out_dtype,
                         K=p["K"], N=p["N"], Kp=p["Kp"], Np=p["Np"])


# ============================================================================
# Pool / upsample glue (plain JAX; upsample is traced inside the conv's jit)
# ============================================================================
@jax.jit
def maxpool2x2(x):
    N, H, W, C = x.shape
    return x.reshape(N, H // 2, 2, W // 2, 2, C).max(axis=(2, 4))


def _upsample_axis_2x(a, axis):
    """Exact PyTorch bilinear, scale=2, align_corners=False, along one axis."""
    pad_width = [(0, 0)] * a.ndim
    pad_width[axis] = (1, 1)
    ap = jnp.pad(a, pad_width, mode="edge")
    n = a.shape[axis]
    lo = jax.lax.slice_in_dim(ap, 0, n, axis=axis)
    mid = jax.lax.slice_in_dim(ap, 1, n + 1, axis=axis)
    hi = jax.lax.slice_in_dim(ap, 2, n + 2, axis=axis)
    even = 0.25 * lo + 0.75 * mid
    odd = 0.75 * mid + 0.25 * hi
    out = jnp.stack([even, odd], axis=axis + 1)
    new_shape = list(a.shape)
    new_shape[axis] = 2 * n
    return out.reshape(new_shape)


def upsample_bilinear_2x(x):
    return _upsample_axis_2x(_upsample_axis_2x(x, 1), 2)


# ============================================================================
# Parameter construction (synthetic, deterministic).  BN is folded eval-mode; weights
# are packed (BN scale folded, reshaped/padded/bf16) ONCE here, per execution path.
# ============================================================================
class KeyGen:
    def __init__(self, seed):
        self.key = jax.random.PRNGKey(seed)

    def __call__(self):
        self.key, sub = jax.random.split(self.key)
        return sub


def pack_conv_direct(w, scale, bias):
    kh, kw, cin, cout = w.shape
    return {"mode": "direct",
            "w": (w * scale).astype(jnp.bfloat16),            # (kh,kw,C,N), BN folded
            "b": bias.astype(jnp.float32).reshape(1, cout),
            "kh": kh, "kw": kw, "N": cout}


def pack_conv_mm(w, scale, bias):
    kh, kw, cin, cout = w.shape
    K, N = kh * kw * cin, cout
    Kp = _round_up(K, 128)
    Np = N if N % 8 == 0 else _round_up(N, 128)               # keep N unpadded when aligned
    wm = (w * scale).reshape(K, N)
    wm = jnp.pad(wm, ((0, Kp - K), (0, Np - N))).astype(jnp.bfloat16)
    bp = jnp.pad(bias.astype(jnp.float32), (0, Np - N)).reshape(1, Np)
    return {"mode": "mm", "w": wm, "b": bp, "kh": kh, "kw": kw,
            "K": K, "N": N, "Kp": Kp, "Np": Np}


def init_params(seed=0, num_filters=32, num_classes=1):
    kg = KeyGen(seed)
    eps = 1e-5

    def conv_w(kh, kw, cin, cout):
        std = (2.0 / (kh * kw * cin)) ** 0.5
        return jax.random.normal(kg(), (kh, kw, cin, cout), jnp.float32) * std

    def bn_fold(c):
        # Eval-mode BN fold: scale = gamma/sqrt(var+eps); bias = beta - mean*scale.
        gamma = jnp.ones((c,), jnp.float32)
        beta = jnp.zeros((c,), jnp.float32)
        mean = jnp.zeros((c,), jnp.float32)
        var = jnp.ones((c,), jnp.float32)
        scale = gamma / jnp.sqrt(var + eps)
        return scale, beta - mean * scale

    def conv_bn_direct(kh, kw, cin, cout):
        s, b = bn_fold(cout)
        return pack_conv_direct(conv_w(kh, kw, cin, cout), s, b)

    def conv_bn_mm(kh, kw, cin, cout):
        s, b = bn_fold(cout)
        return pack_conv_mm(conv_w(kh, kw, cin, cout), s, b)

    def conv_bias_direct(cin, cout, k=3):
        w = conv_w(k, k, cin, cout)
        b = jax.random.normal(kg(), (cout,), jnp.float32) * 0.01
        return pack_conv_direct(w, jnp.ones((cout,), jnp.float32), b)

    def conv_bias_mm(cin, cout, k=1):
        w = conv_w(k, k, cin, cout)
        b = jax.random.normal(kg(), (cout,), jnp.float32) * 0.01
        return pack_conv_mm(w, jnp.ones((cout,), jnp.float32), b)

    P = {"conv1": conv_bn_mm(7, 7, 3, 64)}

    def make_layer(cin, cout, nblocks, first_stride):
        blocks = []
        for bi in range(nblocks):
            s = first_stride if bi == 0 else 1
            in_c = cin if bi == 0 else cout
            blk = {"stride": s,
                   "conv1": (conv_bn_direct if s == 1 else conv_bn_mm)(3, 3, in_c, cout),
                   "conv2": conv_bn_direct(3, 3, cout, cout)}
            if bi == 0 and (s != 1 or in_c != cout):
                blk["down"] = conv_bn_mm(1, 1, in_c, cout)
            blocks.append(blk)
        return blocks

    P["layer1"] = make_layer(64, 64, 3, 1)
    P["layer2"] = make_layer(64, 128, 4, 2)
    P["layer3"] = make_layer(128, 256, 6, 2)
    P["layer4"] = make_layer(256, 512, 3, 2)

    nf = num_filters

    def dec_block(cin, cmid, cout):     # is_deconv=False: Upsample + 2x ConvRelu
        return {"c1": conv_bias_direct(cin, cmid), "c2": conv_bias_direct(cmid, cout)}

    P["center"] = dec_block(512, nf * 8 * 2, nf * 8)
    P["dec5"] = dec_block(512 + nf * 8, nf * 8 * 2, nf * 8)
    P["dec4"] = dec_block(256 + nf * 8, nf * 8 * 2, nf * 8)
    P["dec3"] = dec_block(128 + nf * 8, nf * 4 * 2, nf * 2)
    P["dec2"] = dec_block(64 + nf * 2, nf * 2 * 2, nf * 2 * 2)
    P["dec1"] = dec_block(nf * 2 * 2, nf * 2 * 2, nf)
    P["dec0"] = conv_bias_direct(nf, nf)
    P["final"] = conv_bias_mm(nf, num_classes, k=1)
    return P


# ============================================================================
# Forward pass
# ============================================================================
def basic_block(x, blk):
    p1 = blk["conv1"]
    if p1["mode"] == "direct":
        out = conv_direct(x, p1, act="relu")
    else:
        out = conv_mm(x, p1, stride=blk["stride"], padding=1, act="relu")
    identity = x
    if "down" in blk:
        identity = conv_mm(x, blk["down"], stride=blk["stride"], padding=0, act="none")
    # Residual add + ReLU fused into the second conv's epilogue.
    return conv_direct(out, blk["conv2"], act="relu", residual=identity)


def run_layer(x, blocks):
    for blk in blocks:
        x = basic_block(x, blk)
    return x


def decoder_block(x, skip, p):
    # Upsample(concat) + ConvRelu + ConvRelu; concat + upsample are fused into c1's jit.
    x = conv_direct(x, p["c1"], skip=skip, upsample=True, act="relu")
    x = conv_direct(x, p["c2"], act="relu")
    return x


def albunet34_forward(x_nchw, P, num_classes=1):
    x = jnp.transpose(x_nchw, (0, 2, 3, 1)).astype(jnp.bfloat16)   # NCHW -> NHWC bf16
    c = conv_mm(x, P["conv1"], stride=2, padding=3, act="relu")
    conv1 = maxpool2x2(c)
    conv2 = run_layer(conv1, P["layer1"])
    conv3 = run_layer(conv2, P["layer2"])
    conv4 = run_layer(conv3, P["layer3"])
    conv5 = run_layer(conv4, P["layer4"])

    center = decoder_block(maxpool2x2(conv5), None, P["center"])
    dec5 = decoder_block(center, conv5, P["dec5"])
    dec4 = decoder_block(dec5, conv4, P["dec4"])
    dec3 = decoder_block(dec4, conv3, P["dec3"])
    dec2 = decoder_block(dec3, conv2, P["dec2"])
    dec1 = decoder_block(dec2, None, P["dec1"])
    dec0 = conv_direct(dec1, P["dec0"], act="relu")

    if num_classes > 1:
        # TODO(synk): log_softmax head path (num_classes > 1) not exercised here.
        logits = conv_mm(dec0, P["final"], stride=1, padding=0, act="none",
                         out_dtype=jnp.float32)
        out = jax.nn.log_softmax(logits, axis=-1)
    else:
        out = conv_mm(dec0, P["final"], stride=1, padding=0, act="tanh",
                      out_dtype=jnp.float32)
    return jnp.transpose(out, (0, 3, 1, 2))          # NHWC -> NCHW


# ----------------------------------------------------------------------------
if __name__ == "__main__":
    # Input must be 3-channel with H, W divisible by 64 (ResNet34 /32 + extra pool).
    key = jax.random.PRNGKey(0)
    x = jax.random.normal(key, (2, 3, 64, 64), jnp.float32)

    params = init_params(seed=0, num_filters=32, num_classes=1)
    out = albunet34_forward(x, params, num_classes=1)
    out = jax.block_until_ready(out)

    assert out.shape == (2, 1, 64, 64), out.shape
    assert bool(jnp.all(jnp.isfinite(out)))
    assert bool(jnp.all(jnp.abs(out) <= 1.0 + 1e-6))   # tanh output range
    print("KERNEL_OK")
</pallas_src>

<mosaic_0001>
module attributes {stable_mosaic.version = 11 : i64} {
  func.func @_mm_kernel(%arg0: i32, %arg1: i32, %arg2: i32, %arg3: memref<1024x256xbf16, #tpu.memory_space<vmem>>, %arg4: memref<256x64xbf16, #tpu.memory_space<vmem>>, %arg5: memref<1x64xf32, #tpu.memory_space<vmem>>, %arg6: memref<1024x64xbf16, #tpu.memory_space<vmem>>, %arg7: memref<1024x64xf32, #tpu.memory_space<vmem>>) attributes {dimension_semantics = [#tpu.dimension_semantics<parallel>, #tpu.dimension_semantics<parallel>, #tpu.dimension_semantics<arbitrary>], iteration_bounds = array<i64: 2, 1, 1>, scalar_prefetch = 0 : i64, scratch_operands = 1 : i64, tpu.core_type = #tpu.core_type<tc>, window_params = [{transform_indices = @transform_0, window_bounds = array<i64: 1024, 256>}, {transform_indices = @transform_1, window_bounds = array<i64: 256, 64>}, {transform_indices = @transform_2, window_bounds = array<i64: 1, 64>}, {transform_indices = @transform_3, window_bounds = array<i64: 1024, 64>}]} {
    %c0_i32 = arith.constant 0 : i32
    %0 = arith.cmpi eq, %arg2, %c0_i32 : i32
    %1 = arith.extui %0 : i1 to i32
    %c0_i32_0 = arith.constant 0 : i32
    %2 = arith.cmpi ne, %1, %c0_i32_0 : i32
    scf.if %2 {
      %c0_10 = arith.constant 0 : index
      %c0_11 = arith.constant 0 : index
      %12 = vector.load %arg5[%c0_10, %c0_11] : memref<1x64xf32, #tpu.memory_space<vmem>>, vector<1x64xf32>
      %13 = vector.shape_cast %12 : vector<1x64xf32> to vector<1x64xf32>
      %14 = vector.broadcast %13 : vector<1x64xf32> to vector<1024x64xf32>
      %c0_12 = arith.constant 0 : index
      %c0_13 = arith.constant 0 : index
      %15 = vector.load %arg7[%c0_12, %c0_13] : memref<1024x64xf32, #tpu.memory_space<vmem>>, vector<1024x64xf32>
      tpu.vector_store %arg7[%c0_12, %c0_13], %14 {strides = array<i32>} : memref<1024x64xf32, #tpu.memory_space<vmem>>, vector<1024x64xf32>,
    } else {
    }
    %c0 = arith.constant 0 : index
    %c0_1 = arith.constant 0 : index
    %3 = vector.load %arg7[%c0, %c0_1] : memref<1024x64xf32, #tpu.memory_space<vmem>>, vector<1024x64xf32>
    %c0_2 = arith.constant 0 : index
    %c0_3 = arith.constant 0 : index
    %4 = vector.load %arg3[%c0_2, %c0_3] : memref<1024x256xbf16, #tpu.memory_space<vmem>>, vector<1024x256xbf16>
    %c0_4 = arith.constant 0 : index
    %c0_5 = arith.constant 0 : index
    %5 = vector.load %arg4[%c0_4, %c0_5] : memref<256x64xbf16, #tpu.memory_space<vmem>>, vector<256x64xbf16>
    %cst = arith.constant dense<0.000000e+00> : vector<1024x64xf32>
    %6 = tpu.matmul %4, %5, %cst {dimension_numbers = #tpu.dot_dimension_numbers<[1], [0], [0], [1], [0, 0, 1, 1], [], []>} : vector<1024x256xbf16>, vector<256x64xbf16>, vector<1024x64xf32> -> vector<1024x64xf32>
    %7 = arith.addf %3, %6 : vector<1024x64xf32>
    %c0_6 = arith.constant 0 : index
    %c0_7 = arith.constant 0 : index
    %8 = vector.load %arg7[%c0_6, %c0_7] : memref<1024x64xf32, #tpu.memory_space<vmem>>, vector<1024x64xf32>
    tpu.vector_store %arg7[%c0_6, %c0_7], %7 {strides = array<i32>} : memref<1024x64xf32, #tpu.memory_space<vmem>>, vector<1024x64xf32>,
    %c0_i32_8 = arith.constant 0 : i32
    %9 = arith.cmpi eq, %arg2, %c0_i32_8 : i32
    %10 = arith.extui %9 : i1 to i32
    %c0_i32_9 = arith.constant 0 : i32
    %11 = arith.cmpi ne, %10, %c0_i32_9 : i32
    scf.if %11 {
      %c0_10 = arith.constant 0 : index
      %c0_11 = arith.constant 0 : index
      %12 = vector.load %arg7[%c0_10, %c0_11] : memref<1024x64xf32, #tpu.memory_space<vmem>>, vector<1024x64xf32>
      %cst_12 = arith.constant 0.000000e+00 : f32
      %13 = vector.broadcast %cst_12 : f32 to vector<1024x64xf32>
      %14 = arith.maximumf %12, %13 : vector<1024x64xf32>
      %15 = arith.truncf %14 : vector<1024x64xf32> to vector<1024x64xbf16>
      %c0_13 = arith.constant 0 : index
      %c0_14 = arith.constant 0 : index
      %16 = vector.load %arg6[%c0_13, %c0_14] : memref<1024x64xbf16, #tpu.memory_space<vmem>>, vector<1024x64xbf16>
      tpu.vector_store %arg6[%c0_13, %c0_14], %15 {strides = array<i32>} : memref<1024x64xbf16, #tpu.memory_space<vmem>>, vector<1024x64xbf16>,
    } else {
    }
    return
  }
  func.func @transform_0(%arg0: i32, %arg1: i32, %arg2: i32) -> (i32, i32) {
    %c0_i32 = arith.constant 0 : i32
    return %arg0, %arg2 : i32, i32
  }
  func.func @transform_1(%arg0: i32, %arg1: i32, %arg2: i32) -> (i32, i32) {
    %c0_i32 = arith.constant 0 : i32
    return %arg2, %arg1 : i32, i32
  }
  func.func @transform_2(%arg0: i32, %arg1: i32, %arg2: i32) -> (i32, i32) {
    %c0_i32 = arith.constant 0 : i32
    %c0_i32_0 = arith.constant 0 : i32
    return %c0_i32, %arg1 : i32, i32
  }
  func.func @transform_3(%arg0: i32, %arg1: i32, %arg2: i32) -> (i32, i32) {
    %c0_i32 = arith.constant 0 : i32
    return %arg0, %arg1 : i32, i32
  }
}

</mosaic_0001>

<bundles_post_ra>
// kernel: _conv_mm_impl.1
= control target key start
LH: loop header
LB: loop body
LE: loop exit
PB: predicated region body
PF: predicated region fallthrough
CT: control target
= control target key end

     0   :  { %8 = vsyncpa [#allocation4], 0  ;;  %s5049_s0 = inlined_call_operand.vmem [shape: bf16[2048,256], index: 0, kind: input, shape index: {}]   ;;  %s5050_s1 = inlined_call_operand.vmem [shape: bf16[256,64], index: 1, kind: input, shape index: {}]   ;;  %s5051_s2 = inlined_call_operand.vmem [shape: f32[1,64], index: 2, kind: input, shape index: {}]   ;;  %s5052_s3 = inlined_call_operand.hbm [shape: bf16[2048,64], index: 3, kind: output, shape index: {}]  }
   0x1   :  { %10 = vsyncpa [#allocation4 + $0x1], 0  ;;  %s4063_s12 = smov 0   ;;  %s4065_s13 = smov 0  }
   0x2   :  { %s4067_s14 = smov 0   ;;  %s4069_s15 = smov 0  }
   0x3   :  { %s4071_s16 = smov 0   ;;  %s4073_s17 = smov 0  }
   0x4 LB: > { %s3252_s18 = sadd.s32 4294967295, %s4037_s17   ;;  %s3253_s19 = sadd.s32 4294967294, %s4037_s17   ;;  %s4037_s17 = sphi %s4073_s17, %s16_s17   ;;  %s4033_s16 = sphi %s4071_s16, %s5059_s16   ;;  %s4029_s15 = sphi %s4069_s15, %s5058_s15   ;;  %s4025_s14 = sphi %s4067_s14, %s5057_s14   ;;  %s4021_s13 = sphi %s4065_s13, %s5056_s13   ;;  %s4017_s12 = sphi %s4063_s12, %s5055_s12  }
   0x5   : > { %s35_s20 = sadd.s32 1, %s4033_s16  ;;  %s126_s21 = sadd.s32 1, %s4025_s14 }
   0x6   : > { %p37_p0 = scmp.ge.s32.totalorder %s35_s20, 2  ;;  %p136_p1 = scmp.ne.s32.totalorder %s4025_s14, %s4021_s13 }
   0x7   : > { %p137_p2 = scmp.eq.s32.totalorder %s3252_s18, 1  ;;  %p142_p3 = scmp.ne.s32.totalorder %s4021_s13, %s4017_s12 }
   0x8   : > { %s5061_s20 = smov (%p37_p0, %s35_s20), 0  ;;  %p143_p5 = scmp.eq.s32.totalorder %s3253_s19, 1 }
   0x9   : > { %p4103_p4 = por %p137_p2, %p136_p1  ;;  %s121_s23 = ssub.s32 %s4033_s16, %s5061_s20 }
   0xa   : > { %p3258_p6 = scmp.ge.s32.totalorder %s4037_s17, 1  ;;  %p124_p7 = scmp.eq.s32.totalorder %s121_s23, 0 }
   0xb   : > { %p4110_p8 = por %p143_p5, %p142_p3  ;;  %p194_p9 = scmp.lt.s32.totalorder %s4037_s17, 3 }
   0xc   : > { %s4116_s25 = scalar_select %p124_p7, %s4025_s14, %s126_s21  }
   0xd   : > { %p195_p10 = pnand %p3258_p6, %p194_p9 }
   0xe   : > { %s3260_s28 = sshll.u32 (!%p195_p10), %s4029_s15, 7  ;;  %s231_s5 = sand.u32 (!%p195_p10), 1, %s4021_s13  }
   0xf   : > { %198 = sbr.rel (%p195_p10) target bundleno = 561 (0x231), region = 32  ;;  %p236_p11 = scmp.lt.s32.totalorder (!%p195_p10), %s3260_s28, 255 }
  0x10   : > { %s4583_s6 = sshll.u32 (!%p195_p10), %s231_s5, 9  ;;  %s4040_s21 = smov (!%p195_p10), [#allocation3]  }
  0x11   : > { %s4593_s7 = scalar_lea.vmem (!%p195_p10), [#allocation3], %s4583_s6  ;;  %s3965_s23 = sshll.u32 (!%p195_p10), %s4040_s21, 4  ;;  %s3966_s23 = int_to_ptr.vmem [resolvable:$false] %s3965_s23 }
  0x12   : > { %s3967_s26 = scalar_lea.vmem (!%p195_p10), %s3966_s23, 16384 }
  0x14   : > { %v3761_v0 = vld [vmem:[%s5050_s1 + $0x38] sm:$0xff]   ;;  %v4039_v1 = vmov 0   ;;  %v3762_v2 = vld [vmem:[%s5050_s1 + $0x30] sm:$0xff]   ;;  %v3763_v3 = vld [vmem:[%s5050_s1 + $0x28] sm:$0xff]   ;;  %s5063_s28 = smov (!%p236_p11, %s3260_s28), 255  ;;  %vm271_vm0 = vcmask 523264  }
  0x15   : > { %1424 = vmatprep.subr.bf16.mxu0 %v4039_v1  ;;  %3671 = vmatprep.subr.bf16.mxu1 %v4039_v1  ;;  %v3764_v4 = vld [vmem:[%s5050_s1 + $0x20] sm:$0xff]   ;;  %s3541_s8 = sshll.u32 %s5063_s28, 3  ;;  %v3765_v5 = vld [vmem:[%s5050_s1 + $0x18] sm:$0xff]   ;;  %v3766_v7 = vld [vmem:[%s5050_s1 + $0x10] sm:$0xff]   ;;  %vm2997_vm1 = vcmask 519168  }
  0x16   : > { %1425 = vmatpush1.bf16.msra.mxu0 %v3761_v0  ;;  %3687 = vmatpush1.bf16.msra.mxu1 %v3761_v0  ;;  %s4145_s19 = scalar_lea.vmem %s5049_s0, %s3541_s8  ;;  %v3767_v9 = vld [vmem:[%s5050_s1 + $0x8] sm:$0xff]   ;;  %v3768_v10 = vld [vmem:[%s5050_s1] sm:$0xff]   ;;  %v3769_v11 = vld [vmem:[%s5050_s1 + $0x78] sm:$0xff]   ;;  %s3141_s8 = sshll.u32 %s4593_s7, 4  ;;  %s4996_s8 = int_to_ptr.vmem [resolvable:$true] %s3141_s8 }
  0x17   : > { %1426 = vmatprep.subr.bf16.mxu0 %v4039_v1  ;;  %3672 = vmatprep.subr.bf16.mxu1 %v4039_v1  ;;  %v3779_v6 = vld [vmem:[%s4145_s19 + $0x4] ss:$8 sps:$4 sm:$0xff]   ;;  %v3770_v12 = vld [vmem:[%s5050_s1 + $0x70] sm:$0xff]   ;;  %v3773_v15 = vld [vmem:[%s5050_s1 + $0x58] sm:$0xff]   ;;  %s3961_s18 = scalar_lea.vmem %s4996_s8, 8192  ;;  %p3968_p1 = scmp.lt.s32.totalorder %s4996_s8, %s3966_s23 }
  0x18   : > { %v3782_v8 = vld [vmem:[%s4145_s19 + $0x204] ss:$8 sps:$4 sm:$0xff]   ;;  %1456 = vmatprep.mubr.bf16.mxu0 %v3779_v6  ;;  %v3774_v16 = vld [vmem:[%s5050_s1 + $0x50] sm:$0xff]   ;;  %v3777_v19 = vld [vmem:[%s4145_s19] ss:$8 sps:$4 sm:$0xff]   ;;  %p3962_p12 = scmp.ne.s32.totalorder %s4996_s8, %s3961_s18  ;;  %p3969_p2 = scmp.lt.s32.totalorder %s3967_s26, %s3961_s18 }
  0x19   : > { %1712 = vmatprep.mubr.bf16.mxu1 %v3782_v8  ;;  %v3771_v13 = vld [vmem:[%s5050_s1 + $0x68] sm:$0xff]   ;;  %v3772_v14 = vld [vmem:[%s5050_s1 + $0x60] sm:$0xff]   ;;  %v3783_v21 = vld [vmem:[%s4145_s19 + $0x14] ss:$8 sps:$4 sm:$0xff]  }
  0x1a   : > { %1427 = vmatpush1.bf16.msra.mxu0 %v3762_v2  ;;  %3688 = vmatpush1.bf16.msra.mxu1 %v3762_v2  ;;  %v3775_v17 = vld [vmem:[%s5050_s1 + $0x48] sm:$0xff]   ;;  %v3776_v18 = vld [vmem:[%s5050_s1 + $0x40] sm:$0xff]   ;;  %v3785_v22 = vld [vmem:[%s4145_s19 + $0x214] ss:$8 sps:$4 sm:$0xff]   ;;  %p3963_p13 = pnand %p3962_p12, %p4103_p4  ;;  %p3970_p3 = por %p3969_p2, %p3968_p1 }
  0x1b   : > { %1428 = vmatprep.subr.bf16.mxu0 %v4039_v1  ;;  %3673 = vmatprep.subr.bf16.mxu1 %v4039_v1  ;;  %v3780_v20 = vld [vmem:[%s4145_s19 + $0x200] ss:$8 sps:$4 sm:$0xff]   ;;  %v3787_v23 = vld [vmem:[%s4145_s19 + $0x10] ss:$8 sps:$4 sm:$0xff]   ;;  %v3789_v25 = vld [vmem:[%s4145_s19 + $0x24] ss:$8 sps:$4 sm:$0xff]  }
  0x1c   : > { %v3788_v24 = vld [vmem:[%s4145_s19 + $0x210] ss:$8 sps:$4 sm:$0xff]   ;;  %v3791_v26 = vld [vmem:[%s4145_s19 + $0x224] ss:$8 sps:$4 sm:$0xff]   ;;  %v3793_v27 = vld [vmem:[%s4145_s19 + $0x20] ss:$8 sps:$4 sm:$0xff]   ;;  %p3964_p0 = pneg %p3963_p13 }
  0x1d   : > { %v3794_v28 = vld [vmem:[%s4145_s19 + $0x220] ss:$8 sps:$4 sm:$0xff]   ;;  %v3795_v29 = vld [vmem:[%s4145_s19 + $0x34] ss:$8 sps:$4 sm:$0xff]   ;;  %v3799_v31 = vld [vmem:[%s4145_s19 + $0x30] ss:$8 sps:$4 sm:$0xff]  }
  0x1e   : > { %1429 = vmatpush1.bf16.msra.mxu0 %v3763_v3  ;;  %3689 = vmatpush1.bf16.msra.mxu1 %v3763_v3  ;;  %v3797_v30 = vld [vmem:[%s4145_s19 + $0x234] ss:$8 sps:$4 sm:$0xff]   ;;  %v3800_v32 = vld [vmem:[%s4145_s19 + $0x230] ss:$8 sps:$4 sm:$0xff]   ;;  %v3801_v33 = vld [vmem:[%s4145_s19 + $0x44] ss:$8 sps:$4 sm:$0xff]   ;;  %p3971_p5 = pnand %p3970_p3, %p3964_p0 }
  0x1f   : > { %1430 = vmatprep.subr.bf16.mxu0 %v4039_v1  ;;  %3674 = vmatprep.subr.bf16.mxu1 %v4039_v1  ;;  %v3803_v34 = vld [vmem:[%s4145_s19 + $0x244] ss:$8 sps:$4 sm:$0xff]   ;;  %v3805_v35 = vld [vmem:[%s4145_s19 + $0x40] ss:$8 sps:$4 sm:$0xff]   ;;  %v3807_v37 = vld [vmem:[%s4145_s19 + $0x54] ss:$8 sps:$4 sm:$0xff]  }
  0x20   : > { %v3806_v36 = vld [vmem:[%s4145_s19 + $0x240] ss:$8 sps:$4 sm:$0xff]   ;;  %v3809_v38 = vld [vmem:[%s4145_s19 + $0x254] ss:$8 sps:$4 sm:$0xff]   ;;  %v3811_v39 = vld [vmem:[%s4145_s19 + $0x50] ss:$8 sps:$4 sm:$0xff]  }
  0x21   : > { %v3812_v40 = vld [vmem:[%s4145_s19 + $0x250] ss:$8 sps:$4 sm:$0xff]   ;;  %v3813_v41 = vld [vmem:[%s4145_s19 + $0x64] ss:$8 sps:$4 sm:$0xff]   ;;  %v3817_v43 = vld [vmem:[%s4145_s19 + $0x60] ss:$8 sps:$4 sm:$0xff]  }
  0x22   : > { %1431 = vmatpush1.bf16.msra.mxu0 %v3764_v4  ;;  %3690 = vmatpush1.bf16.msra.mxu1 %v3764_v4  ;;  %v3815_v42 = vld [vmem:[%s4145_s19 + $0x264] ss:$8 sps:$4 sm:$0xff]   ;;  %v3818_v44 = vld [vmem:[%s4145_s19 + $0x260] ss:$8 sps:$4 sm:$0xff]   ;;  %v3819_v45 = vld [vmem:[%s4145_s19 + $0x74] ss:$8 sps:$4 sm:$0xff]  }
  0x23   : > { %1432 = vmatprep.subr.bf16.mxu0 %v4039_v1  ;;  %3675 = vmatprep.subr.bf16.mxu1 %v4039_v1  ;;  %v3821_v46 = vld [vmem:[%s4145_s19 + $0x274] ss:$8 sps:$4 sm:$0xff]   ;;  %v3823_v47 = vld [vmem:[%s4145_s19 + $0x70] ss:$8 sps:$4 sm:$0xff]   ;;  %v3825_v49 = vld [vmem:[%s4145_s19 + $0x84] ss:$8 sps:$4 sm:$0xff]  }
  0x24   : > { %v3824_v48 = vld [vmem:[%s4145_s19 + $0x270] ss:$8 sps:$4 sm:$0xff]   ;;  %v3827_v50 = vld [vmem:[%s4145_s19 + $0x284] ss:$8 sps:$4 sm:$0xff]   ;;  %v4241_v51 = vld [vmem:[%s5051_s2] ss:$0 sm:$0xff] }
  0x25   : > { %272 = vst.msk [vmem:[#allocation2] sm:$0xff] %vm271_vm0, %v4241_v51  ;;  %273 = vst.msk [vmem:[#allocation2 + $0x8] sm:$0xff] %vm271_vm0, %v4241_v51  ;;  %v3829_v52 = vld [vmem:[%s4145_s19 + $0x80] ss:$8 sps:$4 sm:$0xff]   ;;  %v3831_v54 = vld [vmem:[%s4145_s19 + $0x94] ss:$8 sps:$4 sm:$0xff]  }
  0x26   : > { %1433 = vmatpush1.bf16.msra.mxu0 %v3765_v5  ;;  %3691 = vmatpush1.bf16.msra.mxu1 %v3765_v5  ;;  %274 = vst.msk [vmem:[#allocation2 + $0x10] sm:$0xff] %vm271_vm0, %v4241_v51  ;;  %275 = vst.msk [vmem:[#allocation2 + $0x18] sm:$0xff] %vm271_vm0, %v4241_v51  ;;  %v3830_v53 = vld [vmem:[%s4145_s19 + $0x280] ss:$8 sps:$4 sm:$0xff]   ;;  %v3833_v55 = vld [vmem:[%s4145_s19 + $0x294] ss:$8 sps:$4 sm:$0xff]  }
  0x27   : > { %1434 = vmatprep.subr.bf16.mxu0 %v4039_v1  ;;  %3676 = vmatprep.subr.bf16.mxu1 %v4039_v1  ;;  %276 = vst.msk [vmem:[#allocation2 + $0x20] sm:$0xff] %vm271_vm0, %v4241_v51  ;;  %277 = vst.msk [vmem:[#allocation2 + $0x28] sm:$0xff] %vm271_vm0, %v4241_v51  ;;  %v3835_v56 = vld [vmem:[%s4145_s19 + $0x90] ss:$8 sps:$4 sm:$0xff]   ;;  %v3837_v58 = vld [vmem:[%s4145_s19 + $0xa4] ss:$8 sps:$4 sm:$0xff]  }
  0x28   : > { %278 = vst.msk [vmem:[#allocation2 + $0x30] sm:$0xff] %vm271_vm0, %v4241_v51  ;;  %279 = vst.msk [vmem:[#allocation2 + $0x38] sm:$0xff] %vm271_vm0, %v4241_v51  ;;  %v3836_v57 = vld [vmem:[%s4145_s19 + $0x290] ss:$8 sps:$4 sm:$0xff]   ;;  %v3839_v59 = vld [vmem:[%s4145_s19 + $0x2a4] ss:$8 sps:$4 sm:$0xff]  }
  0x29   : > { %280 = vst.msk [vmem:[#allocation2 + $0x40] sm:$0xff] %vm271_vm0, %v4241_v51  ;;  %281 = vst.msk [vmem:[#allocation2 + $0x48] sm:$0xff] %vm271_vm0, %v4241_v51  ;;  %v3841_v60 = vld [vmem:[%s4145_s19 + $0xa0] ss:$8 sps:$4 sm:$0xff]   ;;  %v3843_v62 = vld [vmem:[%s4145_s19 + $0xb4] ss:$8 sps:$4 sm:$0xff]  }
  0x2a   : > { %1435 = vmatpush1.bf16.msra.mxu0 %v3766_v7  ;;  %3692 = vmatpush1.bf16.msra.mxu1 %v3766_v7  ;;  %282 = vst.msk [vmem:[#allocation2 + $0x50] sm:$0xff] %vm271_vm0, %v4241_v51  ;;  %283 = vst.msk [vmem:[#allocation2 + $0x58] sm:$0xff] %vm271_vm0, %v4241_v51  ;;  %v3842_v61 = vld [vmem:[%s4145_s19 + $0x2a0] ss:$8 sps:$4 sm:$0xff]   ;;  %v3845_v63 = vld [vmem:[%s4145_s19 + $0x2b4] ss:$8 sps:$4 sm:$0xff]  }
  0x2b   : > { %1436 = vmatprep.subr.bf16.mxu0 %v4039_v1  ;;  %3677 = vmatprep.subr.bf16.mxu1 %v4039_v1  ;;  %284 = vst.msk [vmem:[#allocation2 + $0x60] sm:$0xff] %vm271_vm0, %v4241_v51  ;;  %285 = vst.msk [vmem:[#allocation2 + $0x68] sm:$0xff] %vm271_vm0, %v4241_v51  ;;  %v3847_v0 = vld [vmem:[%s4145_s19 + $0xb0] ss:$8 sps:$4 sm:$0xff]   ;;  %v3849_v2 = vld [vmem:[%s4145_s19 + $0xc4] ss:$8 sps:$4 sm:$0xff]  }
  0x2c   : > { %286 = vst.msk [vmem:[#allocation2 + $0x70] sm:$0xff] %vm271_vm0, %v4241_v51  ;;  %287 = vst.msk [vmem:[#allocation2 + $0x78] sm:$0xff] %vm271_vm0, %v4241_v51  ;;  %v3851_v3 = vld [vmem:[%s4145_s19 + $0x2c4] ss:$8 sps:$4 sm:$0xff]   ;;  %v3853_v4 = vld [vmem:[%s4145_s19 + $0xc0] ss:$8 sps:$4 sm:$0xff]  }
  0x2d   : > { %288 = vst.msk [vmem:[#allocation2 + $0x80] sm:$0xff] %vm271_vm0, %v4241_v51  ;;  %289 = vst.msk [vmem:[#allocation2 + $0x88] sm:$0xff] %vm271_vm0, %v4241_v51  ;;  %v3854_v5 = vld [vmem:[%s4145_s19 + $0x2c0] ss:$8 sps:$4 sm:$0xff]   ;;  %v3855_v6 = vld [vmem:[%s4145_s19 + $0xd4] ss:$8 sps:$4 sm:$0xff]  }
  0x2e   : > { %1437 = vmatpush1.bf16.msra.mxu0 %v3767_v9  ;;  %3693 = vmatpush1.bf16.msra.mxu1 %v3767_v9  ;;  %290 = vst.msk [vmem:[#allocation2 + $0x90] sm:$0xff] %vm271_vm0, %v4241_v51  ;;  %291 = vst.msk [vmem:[#allocation2 + $0x98] sm:$0xff] %vm271_vm0, %v4241_v51  ;;  %v3857_v7 = vld [vmem:[%s4145_s19 + $0x2d4] ss:$8 sps:$4 sm:$0xff]   ;;  %v3859_v8 = vld [vmem:[%s4145_s19 + $0xd0] ss:$8 sps:$4 sm:$0xff]  }
  0x2f   : > { %1438 = vmatprep.subr.bf16.mxu0 %v4039_v1  ;;  %3678 = vmatprep.subr.bf16.mxu1 %v4039_v1  ;;  %292 = vst.msk [vmem:[#allocation2 + $0xa0] sm:$0xff] %vm271_vm0, %v4241_v51  ;;  %293 = vst.msk [vmem:[#allocation2 + $0xa8] sm:$0xff] %vm271_vm0, %v4241_v51  ;;  %v3860_v9 = vld [vmem:[%s4145_s19 + $0x2d0] ss:$8 sps:$4 sm:$0xff]  }
  0x30   : > { %294 = vst.msk [vmem:[#allocation2 + $0xb0] sm:$0xff] %vm271_vm0, %v4241_v51  ;;  %295 = vst.msk [vmem:[#allocation2 + $0xb8] sm:$0xff] %vm271_vm0, %v4241_v51 }
  0x31   : > { %296 = vst.msk [vmem:[#allocation2 + $0xc0] sm:$0xff] %vm271_vm0, %v4241_v51  ;;  %297 = vst.msk [vmem:[#allocation2 + $0xc8] sm:$0xff] %vm271_vm0, %v4241_v51 }
  0x32   : > { %1439 = vmatpush1.bf16.msra.mxu0 %v3768_v10  ;;  %3694 = vmatpush1.bf16.msra.mxu1 %v3768_v10  ;;  %298 = vst.msk [vmem:[#allocation2 + $0xd0] sm:$0xff] %vm271_vm0, %v4241_v51  ;;  %299 = vst.msk [vmem:[#allocation2 + $0xd8] sm:$0xff] %vm271_vm0, %v4241_v51  ;;  %v3861_v10 = vld [vmem:[%s4145_s19 + $0xe4] ss:$8 sps:$4 sm:$0xff]  }
  0x33   : > { %1440 = vmatprep.subr.bf16.mxu0 %v4039_v1  ;;  %3679 = vmatprep.subr.bf16.mxu1 %v4039_v1  ;;  %300 = vst.msk [vmem:[#allocation2 + $0xe0] sm:$0xff] %vm271_vm0, %v4241_v51  ;;  %301 = vst.msk [vmem:[#allocation2 + $0xe8] sm:$0xff] %vm271_vm0, %v4241_v51 }
  0x34   : > { %302 = vst.msk [vmem:[#allocation2 + $0xf0] sm:$0xff] %vm271_vm0, %v4241_v51  ;;  %303 = vst.msk [vmem:[#allocation2 + $0xf8] sm:$0xff] %vm271_vm0, %v4241_v51 }
  0x35   : > { %304 = vst.msk [vmem:[#allocation2 + $0x100] sm:$0xff] %vm271_vm0, %v4241_v51  ;;  %305 = vst.msk [vmem:[#allocation2 + $0x108] sm:$0xff] %vm271_vm0, %v4241_v51 }
  0x36   : > { %1441 = vmatpush2.bf16.msra.mxu0 %v3769_v11  ;;  %3695 = vmatpush2.bf16.msra.mxu1 %v3769_v11  ;;  %306 = vst.msk [vmem:[#allocation2 + $0x110] sm:$0xff] %vm271_vm0, %v4241_v51  ;;  %307 = vst.msk [vmem:[#allocation2 + $0x118] sm:$0xff] %vm271_vm0, %v4241_v51  ;;  %v3863_v11 = vld [vmem:[%s4145_s19 + $0x2e4] ss:$8 sps:$4 sm:$0xff]  }
  0x37   : > { %1442 = vmatprep.subr.bf16.mxu0 %v4039_v1  ;;  %3680 = vmatprep.subr.bf16.mxu1 %v4039_v1  ;;  %308 = vst.msk [vmem:[#allocation2 + $0x120] sm:$0xff] %vm271_vm0, %v4241_v51  ;;  %309 = vst.msk [vmem:[#allocation2 + $0x128] sm:$0xff] %vm271_vm0, %v4241_v51 }
  0x38   : > { %310 = vst.msk [vmem:[#allocation2 + $0x130] sm:$0xff] %vm271_vm0, %v4241_v51  ;;  %311 = vst.msk [vmem:[#allocation2 + $0x138] sm:$0xff] %vm271_vm0, %v4241_v51 }
  0x39   : > { %312 = vst.msk [vmem:[#allocation2 + $0x140] sm:$0xff] %vm271_vm0, %v4241_v51  ;;  %313 = vst.msk [vmem:[#allocation2 + $0x148] sm:$0xff] %vm271_vm0, %v4241_v51 }
  0x3a   : > { %1443 = vmatpush2.bf16.msra.mxu0 %v3770_v12  ;;  %3696 = vmatpush2.bf16.msra.mxu1 %v3770_v12  ;;  %314 = vst.msk [vmem:[#allocation2 + $0x150] sm:$0xff] %vm271_vm0, %v4241_v51  ;;  %315 = vst.msk [vmem:[#allocation2 + $0x158] sm:$0xff] %vm271_vm0, %v4241_v51  ;;  %v3865_v12 = vld [vmem:[%s4145_s19 + $0xe0] ss:$8 sps:$4 sm:$0xff]  }
  0x3b   : > { %1444 = vmatprep.subr.bf16.mxu0 %v4039_v1  ;;  %3681 = vmatprep.subr.bf16.mxu1 %v4039_v1  ;;  %316 = vst.msk [vmem:[#allocation2 + $0x160] sm:$0xff] %vm271_vm0, %v4241_v51  ;;  %317 = vst.msk [vmem:[#allocation2 + $0x168] sm:$0xff] %vm271_vm0, %v4241_v51 }
  0x3c   : > { %318 = vst.msk [vmem:[#allocation2 + $0x170] sm:$0xff] %vm271_vm0, %v4241_v51  ;;  %319 = vst.msk [vmem:[#allocation2 + $0x178] sm:$0xff] %vm271_vm0, %v4241_v51 }
  0x3d   : > { %320 = vst.msk [vmem:[#allocation2 + $0x180] sm:$0xff] %vm271_vm0, %v4241_v51  ;;  %321 = vst.msk [vmem:[#allocation2 + $0x188] sm:$0xff] %vm271_vm0, %v4241_v51 }
  0x3e   : > { %1445 = vmatpush2.bf16.msra.mxu0 %v3771_v13  ;;  %3697 = vmatpush2.bf16.msra.mxu1 %v3771_v13  ;;  %322 = vst.msk [vmem:[#allocation2 + $0x190] sm:$0xff] %vm271_vm0, %v4241_v51  ;;  %323 = vst.msk [vmem:[#allocation2 + $0x198] sm:$0xff] %vm271_vm0, %v4241_v51  ;;  %v3866_v13 = vld [vmem:[%s4145_s19 + $0x2e0] ss:$8 sps:$4 sm:$0xff]  }
  0x3f   : > { %1446 = vmatprep.subr.bf16.mxu0 %v4039_v1  ;;  %3682 = vmatprep.subr.bf16.mxu1 %v4039_v1  ;;  %324 = vst.msk [vmem:[#allocation2 + $0x1a0] sm:$0xff] %vm271_vm0, %v4241_v51  ;;  %325 = vst.msk [vmem:[#allocation2 + $0x1a8] sm:$0xff] %vm271_vm0, %v4241_v51 }
  0x40   : > { %326 = vst.msk [vmem:[#allocation2 + $0x1b0] sm:$0xff] %vm271_vm0, %v4241_v51  ;;  %327 = vst.msk [vmem:[#allocation2 + $0x1b8] sm:$0xff] %vm271_vm0, %v4241_v51 }
  0x41   : > { %328 = vst.msk [vmem:[#allocation2 + $0x1c0] sm:$0xff] %vm271_vm0, %v4241_v51  ;;  %329 = vst.msk [vmem:[#allocation2 + $0x1c8] sm:$0xff] %vm271_vm0, %v4241_v51 }
  0x42   : > { %1447 = vmatpush2.bf16.msra.mxu0 %v3772_v14  ;;  %3698 = vmatpush2.bf16.msra.mxu1 %v3772_v14  ;;  %330 = vst.msk [vmem:[#allocation2 + $0x1d0] sm:$0xff] %vm271_vm0, %v4241_v51  ;;  %331 = vst.msk [vmem:[#allocation2 + $0x1d8] sm:$0xff] %vm271_vm0, %v4241_v51  ;;  %v3867_v14 = vld [vmem:[%s4145_s19 + $0xf4] ss:$8 sps:$4 sm:$0xff]  }
  0x43   : > { %1448 = vmatprep.subr.bf16.mxu0 %v4039_v1  ;;  %3683 = vmatprep.subr.bf16.mxu1 %v4039_v1  ;;  %332 = vst.msk [vmem:[#allocation2 + $0x1e0] sm:$0xff] %vm271_vm0, %v4241_v51  ;;  %333 = vst.msk [vmem:[#allocation2 + $0x1e8] sm:$0xff] %vm271_vm0, %v4241_v51 }
  0x44   : > { %334 = vst.msk [vmem:[#allocation2 + $0x1f0] sm:$0xff] %vm271_vm0, %v4241_v51  ;;  %335 = vst.msk [vmem:[#allocation2 + $0x1f8] sm:$0xff] %vm271_vm0, %v4241_v51 }
  0x45   : > { %336 = vst.msk [vmem:[#allocation2 + $0x200] sm:$0xff] %vm271_vm0, %v4241_v51  ;;  %337 = vst.msk [vmem:[#allocation2 + $0x208] sm:$0xff] %vm271_vm0, %v4241_v51 }
  0x46   : > { %1449 = vmatpush2.bf16.msra.mxu0 %v3773_v15  ;;  %3699 = vmatpush2.bf16.msra.mxu1 %v3773_v15  ;;  %338 = vst.msk [vmem:[#allocation2 + $0x210] sm:$0xff] %vm271_vm0, %v4241_v51  ;;  %339 = vst.msk [vmem:[#allocation2 + $0x218] sm:$0xff] %vm271_vm0, %v4241_v51  ;;  %v3869_v15 = vld [vmem:[%s4145_s19 + $0x2f4] ss:$8 sps:$4 sm:$0xff]  }
  0x47   : > { %1450 = vmatprep.subr.bf16.mxu0 %v4039_v1  ;;  %3684 = vmatprep.subr.bf16.mxu1 %v4039_v1  ;;  %340 = vst.msk [vmem:[#allocation2 + $0x220] sm:$0xff] %vm271_vm0, %v4241_v51  ;;  %341 = vst.msk [vmem:[#allocation2 + $0x228] sm:$0xff] %vm271_vm0, %v4241_v51 }
  0x48   : > { %342 = vst.msk [vmem:[#allocation2 + $0x230] sm:$0xff] %vm271_vm0, %v4241_v51  ;;  %343 = vst.msk [vmem:[#allocation2 + $0x238] sm:$0xff] %vm271_vm0, %v4241_v51 }
  0x49   : > { %344 = vst.msk [vmem:[#allocation2 + $0x240] sm:$0xff] %vm271_vm0, %v4241_v51  ;;  %345 = vst.msk [vmem:[#allocation2 + $0x248] sm:$0xff] %vm271_vm0, %v4241_v51 }
  0x4a   : > { %1451 = vmatpush2.bf16.msra.mxu0 %v3774_v16  ;;  %3700 = vmatpush2.bf16.msra.mxu1 %v3774_v16  ;;  %346 = vst.msk [vmem:[#allocation2 + $0x250] sm:$0xff] %vm271_vm0, %v4241_v51  ;;  %347 = vst.msk [vmem:[#allocation2 + $0x258] sm:$0xff] %vm271_vm0, %v4241_v51  ;;  %v3871_v16 = vld [vmem:[%s4145_s19 + $0xf0] ss:$8 sps:$4 sm:$0xff]  }
  0x4b   : > { %1452 = vmatprep.subr.bf16.mxu0 %v4039_v1  ;;  %3685 = vmatprep.subr.bf16.mxu1 %v4039_v1  ;;  %348 = vst.msk [vmem:[#allocation2 + $0x260] sm:$0xff] %vm271_vm0, %v4241_v51  ;;  %349 = vst.msk [vmem:[#allocation2 + $0x268] sm:$0xff] %vm271_vm0, %v4241_v51 }
  0x4c   : > { %350 = vst.msk [vmem:[#allocation2 + $0x270] sm:$0xff] %vm271_vm0, %v4241_v51  ;;  %351 = vst.msk [vmem:[#allocation2 + $0x278] sm:$0xff] %vm271_vm0, %v4241_v51 }
  0x4d   : > { %352 = vst.msk [vmem:[#allocation2 + $0x280] sm:$0xff] %vm271_vm0, %v4241_v51  ;;  %353 = vst.msk [vmem:[#allocation2 + $0x288] sm:$0xff] %vm271_vm0, %v4241_v51 }
  0x4e   : > { %1453 = vmatpush2.bf16.msra.mxu0 %v3775_v17  ;;  %3701 = vmatpush2.bf16.msra.mxu1 %v3775_v17  ;;  %354 = vst.msk [vmem:[#allocation2 + $0x290] sm:$0xff] %vm271_vm0, %v4241_v51  ;;  %355 = vst.msk [vmem:[#allocation2 + $0x298] sm:$0xff] %vm271_vm0, %v4241_v51  ;;  %v3872_v17 = vld [vmem:[%s4145_s19 + $0x2f0] ss:$8 sps:$4 sm:$0xff]  }
  0x4f   : > { %1454 = vmatprep.subr.bf16.mxu0 %v4039_v1  ;;  %3686 = vmatprep.subr.bf16.mxu1 %v4039_v1  ;;  %356 = vst.msk [vmem:[#allocation2 + $0x2a0] sm:$0xff] %vm271_vm0, %v4241_v51  ;;  %357 = vst.msk [vmem:[#allocation2 + $0x2a8] sm:$0xff] %vm271_vm0, %v4241_v51  ;;  %v3848_v1 = vld [vmem:[%s4145_s19 + $0x2b0] ss:$8 sps:$4 sm:$0xff]  }
  0x50   : > { %358 = vst.msk [vmem:[#allocation2 + $0x2b0] sm:$0xff] %vm271_vm0, %v4241_v51  ;;  %359 = vst.msk [vmem:[#allocation2 + $0x2b8] sm:$0xff] %vm271_vm0, %v4241_v51 }
  0x51   : > { %360 = vst.msk [vmem:[#allocation2 + $0x2c0] sm:$0xff] %vm271_vm0, %v4241_v51  ;;  %361 = vst.msk [vmem:[#allocation2 + $0x2c8] sm:$0xff] %vm271_vm0, %v4241_v51 }
  0x52   : > { %1455 = vmatpush2.bf16.msra.mxu0 %v3776_v18  ;;  %3702 = vmatpush2.bf16.msra.mxu1 %v3776_v18  ;;  %362 = vst.msk [vmem:[#allocation2 + $0x2d0] sm:$0xff] %vm271_vm0, %v4241_v51  ;;  %363 = vst.msk [vmem:[#allocation2 + $0x2d8] sm:$0xff] %vm271_vm0, %v4241_v51  ;;  %v3873_v18 = vld [vmem:[%s4145_s19 + $0x104] ss:$8 sps:$4 sm:$0xff]  }
  0x53   : > { %364 = vst.msk [vmem:[#allocation2 + $0x2e0] sm:$0xff] %vm271_vm0, %v4241_v51  ;;  %365 = vst.msk [vmem:[#allocation2 + $0x2e8] sm:$0xff] %vm271_vm0, %v4241_v51 }
  0x54   : > { %366 = vst.msk [vmem:[#allocation2 + $0x2f0] sm:$0xff] %vm271_vm0, %v4241_v51  ;;  %367 = vst.msk [vmem:[#allocation2 + $0x2f8] sm:$0xff] %vm271_vm0, %v4241_v51 }
  0x55   : > { %1457 = vmatmul.mubr.bf16.vlgmr.msra.gmra.mxu0 %v3777_v19  ;;  %1713 = vmatmul.mubr.bf16.vlgmr.msra.gmra.mxu1 %v3780_v20  ;;  %368 = vst.msk [vmem:[#allocation2 + $0x300] sm:$0xff] %vm271_vm0, %v4241_v51  ;;  %369 = vst.msk [vmem:[#allocation2 + $0x308] sm:$0xff] %vm271_vm0, %v4241_v51  ;;  %v3875_v19 = vld [vmem:[%s4145_s19 + $0x304] ss:$8 sps:$4 sm:$0xff]   ;;  %v3877_v20 = vld [vmem:[%s4145_s19 + $0x100] ss:$8 sps:$4 sm:$0xff]  }
  0x56   : > { %1464 = vmatprep.mubr.bf16.mxu0 %v3783_v21  ;;  %1720 = vmatprep.mubr.bf16.mxu1 %v3785_v22  ;;  %370 = vst.msk [vmem:[#allocation2 + $0x310] sm:$0xff] %vm271_vm0, %v4241_v51  ;;  %371 = vst.msk [vmem:[#allocation2 + $0x318] sm:$0xff] %vm271_vm0, %v4241_v51  ;;  %v3878_v21 = vld [vmem:[%s4145_s19 + $0x300] ss:$8 sps:$4 sm:$0xff]   ;;  %v3879_v22 = vld [vmem:[%s4145_s19 + $0x114] ss:$8 sps:$4 sm:$0xff]  }
  0x57   : > { %372 = vst.msk [vmem:[#allocation2 + $0x320] sm:$0xff] %vm271_vm0, %v4241_v51  ;;  %373 = vst.msk [vmem:[#allocation2 + $0x328] sm:$0xff] %vm271_vm0, %v4241_v51 }
  0x58   : > { %374 = vst.msk [vmem:[#allocation2 + $0x330] sm:$0xff] %vm271_vm0, %v4241_v51  ;;  %375 = vst.msk [vmem:[#allocation2 + $0x338] sm:$0xff] %vm271_vm0, %v4241_v51 }
  0x59   : > { %376 = vst.msk [vmem:[#allocation2 + $0x340] sm:$0xff] %vm271_vm0, %v4241_v51  ;;  %377 = vst.msk [vmem:[#allocation2 + $0x348] sm:$0xff] %vm271_vm0, %v4241_v51 }
  0x5a   : > { %378 = vst.msk [vmem:[#allocation2 + $0x350] sm:$0xff] %vm271_vm0, %v4241_v51  ;;  %379 = vst.msk [vmem:[#allocation2 + $0x358] sm:$0xff] %vm271_vm0, %v4241_v51 }
  0x5b   : > { %380 = vst.msk [vmem:[#allocation2 + $0x360] sm:$0xff] %vm271_vm0, %v4241_v51  ;;  %381 = vst.msk [vmem:[#allocation2 + $0x368] sm:$0xff] %vm271_vm0, %v4241_v51 }
  0x5c   : > { %382 = vst.msk [vmem:[#allocation2 + $0x370] sm:$0xff] %vm271_vm0, %v4241_v51  ;;  %383 = vst.msk [vmem:[#allocation2 + $0x378] sm:$0xff] %vm271_vm0, %v4241_v51 }
  0x5d   : > { %1465 = vmatmul.mubr.bf16.gmra.mxu0 %v3787_v23  ;;  %1721 = vmatmul.mubr.bf16.gmra.mxu1 %v3788_v24  ;;  %384 = vst.msk [vmem:[#allocation2 + $0x380] sm:$0xff] %vm271_vm0, %v4241_v51  ;;  %385 = vst.msk [vmem:[#allocation2 + $0x388] sm:$0xff] %vm271_vm0, %v4241_v51  ;;  %v3881_v23 = vld [vmem:[%s4145_s19 + $0x314] ss:$8 sps:$4 sm:$0xff]   ;;  %v3883_v24 = vld [vmem:[%s4145_s19 + $0x110] ss:$8 sps:$4 sm:$0xff]  }
  0x5e   : > { %1472 = vmatprep.mubr.bf16.mxu0 %v3789_v25  ;;  %1728 = vmatprep.mubr.bf16.mxu1 %v3791_v26  ;;  %386 = vst.msk [vmem:[#allocation2 + $0x390] sm:$0xff] %vm271_vm0, %v4241_v51  ;;  %387 = vst.msk [vmem:[#allocation2 + $0x398] sm:$0xff] %vm271_vm0, %v4241_v51  ;;  %v3884_v25 = vld [vmem:[%s4145_s19 + $0x310] ss:$8 sps:$4 sm:$0xff]   ;;  %v3885_v26 = vld [vmem:[%s4145_s19 + $0x124] ss:$8 sps:$4 sm:$0xff]  }
  0x5f   : > { %388 = vst.msk [vmem:[#allocation2 + $0x3a0] sm:$0xff] %vm271_vm0, %v4241_v51  ;;  %389 = vst.msk [vmem:[#allocation2 + $0x3a8] sm:$0xff] %vm271_vm0, %v4241_v51 }
  0x60   : > { %390 = vst.msk [vmem:[#allocation2 + $0x3b0] sm:$0xff] %vm271_vm0, %v4241_v51  ;;  %391 = vst.msk [vmem:[#allocation2 + $0x3b8] sm:$0xff] %vm271_vm0, %v4241_v51 }
  0x61   : > { %392 = vst.msk [vmem:[#allocation2 + $0x3c0] sm:$0xff] %vm271_vm0, %v4241_v51  ;;  %393 = vst.msk [vmem:[#allocation2 + $0x3c8] sm:$0xff] %vm271_vm0, %v4241_v51 }
  0x62   : > { %394 = vst.msk [vmem:[#allocation2 + $0x3d0] sm:$0xff] %vm271_vm0, %v4241_v51  ;;  %395 = vst.msk [vmem:[#allocation2 + $0x3d8] sm:$0xff] %vm271_vm0, %v4241_v51 }
  0x63   : > { %396 = vst.msk [vmem:[#allocation2 + $0x3e0] sm:$0xff] %vm271_vm0, %v4241_v51  ;;  %397 = vst.msk [vmem:[#allocation2 + $0x3e8] sm:$0xff] %vm271_vm0, %v4241_v51 }
  0x64   : > { %398 = vst.msk [vmem:[#allocation2 + $0x3f0] sm:$0xff] %vm271_vm0, %v4241_v51  ;;  %399 = vst.msk [vmem:[#allocation2 + $0x3f8] sm:$0xff] %vm271_vm0, %v4241_v51  ;;  %v3923_v51 = vld [vmem:[%s4145_s19 + $0x384] ss:$8 sps:$4 sm:$0xff]  }
  0x65   : > { %1473 = vmatmul.mubr.bf16.gmra.mxu0 %v3793_v27  ;;  %1729 = vmatmul.mubr.bf16.gmra.mxu1 %v3794_v28  ;;  %v3887_v27 = vld [vmem:[%s4145_s19 + $0x324] ss:$8 sps:$4 sm:$0xff]   ;;  %v3889_v28 = vld [vmem:[%s4145_s19 + $0x120] ss:$8 sps:$4 sm:$0xff]  }
  0x66   : > { %1480 = vmatprep.mubr.bf16.mxu0 %v3795_v29  ;;  %1736 = vmatprep.mubr.bf16.mxu1 %v3797_v30  ;;  %v3890_v29 = vld [vmem:[%s4145_s19 + $0x320] ss:$8 sps:$4 sm:$0xff]   ;;  %v3891_v30 = vld [vmem:[%s4145_s19 + $0x134] ss:$8 sps:$4 sm:$0xff]  }
  0x6d   : > { %1481 = vmatmul.mubr.bf16.gmra.mxu0 %v3799_v31  ;;  %1737 = vmatmul.mubr.bf16.gmra.mxu1 %v3800_v32  ;;  %v3893_v31 = vld [vmem:[%s4145_s19 + $0x334] ss:$8 sps:$4 sm:$0xff]   ;;  %v3895_v32 = vld [vmem:[%s4145_s19 + $0x130] ss:$8 sps:$4 sm:$0xff]  }
  0x6e   : > { %1488 = vmatprep.mubr.bf16.mxu0 %v3801_v33  ;;  %1744 = vmatprep.mubr.bf16.mxu1 %v3803_v34  ;;  %v3896_v33 = vld [vmem:[%s4145_s19 + $0x330] ss:$8 sps:$4 sm:$0xff]   ;;  %v3897_v34 = vld [vmem:[%s4145_s19 + $0x144] ss:$8 sps:$4 sm:$0xff]  }
  0x75   : > { %1489 = vmatmul.mubr.bf16.gmra.mxu0 %v3805_v35  ;;  %1745 = vmatmul.mubr.bf16.gmra.mxu1 %v3806_v36  ;;  %v3899_v35 = vld [vmem:[%s4145_s19 + $0x344] ss:$8 sps:$4 sm:$0xff]   ;;  %v3901_v36 = vld [vmem:[%s4145_s19 + $0x140] ss:$8 sps:$4 sm:$0xff]  }
  0x76   : > { %1496 = vmatprep.mubr.bf16.mxu0 %v3807_v37  ;;  %1752 = vmatprep.mubr.bf16.mxu1 %v3809_v38  ;;  %v3902_v37 = vld [vmem:[%s4145_s19 + $0x340] ss:$8 sps:$4 sm:$0xff]   ;;  %v3903_v38 = vld [vmem:[%s4145_s19 + $0x154] ss:$8 sps:$4 sm:$0xff]  }
  0x7d   : > { %1497 = vmatmul.mubr.bf16.gmra.mxu0 %v3811_v39  ;;  %1753 = vmatmul.mubr.bf16.gmra.mxu1 %v3812_v40  ;;  %v3905_v39 = vld [vmem:[%s4145_s19 + $0x354] ss:$8 sps:$4 sm:$0xff]   ;;  %v3907_v40 = vld [vmem:[%s4145_s19 + $0x150] ss:$8 sps:$4 sm:$0xff]  }
  0x7e   : > { %1504 = vmatprep.mubr.bf16.mxu0 %v3813_v41  ;;  %1760 = vmatprep.mubr.bf16.mxu1 %v3815_v42  ;;  %v3908_v41 = vld [vmem:[%s4145_s19 + $0x350] ss:$8 sps:$4 sm:$0xff]   ;;  %v3909_v42 = vld [vmem:[%s4145_s19 + $0x164] ss:$8 sps:$4 sm:$0xff]  }
  0x85   : > { %1505 = vmatmul.mubr.bf16.gmra.mxu0 %v3817_v43  ;;  %1761 = vmatmul.mubr.bf16.gmra.mxu1 %v3818_v44  ;;  %v3911_v43 = vld [vmem:[%s4145_s19 + $0x364] ss:$8 sps:$4 sm:$0xff]   ;;  %v3913_v44 = vld [vmem:[%s4145_s19 + $0x160] ss:$8 sps:$4 sm:$0xff]  }
  0x86   : > { %1512 = vmatprep.mubr.bf16.mxu0 %v3819_v45  ;;  %1768 = vmatprep.mubr.bf16.mxu1 %v3821_v46  ;;  %v3914_v45 = vld [vmem:[%s4145_s19 + $0x360] ss:$8 sps:$4 sm:$0xff]   ;;  %v3915_v46 = vld [vmem:[%s4145_s19 + $0x174] ss:$8 sps:$4 sm:$0xff]  }
  0x8d   : > { %1513 = vmatmul.mubr.bf16.gmra.mxu0 %v3823_v47  ;;  %1769 = vmatmul.mubr.bf16.gmra.mxu1 %v3824_v48  ;;  %v3917_v47 = vld [vmem:[%s4145_s19 + $0x374] ss:$8 sps:$4 sm:$0xff]   ;;  %v3919_v48 = vld [vmem:[%s4145_s19 + $0x170] ss:$8 sps:$4 sm:$0xff]  }
  0x8e   : > { %1520 = vmatprep.mubr.bf16.mxu0 %v3825_v49  ;;  %1776 = vmatprep.mubr.bf16.mxu1 %v3827_v50  ;;  %v3920_v49 = vld [vmem:[%s4145_s19 + $0x370] ss:$8 sps:$4 sm:$0xff]   ;;  %v3921_v50 = vld [vmem:[%s4145_s19 + $0x184] ss:$8 sps:$4 sm:$0xff]  }
  0x95   : > { %1521 = vmatmul.mubr.bf16.gmra.mxu0 %v3829_v52  ;;  %1777 = vmatmul.mubr.bf16.gmra.mxu1 %v3830_v53  ;;  %v576_v52 = vld [vmem:[%s4145_s19 + $0x180] sm:$0xff]  ;;  %v577_v53 = vld [vmem:[%s4145_s19 + $0x188] sm:$0xff] }
  0x96   : > { %1528 = vmatprep.mubr.bf16.mxu0 %v3831_v54  ;;  %1784 = vmatprep.mubr.bf16.mxu1 %v3833_v55  ;;  %v640_v54 = vld [vmem:[%s4145_s19 + $0x380] sm:$0xff]  ;;  %v641_v55 = vld [vmem:[%s4145_s19 + $0x388] sm:$0xff] }
  0x9d   : > { %1529 = vmatmul.mubr.bf16.gmra.mxu0 %v3835_v56  ;;  %1785 = vmatmul.mubr.bf16.gmra.mxu1 %v3836_v57  ;;  %v3312_v56 = vcombine.low %v576_v52, %v577_v53  ;;  %v3376_v57 = vcombine.low %v640_v54, %v641_v55  ;;  %v3935_v53 = vld [vmem:[%s4145_s19 + $0x3b4] ss:$8 sps:$4 sm:$0xff]  }
  0x9e   : > { %1536 = vmatprep.mubr.bf16.mxu0 %v3837_v58  ;;  %1792 = vmatprep.mubr.bf16.mxu1 %v3839_v59  ;;  %v3925_v58 = vld [vmem:[%s4145_s19 + $0x194] ss:$8 sps:$4 sm:$0xff]  }
  0x9f   : > { %v3927_v59 = vld [vmem:[%s4145_s19 + $0x394] ss:$8 sps:$4 sm:$0xff]  }
  0xa5   : > { %1537 = vmatmul.mubr.bf16.gmra.mxu0 %v3841_v60  ;;  %1793 = vmatmul.mubr.bf16.gmra.mxu1 %v3842_v61  ;;  %v400_v60 = vld [vmem:[#allocation2] sm:$0xff] }
  0xa6   : > { %1544 = vmatprep.mubr.bf16.mxu0 %v3843_v62  ;;  %1800 = vmatprep.mubr.bf16.mxu1 %v3845_v63  ;;  %v464_v61 = vld [vmem:[#allocation2 + $0x200] sm:$0xff] }
  0xad   : > { %1545 = vmatmul.mubr.bf16.gmra.mxu0 %v3847_v0  ;;  %1801 = vmatmul.mubr.bf16.gmra.mxu1 %v3848_v1  ;;  %v578_v0 = vld [vmem:[%s4145_s19 + $0x190] sm:$0xff] }
  0xae   : > { %1552 = vmatprep.mubr.bf16.mxu0 %v3849_v2  ;;  %1808 = vmatprep.mubr.bf16.mxu1 %v3851_v3  ;;  %v579_v3 = vld [vmem:[%s4145_s19 + $0x198] sm:$0xff] }
  0xb5   : > { %1553 = vmatmul.mubr.bf16.gmra.mxu0 %v3853_v4  ;;  %1809 = vmatmul.mubr.bf16.gmra.mxu1 %v3854_v5  ;;  %v642_v4 = vld [vmem:[%s4145_s19 + $0x390] sm:$0xff]  ;;  %v643_v5 = vld [vmem:[%s4145_s19 + $0x398] sm:$0xff] }
  0xb6   : > { %1560 = vmatprep.mubr.bf16.mxu0 %v3855_v6  ;;  %1816 = vmatprep.mubr.bf16.mxu1 %v3857_v7 }
  0xbd   : > { %1561 = vmatmul.mubr.bf16.gmra.mxu0 %v3859_v8  ;;  %1817 = vmatmul.mubr.bf16.gmra.mxu1 %v3860_v9  ;;  %v401_v8 = vld [vmem:[#allocation2 + $0x8] sm:$0xff] }
  0xbe   : > { %1568 = vmatprep.mubr.bf16.mxu0 %v3861_v10  ;;  %1824 = vmatprep.mubr.bf16.mxu1 %v3863_v11  ;;  %v465_v9 = vld [vmem:[#allocation2 + $0x208] sm:$0xff] }
  0xc5   : > { %1569 = vmatmul.mubr.bf16.gmra.mxu0 %v3865_v12  ;;  %1825 = vmatmul.mubr.bf16.gmra.mxu1 %v3866_v13  ;;  %v3314_v12 = vcombine.low %v578_v0, %v579_v3  ;;  %v3378_v13 = vcombine.low %v642_v4, %v643_v5  ;;  %v583_v0 = vld [vmem:[%s4145_s19 + $0x1b8] sm:$0xff] }
  0xc6   : > { %1576 = vmatprep.mubr.bf16.mxu0 %v3867_v14  ;;  %1832 = vmatprep.mubr.bf16.mxu1 %v3869_v15 }
  0xcd   : > { %1577 = vmatmul.mubr.bf16.gmra.mxu0 %v3871_v16  ;;  %1833 = vmatmul.mubr.bf16.gmra.mxu1 %v3872_v17  ;;  %v3929_v16 = vld [vmem:[%s4145_s19 + $0x1a4] ss:$8 sps:$4 sm:$0xff]  }
  0xce   : > { %1584 = vmatprep.mubr.bf16.mxu0 %v3873_v18  ;;  %1840 = vmatprep.mubr.bf16.mxu1 %v3875_v19  ;;  %v3931_v17 = vld [vmem:[%s4145_s19 + $0x3a4] ss:$8 sps:$4 sm:$0xff]  }
  0xd5   : > { %1585 = vmatmul.mubr.bf16.gmra.mxu0 %v3877_v20  ;;  %1841 = vmatmul.mubr.bf16.gmra.mxu1 %v3878_v21  ;;  %v402_v20 = vld [vmem:[#allocation2 + $0x10] sm:$0xff] }
  0xd6   : > { %1592 = vmatprep.mubr.bf16.mxu0 %v3879_v22  ;;  %1848 = vmatprep.mubr.bf16.mxu1 %v3881_v23  ;;  %v466_v21 = vld [vmem:[#allocation2 + $0x210] sm:$0xff] }
  0xdd   : > { %1593 = vmatmul.mubr.bf16.gmra.mxu0 %v3883_v24  ;;  %1849 = vmatmul.mubr.bf16.gmra.mxu1 %v3884_v25  ;;  %v403_v24 = vld [vmem:[#allocation2 + $0x18] sm:$0xff]  ;;  %v580_v25 = vld [vmem:[%s4145_s19 + $0x1a0] sm:$0xff] }
  0xde   : > { %1600 = vmatprep.mubr.bf16.mxu0 %v3885_v26  ;;  %1856 = vmatprep.mubr.bf16.mxu1 %v3887_v27 }
  0xe5   : > { %1601 = vmatmul.mubr.bf16.gmra.mxu0 %v3889_v28  ;;  %1857 = vmatmul.mubr.bf16.gmra.mxu1 %v3890_v29  ;;  %v581_v28 = vld [vmem:[%s4145_s19 + $0x1a8] sm:$0xff]  ;;  %v644_v29 = vld [vmem:[%s4145_s19 + $0x3a0] sm:$0xff] }
  0xe6   : > { %1608 = vmatprep.mubr.bf16.mxu0 %v3891_v30  ;;  %1864 = vmatprep.mubr.bf16.mxu1 %v3893_v31  ;;  %v645_v30 = vld [vmem:[%s4145_s19 + $0x3a8] sm:$0xff] }
  0xed   : > { %1609 = vmatmul.mubr.bf16.gmra.mxu0 %v3895_v32  ;;  %1865 = vmatmul.mubr.bf16.gmra.mxu1 %v3896_v33 }
  0xee   : > { %1616 = vmatprep.mubr.bf16.mxu0 %v3897_v34  ;;  %1872 = vmatprep.mubr.bf16.mxu1 %v3899_v35  ;;  %v467_v35 = vld [vmem:[#allocation2 + $0x218] sm:$0xff] }
  0xf5   : > { %1617 = vmatmul.mubr.bf16.gmra.mxu0 %v3901_v36  ;;  %1873 = vmatmul.mubr.bf16.gmra.mxu1 %v3902_v37 }
  0xf6   : > { %1624 = vmatprep.mubr.bf16.mxu0 %v3903_v38  ;;  %1880 = vmatprep.mubr.bf16.mxu1 %v3905_v39 }
  0xfd   : > { %1625 = vmatmul.mubr.bf16.gmra.mxu0 %v3907_v40  ;;  %1881 = vmatmul.mubr.bf16.gmra.mxu1 %v3908_v41  ;;  %v3316_v40 = vcombine.low %v580_v25, %v581_v28  ;;  %v3380_v41 = vcombine.low %v644_v29, %v645_v30  ;;  %v3942_v25 = vld [vmem:[%s4145_s19 + $0x3c4] ss:$8 sps:$4 sm:$0xff]  }
  0xfe   : > { %1632 = vmatprep.mubr.bf16.mxu0 %v3909_v42  ;;  %1888 = vmatprep.mubr.bf16.mxu1 %v3911_v43 }
 0x105   : > { %1633 = vmatmul.mubr.bf16.gmra.mxu0 %v3913_v44  ;;  %1889 = vmatmul.mubr.bf16.gmra.mxu1 %v3914_v45 }
 0x106   : > { %1640 = vmatprep.mubr.bf16.mxu0 %v3915_v46  ;;  %1896 = vmatprep.mubr.bf16.mxu1 %v3917_v47  ;;  %v404_v46 = vld [vmem:[#allocation2 + $0x20] sm:$0xff] }
 0x107   : > { %v468_v47 = vld [vmem:[#allocation2 + $0x220] sm:$0xff] }
 0x10d   : > { %1641 = vmatmul.mubr.bf16.gmra.mxu0 %v3919_v48  ;;  %1897 = vmatmul.mubr.bf16.gmra.mxu1 %v3920_v49  ;;  %v3933_v48 = vld [vmem:[%s4145_s19 + $0x1b4] ss:$8 sps:$4 sm:$0xff]  }
 0x10e   : > { %1648 = vmatprep.mubr.bf16.mxu0 %v3921_v50  ;;  %1904 = vmatprep.mubr.bf16.mxu1 %v3923_v51 }
 0x115   : > { %v1458_v62 = vpop.f32.mrf.mxu0  ;;  %1649 = vmatmul.mubr.bf16.gmra.mxu0 %v3312_v56  ;;  %v1714_v63 = vpop.f32.mrf.mxu1  ;;  %1905 = vmatmul.mubr.bf16.gmra.mxu1 %v3376_v57 }
 0x116   : > { %v1969_v1 = vadd.f32 %v1458_v62, %v400_v60  ;;  %v2033_v2 = vadd.f32 %v1714_v63, %v464_v61  ;;  %1656 = vmatprep.mubr.bf16.mxu0 %v3925_v58  ;;  %1912 = vmatprep.mubr.bf16.mxu1 %v3927_v59  ;;  %v405_v58 = vld [vmem:[#allocation2 + $0x28] sm:$0xff]  ;;  %v582_v59 = vld [vmem:[%s4145_s19 + $0x1b0] sm:$0xff] }
 0x117   : > { %v1460_v6 = vpop.f32.mrf.mxu0  ;;  %v1716_v7 = vpop.f32.mrf.mxu1 }
 0x118   : > { %2098 = vst.msk [vmem:[#allocation2] sm:$0xff] %vm271_vm0, %v1969_v1  ;;  %2162 = vst.msk [vmem:[#allocation2 + $0x200] sm:$0xff] %vm271_vm0, %v2033_v2  ;;  %v646_v1 = vld [vmem:[%s4145_s19 + $0x3b0] sm:$0xff]  ;;  %v647_v2 = vld [vmem:[%s4145_s19 + $0x3b8] sm:$0xff] }
 0x119   : > { %v1461_v10 = vpop.f32.mrf.mxu0  ;;  %v1717_v11 = vpop.f32.mrf.mxu1  ;;  %v469_v7 = vld [vmem:[#allocation2 + $0x228] sm:$0xff] }
 0x11a   : > { %v1970_v14 = vadd.f32 %v1461_v10, %v401_v8  ;;  %v2034_v15 = vadd.f32 %v1717_v11, %v465_v9 }
 0x11b   : > { %v1463_v18 = vpop.f32.mrf.mxu0  ;;  %v1719_v19 = vpop.f32.mrf.mxu1 }
 0x11c   : > { %2099 = vst.msk [vmem:[#allocation2 + $0x8] sm:$0xff] %vm271_vm0, %v1970_v14  ;;  %2163 = vst.msk [vmem:[#allocation2 + $0x208] sm:$0xff] %vm271_vm0, %v2034_v15  ;;  %v406_v18 = vld [vmem:[#allocation2 + $0x30] sm:$0xff] }
 0x11d   : > { %v1466_v22 = vpop.f32.mrf.mxu0  ;;  %1657 = vmatmul.mubr.bf16.gmra.mxu0 %v3314_v12  ;;  %v1722_v23 = vpop.f32.mrf.mxu1  ;;  %1913 = vmatmul.mubr.bf16.gmra.mxu1 %v3378_v13  ;;  %v3318_v12 = vcombine.low %v582_v59, %v583_v0  ;;  %v3382_v13 = vcombine.low %v646_v1, %v647_v2  ;;  %v470_v19 = vld [vmem:[#allocation2 + $0x230] sm:$0xff]  ;;  %v409_v2 = vld [vmem:[#allocation2 + $0x48] sm:$0xff] }
 0x11e   : > { %v1971_v26 = vadd.f32 %v1466_v22, %v402_v20  ;;  %v2035_v27 = vadd.f32 %v1722_v23, %v466_v21  ;;  %1664 = vmatprep.mubr.bf16.mxu0 %v3929_v16  ;;  %1920 = vmatprep.mubr.bf16.mxu1 %v3931_v17  ;;  %v3939_v20 = vld [vmem:[%s4145_s19 + $0x1c4] ss:$8 sps:$4 sm:$0xff]  }
 0x11f   : > { %v2229_v31 = vld [vmem:[#allocation2] sm:$0xff]  ;;  %v1468_v33 = vpop.f32.mrf.mxu0  ;;  %v1724_v34 = vpop.f32.mrf.mxu1 }
 0x120   : > { %v2293_v32 = vld [vmem:[#allocation2 + $0x200] sm:$0xff]  ;;  %v2357_v36 = vmax.f32 %v2229_v31, 0.0  ;;  %2100 = vst.msk [vmem:[#allocation2 + $0x10] sm:$0xff] %vm271_vm0, %v1971_v26  ;;  %2164 = vst.msk [vmem:[#allocation2 + $0x210] sm:$0xff] %vm271_vm0, %v2035_v27  ;;  %v407_v34 = vld [vmem:[#allocation2 + $0x38] sm:$0xff] }
 0x121   : > { %v2421_v37 = vmax.f32 %v2293_v32, 0.0  ;;  %v1469_v38 = vpop.f32.mrf.mxu0  ;;  %v1725_v39 = vpop.f32.mrf.mxu1 }
 0x122   : > { %v3542_v42 = vpack.c.bf16 %v2357_v36, %v2357_v36  ;;  %v1972_v44 = vadd.f32 %v1469_v38, %v403_v24  ;;  %v2036_v45 = vadd.f32 %v1725_v39, %v467_v35  ;;  %v471_v39 = vld [vmem:[#allocation2 + $0x238] sm:$0xff] }
 0x123   : > { %v3606_v43 = vpack.c.bf16 %v2421_v37, %v2421_v37  ;;  %v2230_v49 = vld [vmem:[#allocation2 + $0x8] sm:$0xff]  ;;  %v1471_v51 = vpop.f32.mrf.mxu0  ;;  %v1727_v52 = vpop.f32.mrf.mxu1 }
 0x124   : > { %v2294_v50 = vld [vmem:[#allocation2 + $0x208] sm:$0xff]  ;;  %2998 = vst.msk [vmem:[%s4593_s7] sm:$0xf] %vm2997_vm1, %v3542_v42  ;;  %v2358_v54 = vmax.f32 %v2230_v49, 0.0  ;;  %v472_v51 = vld [vmem:[#allocation2 + $0x240] sm:$0xff] }
 0x125   : > { %3062 = vst.msk [vmem:[%s4593_s7 + $0x100] sm:$0xf] %vm2997_vm1, %v3606_v43  ;;  %v2422_v55 = vmax.f32 %v2294_v50, 0.0  ;;  %v1474_v56 = vpop.f32.mrf.mxu0  ;;  %1665 = vmatmul.mubr.bf16.gmra.mxu0 %v3316_v40  ;;  %v1730_v57 = vpop.f32.mrf.mxu1  ;;  %1921 = vmatmul.mubr.bf16.gmra.mxu1 %v3380_v41  ;;  %v408_v50 = vld [vmem:[#allocation2 + $0x40] sm:$0xff]  ;;  %v3945_v52 = vld [vmem:[%s4145_s19 + $0x1d4] ss:$8 sps:$4 sm:$0xff]  }
 0x126   : > { %2101 = vst.msk [vmem:[#allocation2 + $0x18] sm:$0xff] %vm271_vm0, %v1972_v44  ;;  %2165 = vst.msk [vmem:[#allocation2 + $0x218] sm:$0xff] %vm271_vm0, %v2036_v45  ;;  %v3543_v60 = vpack.c.bf16 %v2358_v54, %v2358_v54  ;;  %v1973_v62 = vadd.f32 %v1474_v56, %v404_v46  ;;  %v2037_v63 = vadd.f32 %v1730_v57, %v468_v47  ;;  %1672 = vmatprep.mubr.bf16.mxu0 %v3933_v48  ;;  %v3937_v44 = vld [vmem:[%s4145_s19 + $0x1c0] ss:$8 sps:$4 sm:$0xff]   ;;  %v3948_v57 = vld [vmem:[%s4145_s19 + $0x3d4] ss:$8 sps:$4 sm:$0xff]  }
 0x127   : > { %v3607_v61 = vpack.c.bf16 %v2422_v55, %v2422_v55  ;;  %v2231_v3 = vld [vmem:[#allocation2 + $0x10] sm:$0xff]  ;;  %v1476_v5 = vpop.f32.mrf.mxu0  ;;  %v1732_v6 = vpop.f32.mrf.mxu1  ;;  %1928 = vmatprep.mubr.bf16.mxu1 %v3935_v53  ;;  %v3940_v45 = vld [vmem:[%s4145_s19 + $0x3c0] ss:$8 sps:$4 sm:$0xff]  }
 0x128   : > { %v2295_v4 = vld [vmem:[#allocation2 + $0x210] sm:$0xff]  ;;  %2999 = vst.msk [vmem:[%s4593_s7 + $0x4] sm:$0xf] %vm2997_vm1, %v3543_v60  ;;  %v2359_v8 = vmax.f32 %v2231_v3, 0.0 }
 0x129   : > { %3063 = vst.msk [vmem:[%s4593_s7 + $0x104] sm:$0xf] %vm2997_vm1, %v3607_v61  ;;  %v2423_v9 = vmax.f32 %v2295_v4, 0.0  ;;  %v1477_v10 = vpop.f32.mrf.mxu0  ;;  %v1733_v11 = vpop.f32.mrf.mxu1 }
 0x12a   : > { %2102 = vst.msk [vmem:[#allocation2 + $0x20] sm:$0xff] %vm271_vm0, %v1973_v62  ;;  %2166 = vst.msk [vmem:[#allocation2 + $0x220] sm:$0xff] %vm271_vm0, %v2037_v63  ;;  %v3544_v14 = vpack.c.bf16 %v2359_v8, %v2359_v8  ;;  %v1974_v16 = vadd.f32 %v1477_v10, %v405_v58  ;;  %v2038_v17 = vadd.f32 %v1733_v11, %v469_v7  ;;  %v473_v7 = vld [vmem:[#allocation2 + $0x248] sm:$0xff] }
 0x12b   : > { %v3608_v15 = vpack.c.bf16 %v2423_v9, %v2423_v9  ;;  %v1479_v23 = vpop.f32.mrf.mxu0  ;;  %v1735_v24 = vpop.f32.mrf.mxu1 }
 0x12c   : > { %3000 = vst.msk [vmem:[%s4593_s7 + $0x8] sm:$0xf] %vm2997_vm1, %v3544_v14 }
 0x12d   : > { %v2232_v21 = vld [vmem:[#allocation2 + $0x18] sm:$0xff]  ;;  %3064 = vst.msk [vmem:[%s4593_s7 + $0x108] sm:$0xf] %vm2997_vm1, %v3608_v15  ;;  %v1482_v28 = vpop.f32.mrf.mxu0  ;;  %1673 = vmatmul.mubr.bf16.gmra.mxu0 %v3318_v12  ;;  %v1738_v29 = vpop.f32.mrf.mxu1  ;;  %1929 = vmatmul.mubr.bf16.gmra.mxu1 %v3382_v13 }
 0x12e   : > { %v2296_v22 = vld [vmem:[#allocation2 + $0x218] sm:$0xff]  ;;  %v2360_v26 = vmax.f32 %v2232_v21, 0.0  ;;  %2103 = vst.msk [vmem:[#allocation2 + $0x28] sm:$0xff] %vm271_vm0, %v1974_v16  ;;  %2167 = vst.msk [vmem:[#allocation2 + $0x228] sm:$0xff] %vm271_vm0, %v2038_v17  ;;  %v1975_v32 = vadd.f32 %v1482_v28, %v406_v18  ;;  %v2039_v33 = vadd.f32 %v1738_v29, %v470_v19  ;;  %1680 = vmatprep.mubr.bf16.mxu0 %v3939_v20  ;;  %1936 = vmatprep.mubr.bf16.mxu1 %v3942_v25  ;;  %v410_v18 = vld [vmem:[#allocation2 + $0x50] sm:$0xff] }
 0x12f   : > { %v2424_v27 = vmax.f32 %v2296_v22, 0.0  ;;  %v1484_v37 = vpop.f32.mrf.mxu0  ;;  %v1740_v38 = vpop.f32.mrf.mxu1  ;;  %v3943_v12 = vld [vmem:[%s4145_s19 + $0x1d0] ss:$8 sps:$4 sm:$0xff]   ;;  %v3951_v20 = vld [vmem:[%s4145_s19 + $0x1e4] ss:$8 sps:$4 sm:$0xff]  }
 0x130   : > { %v3545_v30 = vpack.c.bf16 %v2360_v26, %v2360_v26  ;;  %2104 = vst.msk [vmem:[#allocation2 + $0x30] sm:$0xff] %vm271_vm0, %v1975_v32  ;;  %2168 = vst.msk [vmem:[#allocation2 + $0x230] sm:$0xff] %vm271_vm0, %v2039_v33  ;;  %v3946_v13 = vld [vmem:[%s4145_s19 + $0x3d0] ss:$8 sps:$4 sm:$0xff]   ;;  %v3954_v25 = vld [vmem:[%s4145_s19 + $0x3e4] ss:$8 sps:$4 sm:$0xff]  }
 0x131   : > { %v3609_v31 = vpack.c.bf16 %v2424_v27, %v2424_v27  ;;  %v2233_v35 = vld [vmem:[#allocation2 + $0x20] sm:$0xff]  ;;  %v1485_v42 = vpop.f32.mrf.mxu0  ;;  %v1741_v43 = vpop.f32.mrf.mxu1  ;;  %v474_v19 = vld [vmem:[#allocation2 + $0x250] sm:$0xff] }
 0x132   : > { %v2297_v36 = vld [vmem:[#allocation2 + $0x220] sm:$0xff]  ;;  %3001 = vst.msk [vmem:[%s4593_s7 + $0xc] sm:$0xf] %vm2997_vm1, %v3545_v30  ;;  %v2361_v40 = vmax.f32 %v2233_v35, 0.0  ;;  %v1976_v48 = vadd.f32 %v1485_v42, %v407_v34  ;;  %v2040_v49 = vadd.f32 %v1741_v43, %v471_v39  ;;  %v411_v34 = vld [vmem:[#allocation2 + $0x58] sm:$0xff] }
 0x133   : > { %3065 = vst.msk [vmem:[%s4593_s7 + $0x10c] sm:$0xf] %vm2997_vm1, %v3609_v31  ;;  %v2425_v41 = vmax.f32 %v2297_v36, 0.0  ;;  %v1487_v55 = vpop.f32.mrf.mxu0  ;;  %v1743_v56 = vpop.f32.mrf.mxu1  ;;  %v475_v39 = vld [vmem:[#allocation2 + $0x258] sm:$0xff] }
 0x134   : > { %v3546_v46 = vpack.c.bf16 %v2361_v40, %v2361_v40  ;;  %2105 = vst.msk [vmem:[#allocation2 + $0x38] sm:$0xff] %vm271_vm0, %v1976_v48  ;;  %2169 = vst.msk [vmem:[#allocation2 + $0x238] sm:$0xff] %vm271_vm0, %v2040_v49 }
 0x135   : > { %v3610_v47 = vpack.c.bf16 %v2425_v41, %v2425_v41  ;;  %v2234_v53 = vld [vmem:[#allocation2 + $0x28] sm:$0xff]  ;;  %v1490_v60 = vpop.f32.mrf.mxu0  ;;  %1681 = vmatmul.mubr.bf16.gmra.mxu0 %v3937_v44  ;;  %v1746_v61 = vpop.f32.mrf.mxu1  ;;  %1937 = vmatmul.mubr.bf16.gmra.mxu1 %v3940_v45 }
 0x136   : > { %v2298_v54 = vld [vmem:[#allocation2 + $0x228] sm:$0xff]  ;;  %3002 = vst.msk [vmem:[%s4593_s7 + $0x10] sm:$0xf] %vm2997_vm1, %v3546_v46  ;;  %v2362_v58 = vmax.f32 %v2234_v53, 0.0  ;;  %v1977_v0 = vadd.f32 %v1490_v60, %v408_v50  ;;  %v2041_v1 = vadd.f32 %v1746_v61, %v472_v51  ;;  %1688 = vmatprep.mubr.bf16.mxu0 %v3945_v52  ;;  %1944 = vmatprep.mubr.bf16.mxu1 %v3948_v57  ;;  %v412_v50 = vld [vmem:[#allocation2 + $0x60] sm:$0xff] }
 0x137   : > { %3066 = vst.msk [vmem:[%s4593_s7 + $0x110] sm:$0xf] %vm2997_vm1, %v3610_v47  ;;  %v2426_v59 = vmax.f32 %v2298_v54, 0.0  ;;  %v2235_v3 = vld [vmem:[#allocation2 + $0x30] sm:$0xff]  ;;  %v1492_v5 = vpop.f32.mrf.mxu0  ;;  %v1748_v6 = vpop.f32.mrf.mxu1  ;;  %v3949_v44 = vld [vmem:[%s4145_s19 + $0x1e0] ss:$8 sps:$4 sm:$0xff]  }
 0x138   : > { %v3547_v62 = vpack.c.bf16 %v2362_v58, %v2362_v58  ;;  %v2299_v4 = vld [vmem:[#allocation2 + $0x230] sm:$0xff]  ;;  %v2363_v8 = vmax.f32 %v2235_v3, 0.0  ;;  %2106 = vst.msk [vmem:[#allocation2 + $0x40] sm:$0xff] %vm271_vm0, %v1977_v0  ;;  %2170 = vst.msk [vmem:[#allocation2 + $0x240] sm:$0xff] %vm271_vm0, %v2041_v1  ;;  %v3952_v45 = vld [vmem:[%s4145_s19 + $0x3e0] ss:$8 sps:$4 sm:$0xff]  }
 0x139   : > { %v3611_v63 = vpack.c.bf16 %v2426_v59, %v2426_v59  ;;  %v2427_v9 = vmax.f32 %v2299_v4, 0.0  ;;  %v1493_v10 = vpop.f32.mrf.mxu0  ;;  %v1749_v11 = vpop.f32.mrf.mxu1  ;;  %v476_v51 = vld [vmem:[#allocation2 + $0x260] sm:$0xff]  ;;  %v3957_v52 = vld [vmem:[%s4145_s19 + $0x1f4] ss:$8 sps:$4 sm:$0xff]  }
 0x13a   : > { %3003 = vst.msk [vmem:[%s4593_s7 + $0x14] sm:$0xf] %vm2997_vm1, %v3547_v62  ;;  %v3548_v14 = vpack.c.bf16 %v2363_v8, %v2363_v8  ;;  %v1978_v16 = vadd.f32 %v1493_v10, %v409_v2  ;;  %v2042_v17 = vadd.f32 %v1749_v11, %v473_v7  ;;  %v3960_v57 = vld [vmem:[%s4145_s19 + $0x3f4] ss:$8 sps:$4 sm:$0xff]   ;;  %v413_v2 = vld [vmem:[#allocation2 + $0x68] sm:$0xff] }
 0x13b   : > { %3067 = vst.msk [vmem:[%s4593_s7 + $0x114] sm:$0xf] %vm2997_vm1, %v3611_v63  ;;  %v3612_v15 = vpack.c.bf16 %v2427_v9, %v2427_v9  ;;  %v2236_v21 = vld [vmem:[#allocation2 + $0x38] sm:$0xff]  ;;  %v1495_v23 = vpop.f32.mrf.mxu0  ;;  %v1751_v24 = vpop.f32.mrf.mxu1  ;;  %v477_v7 = vld [vmem:[#allocation2 + $0x268] sm:$0xff] }
 0x13c   : > { %v2300_v22 = vld [vmem:[#allocation2 + $0x238] sm:$0xff]  ;;  %3004 = vst.msk [vmem:[%s4593_s7 + $0x18] sm:$0xf] %vm2997_vm1, %v3548_v14  ;;  %v2364_v26 = vmax.f32 %v2236_v21, 0.0  ;;  %v478_v23 = vld [vmem:[#allocation2 + $0x270] sm:$0xff] }
 0x13d   : > { %3068 = vst.msk [vmem:[%s4593_s7 + $0x118] sm:$0xf] %vm2997_vm1, %v3612_v15  ;;  %v2428_v27 = vmax.f32 %v2300_v22, 0.0  ;;  %v1498_v28 = vpop.f32.mrf.mxu0  ;;  %1689 = vmatmul.mubr.bf16.gmra.mxu0 %v3943_v12  ;;  %v1754_v29 = vpop.f32.mrf.mxu1  ;;  %1945 = vmatmul.mubr.bf16.gmra.mxu1 %v3946_v13  ;;  %v3955_v12 = vld [vmem:[%s4145_s19 + $0x1f0] ss:$8 sps:$4 sm:$0xff]  }
 0x13e   : > { %2107 = vst.msk [vmem:[#allocation2 + $0x48] sm:$0xff] %vm271_vm0, %v1978_v16  ;;  %2171 = vst.msk [vmem:[#allocation2 + $0x248] sm:$0xff] %vm271_vm0, %v2042_v17  ;;  %v3549_v30 = vpack.c.bf16 %v2364_v26, %v2364_v26  ;;  %v1979_v32 = vadd.f32 %v1498_v28, %v410_v18  ;;  %v2043_v33 = vadd.f32 %v1754_v29, %v474_v19  ;;  %1696 = vmatprep.mubr.bf16.mxu0 %v3951_v20  ;;  %v3958_v13 = vld [vmem:[%s4145_s19 + $0x3f0] ss:$8 sps:$4 sm:$0xff]   ;;  %s3670_s19 = sshll.u32 %s4029_s15, 13  ;;  %s5004_s15 = scalar_lea.sflag [#allocation4], %s231_s5 }
 0x13f   : > { %v3613_v31 = vpack.c.bf16 %v2428_v27, %v2428_v27  ;;  %v2237_v35 = vld [vmem:[#allocation2 + $0x40] sm:$0xff]  ;;  %v1500_v37 = vpop.f32.mrf.mxu0  ;;  %v1756_v38 = vpop.f32.mrf.mxu1  ;;  %1952 = vmatprep.mubr.bf16.mxu1 %v3954_v25  ;;  %v414_v18 = vld [vmem:[#allocation2 + $0x70] sm:$0xff]  ;;  %s4994_s11 = scalar_lea.hbm %s5052_s3, %s3670_s19 }
 0x140   : > { %v2301_v36 = vld [vmem:[#allocation2 + $0x240] sm:$0xff]  ;;  %3005 = vst.msk [vmem:[%s4593_s7 + $0x1c] sm:$0xf] %vm2997_vm1, %v3549_v30  ;;  %v2365_v40 = vmax.f32 %v2237_v35, 0.0  ;;  %v479_v37 = vld [vmem:[#allocation2 + $0x278] sm:$0xff] }
 0x141   : > { %3069 = vst.msk [vmem:[%s4593_s7 + $0x11c] sm:$0xf] %vm2997_vm1, %v3613_v31  ;;  %v2429_v41 = vmax.f32 %v2301_v36, 0.0  ;;  %v1501_v42 = vpop.f32.mrf.mxu0  ;;  %v1757_v43 = vpop.f32.mrf.mxu1 }
 0x142   : > { %2108 = vst.msk [vmem:[#allocation2 + $0x50] sm:$0xff] %vm271_vm0, %v1979_v32  ;;  %2172 = vst.msk [vmem:[#allocation2 + $0x250] sm:$0xff] %vm271_vm0, %v2043_v33  ;;  %v3550_v46 = vpack.c.bf16 %v2365_v40, %v2365_v40  ;;  %v1980_v48 = vadd.f32 %v1501_v42, %v411_v34  ;;  %v2044_v49 = vadd.f32 %v1757_v43, %v475_v39  ;;  %v415_v32 = vld [vmem:[#allocation2 + $0x78] sm:$0xff] }
 0x143   : > { %v3614_v47 = vpack.c.bf16 %v2429_v41, %v2429_v41  ;;  %v1503_v55 = vpop.f32.mrf.mxu0  ;;  %v1759_v56 = vpop.f32.mrf.mxu1 }
 0x144   : > { %3006 = vst.msk [vmem:[%s4593_s7 + $0x20] sm:$0xf] %vm2997_vm1, %v3550_v46  ;;  %v416_v46 = vld [vmem:[#allocation2 + $0x80] sm:$0xff] }
 0x145   : > { %v2238_v53 = vld [vmem:[#allocation2 + $0x48] sm:$0xff]  ;;  %3070 = vst.msk [vmem:[%s4593_s7 + $0x120] sm:$0xf] %vm2997_vm1, %v3614_v47  ;;  %v1506_v60 = vpop.f32.mrf.mxu0  ;;  %1697 = vmatmul.mubr.bf16.gmra.mxu0 %v3949_v44  ;;  %v1762_v61 = vpop.f32.mrf.mxu1  ;;  %1953 = vmatmul.mubr.bf16.gmra.mxu1 %v3952_v45 }
 0x146   : > { %v2302_v54 = vld [vmem:[#allocation2 + $0x248] sm:$0xff]  ;;  %v2366_v58 = vmax.f32 %v2238_v53, 0.0  ;;  %2109 = vst.msk [vmem:[#allocation2 + $0x58] sm:$0xff] %vm271_vm0, %v1980_v48  ;;  %2173 = vst.msk [vmem:[#allocation2 + $0x258] sm:$0xff] %vm271_vm0, %v2044_v49  ;;  %v1981_v0 = vadd.f32 %v1506_v60, %v412_v50  ;;  %v2045_v1 = vadd.f32 %v1762_v61, %v476_v51  ;;  %1704 = vmatprep.mubr.bf16.mxu0 %v3957_v52  ;;  %1960 = vmatprep.mubr.bf16.mxu1 %v3960_v57  ;;  %v480_v51 = vld [vmem:[#allocation2 + $0x280] sm:$0xff] }
 0x147   : > { %v2430_v59 = vmax.f32 %v2302_v54, 0.0  ;;  %v1508_v5 = vpop.f32.mrf.mxu0  ;;  %v1764_v6 = vpop.f32.mrf.mxu1  ;;  %v417_v60 = vld [vmem:[#allocation2 + $0x88] sm:$0xff] }
 0x148   : > { %v3551_v62 = vpack.c.bf16 %v2366_v58, %v2366_v58  ;;  %2110 = vst.msk [vmem:[#allocation2 + $0x60] sm:$0xff] %vm271_vm0, %v1981_v0  ;;  %2174 = vst.msk [vmem:[#allocation2 + $0x260] sm:$0xff] %vm271_vm0, %v2045_v1  ;;  %v481_v1 = vld [vmem:[#allocation2 + $0x288] sm:$0xff] }
 0x149   : > { %v3615_v63 = vpack.c.bf16 %v2430_v59, %v2430_v59  ;;  %v2239_v3 = vld [vmem:[#allocation2 + $0x50] sm:$0xff]  ;;  %v1509_v10 = vpop.f32.mrf.mxu0  ;;  %v1765_v11 = vpop.f32.mrf.mxu1 }
 0x14a   : > { %v2303_v4 = vld [vmem:[#allocation2 + $0x250] sm:$0xff]  ;;  %3007 = vst.msk [vmem:[%s4593_s7 + $0x24] sm:$0xf] %vm2997_vm1, %v3551_v62  ;;  %v2367_v8 = vmax.f32 %v2239_v3, 0.0  ;;  %v1982_v16 = vadd.f32 %v1509_v10, %v413_v2  ;;  %v2046_v17 = vadd.f32 %v1765_v11, %v477_v7 }
 0x14b   : > { %3071 = vst.msk [vmem:[%s4593_s7 + $0x124] sm:$0xf] %vm2997_vm1, %v3615_v63  ;;  %v2431_v9 = vmax.f32 %v2303_v4, 0.0  ;;  %v1511_v21 = vpop.f32.mrf.mxu0  ;;  %v1767_v22 = vpop.f32.mrf.mxu1  ;;  %v418_v10 = vld [vmem:[#allocation2 + $0x90] sm:$0xff] }
 0x14c   : > { %v3552_v14 = vpack.c.bf16 %v2367_v8, %v2367_v8  ;;  %2111 = vst.msk [vmem:[#allocation2 + $0x68] sm:$0xff] %vm271_vm0, %v1982_v16  ;;  %2175 = vst.msk [vmem:[#allocation2 + $0x268] sm:$0xff] %vm271_vm0, %v2046_v17 }
 0x14d   : > { %v3616_v15 = vpack.c.bf16 %v2431_v9, %v2431_v9  ;;  %v2240_v19 = vld [vmem:[#allocation2 + $0x58] sm:$0xff]  ;;  %v1514_v26 = vpop.f32.mrf.mxu0  ;;  %1705 = vmatmul.mubr.bf16.gmra.mxu0 %v3955_v12  ;;  %v1770_v27 = vpop.f32.mrf.mxu1  ;;  %1961 = vmatmul.mubr.bf16.gmra.mxu1 %v3958_v13 }
 0x14e   : > { %v2304_v20 = vld [vmem:[#allocation2 + $0x258] sm:$0xff]  ;;  %3008 = vst.msk [vmem:[%s4593_s7 + $0x28] sm:$0xf] %vm2997_vm1, %v3552_v14  ;;  %v2368_v24 = vmax.f32 %v2240_v19, 0.0  ;;  %v1983_v30 = vadd.f32 %v1514_v26, %v414_v18  ;;  %v2047_v31 = vadd.f32 %v1770_v27, %v478_v23 }
 0x14f   : > { %3072 = vst.msk [vmem:[%s4593_s7 + $0x128] sm:$0xf] %vm2997_vm1, %v3616_v15  ;;  %v2432_v25 = vmax.f32 %v2304_v20, 0.0  ;;  %v2241_v33 = vld [vmem:[#allocation2 + $0x60] sm:$0xff]  ;;  %v1516_v35 = vpop.f32.mrf.mxu0  ;;  %v1772_v36 = vpop.f32.mrf.mxu1  ;;  %v482_v15 = vld [vmem:[#allocation2 + $0x290] sm:$0xff] }
 0x150   : > { %v3553_v28 = vpack.c.bf16 %v2368_v24, %v2368_v24  ;;  %v2305_v34 = vld [vmem:[#allocation2 + $0x260] sm:$0xff]  ;;  %v2369_v38 = vmax.f32 %v2241_v33, 0.0  ;;  %2112 = vst.msk [vmem:[#allocation2 + $0x70] sm:$0xff] %vm271_vm0, %v1983_v30  ;;  %2176 = vst.msk [vmem:[#allocation2 + $0x270] sm:$0xff] %vm271_vm0, %v2047_v31  ;;  %v419_v24 = vld [vmem:[#allocation2 + $0x98] sm:$0xff] }
 0x151   : > { %v3617_v29 = vpack.c.bf16 %v2432_v25, %v2432_v25  ;;  %v2433_v39 = vmax.f32 %v2305_v34, 0.0  ;;  %v1517_v40 = vpop.f32.mrf.mxu0  ;;  %v1773_v41 = vpop.f32.mrf.mxu1 }
 0x152   : > { %3009 = vst.msk [vmem:[%s4593_s7 + $0x2c] sm:$0xf] %vm2997_vm1, %v3553_v28  ;;  %v3554_v42 = vpack.c.bf16 %v2369_v38, %v2369_v38  ;;  %v1984_v44 = vadd.f32 %v1517_v40, %v415_v32  ;;  %v2048_v45 = vadd.f32 %v1773_v41, %v479_v37  ;;  %v420_v38 = vld [vmem:[#allocation2 + $0xa0] sm:$0xff] }
 0x153   : > { %3073 = vst.msk [vmem:[%s4593_s7 + $0x12c] sm:$0xf] %vm2997_vm1, %v3617_v29  ;;  %v3618_v43 = vpack.c.bf16 %v2433_v39, %v2433_v39  ;;  %v2242_v47 = vld [vmem:[#allocation2 + $0x68] sm:$0xff]  ;;  %v1519_v49 = vpop.f32.mrf.mxu0  ;;  %v1775_v50 = vpop.f32.mrf.mxu1  ;;  %v483_v29 = vld [vmem:[#allocation2 + $0x298] sm:$0xff] }
 0x154   : > { %v2306_v48 = vld [vmem:[#allocation2 + $0x268] sm:$0xff]  ;;  %3010 = vst.msk [vmem:[%s4593_s7 + $0x30] sm:$0xf] %vm2997_vm1, %v3554_v42  ;;  %v2370_v52 = vmax.f32 %v2242_v47, 0.0 }
 0x155   : > { %3074 = vst.msk [vmem:[%s4593_s7 + $0x130] sm:$0xf] %vm2997_vm1, %v3618_v43  ;;  %v2434_v53 = vmax.f32 %v2306_v48, 0.0  ;;  %v1522_v54 = vpop.f32.mrf.mxu0  ;;  %v1778_v55 = vpop.f32.mrf.mxu1  ;;  %v484_v43 = vld [vmem:[#allocation2 + $0x2a0] sm:$0xff] }
 0x156   : > { %2113 = vst.msk [vmem:[#allocation2 + $0x78] sm:$0xff] %vm271_vm0, %v1984_v44  ;;  %2177 = vst.msk [vmem:[#allocation2 + $0x278] sm:$0xff] %vm271_vm0, %v2048_v45  ;;  %v3555_v56 = vpack.c.bf16 %v2370_v52, %v2370_v52  ;;  %v1985_v58 = vadd.f32 %v1522_v54, %v416_v46  ;;  %v2049_v59 = vadd.f32 %v1778_v55, %v480_v51  ;;  %v421_v52 = vld [vmem:[#allocation2 + $0xa8] sm:$0xff] }
 0x157   : > { %v3619_v57 = vpack.c.bf16 %v2434_v53, %v2434_v53  ;;  %v2243_v61 = vld [vmem:[#allocation2 + $0x70] sm:$0xff]  ;;  %v1524_v63 = vpop.f32.mrf.mxu0  ;;  %v1780_v0 = vpop.f32.mrf.mxu1 }
 0x158   : > { %v2307_v62 = vld [vmem:[#allocation2 + $0x270] sm:$0xff]  ;;  %3011 = vst.msk [vmem:[%s4593_s7 + $0x34] sm:$0xf] %vm2997_vm1, %v3555_v56  ;;  %v2371_v2 = vmax.f32 %v2243_v61, 0.0 }
 0x159   : > { %3075 = vst.msk [vmem:[%s4593_s7 + $0x134] sm:$0xf] %vm2997_vm1, %v3619_v57  ;;  %v2435_v3 = vmax.f32 %v2307_v62, 0.0  ;;  %v1525_v4 = vpop.f32.mrf.mxu0  ;;  %v1781_v5 = vpop.f32.mrf.mxu1  ;;  %v485_v57 = vld [vmem:[#allocation2 + $0x2a8] sm:$0xff] }
 0x15a   : > { %2114 = vst.msk [vmem:[#allocation2 + $0x80] sm:$0xff] %vm271_vm0, %v1985_v58  ;;  %2178 = vst.msk [vmem:[#allocation2 + $0x280] sm:$0xff] %vm271_vm0, %v2049_v59  ;;  %v3556_v6 = vpack.c.bf16 %v2371_v2, %v2371_v2  ;;  %v1986_v8 = vadd.f32 %v1525_v4, %v417_v60  ;;  %v2050_v9 = vadd.f32 %v1781_v5, %v481_v1  ;;  %v422_v2 = vld [vmem:[#allocation2 + $0xb0] sm:$0xff] }
 0x15b   : > { %v3620_v7 = vpack.c.bf16 %v2435_v3, %v2435_v3  ;;  %v1527_v13 = vpop.f32.mrf.mxu0  ;;  %v1783_v14 = vpop.f32.mrf.mxu1 }
 0x15c   : > { %3012 = vst.msk [vmem:[%s4593_s7 + $0x38] sm:$0xf] %vm2997_vm1, %v3556_v6 }
 0x15d   : > { %v2244_v11 = vld [vmem:[#allocation2 + $0x78] sm:$0xff]  ;;  %3076 = vst.msk [vmem:[%s4593_s7 + $0x138] sm:$0xf] %vm2997_vm1, %v3620_v7  ;;  %v1530_v18 = vpop.f32.mrf.mxu0  ;;  %v1786_v19 = vpop.f32.mrf.mxu1  ;;  %v486_v7 = vld [vmem:[#allocation2 + $0x2b0] sm:$0xff] }
 0x15e   : > { %v2308_v12 = vld [vmem:[#allocation2 + $0x278] sm:$0xff]  ;;  %v2372_v16 = vmax.f32 %v2244_v11, 0.0  ;;  %2115 = vst.msk [vmem:[#allocation2 + $0x88] sm:$0xff] %vm271_vm0, %v1986_v8  ;;  %2179 = vst.msk [vmem:[#allocation2 + $0x288] sm:$0xff] %vm271_vm0, %v2050_v9  ;;  %v1987_v22 = vadd.f32 %v1530_v18, %v418_v10  ;;  %v2051_v23 = vadd.f32 %v1786_v19, %v482_v15 }
 0x15f   : > { %v2436_v17 = vmax.f32 %v2308_v12, 0.0  ;;  %v1532_v27 = vpop.f32.mrf.mxu0  ;;  %v1788_v28 = vpop.f32.mrf.mxu1 }
 0x160   : > { %v3557_v20 = vpack.c.bf16 %v2372_v16, %v2372_v16  ;;  %2116 = vst.msk [vmem:[#allocation2 + $0x90] sm:$0xff] %vm271_vm0, %v1987_v22  ;;  %2180 = vst.msk [vmem:[#allocation2 + $0x290] sm:$0xff] %vm271_vm0, %v2051_v23  ;;  %v423_v16 = vld [vmem:[#allocation2 + $0xb8] sm:$0xff] }
 0x161   : > { %v3621_v21 = vpack.c.bf16 %v2436_v17, %v2436_v17  ;;  %v2245_v25 = vld [vmem:[#allocation2 + $0x80] sm:$0xff]  ;;  %v1533_v32 = vpop.f32.mrf.mxu0  ;;  %v1789_v33 = vpop.f32.mrf.mxu1 }
 0x162   : > { %v2309_v26 = vld [vmem:[#allocation2 + $0x280] sm:$0xff]  ;;  %3013 = vst.msk [vmem:[%s4593_s7 + $0x3c] sm:$0xf] %vm2997_vm1, %v3557_v20  ;;  %v2373_v30 = vmax.f32 %v2245_v25, 0.0  ;;  %v1988_v36 = vadd.f32 %v1533_v32, %v419_v24  ;;  %v2052_v37 = vadd.f32 %v1789_v33, %v483_v29 }
 0x163   : > { %3077 = vst.msk [vmem:[%s4593_s7 + $0x13c] sm:$0xf] %vm2997_vm1, %v3621_v21  ;;  %v2437_v31 = vmax.f32 %v2309_v26, 0.0  ;;  %v1535_v41 = vpop.f32.mrf.mxu0  ;;  %v1791_v42 = vpop.f32.mrf.mxu1  ;;  %v487_v21 = vld [vmem:[#allocation2 + $0x2b8] sm:$0xff] }
 0x164   : > { %v3558_v34 = vpack.c.bf16 %v2373_v30, %v2373_v30  ;;  %2117 = vst.msk [vmem:[#allocation2 + $0x98] sm:$0xff] %vm271_vm0, %v1988_v36  ;;  %2181 = vst.msk [vmem:[#allocation2 + $0x298] sm:$0xff] %vm271_vm0, %v2052_v37  ;;  %v424_v30 = vld [vmem:[#allocation2 + $0xc0] sm:$0xff] }
 0x165   : > { %v3622_v35 = vpack.c.bf16 %v2437_v31, %v2437_v31  ;;  %v2246_v39 = vld [vmem:[#allocation2 + $0x88] sm:$0xff]  ;;  %v1538_v46 = vpop.f32.mrf.mxu0  ;;  %v1794_v47 = vpop.f32.mrf.mxu1 }
 0x166   : > { %v2310_v40 = vld [vmem:[#allocation2 + $0x288] sm:$0xff]  ;;  %3014 = vst.msk [vmem:[%s4593_s7 + $0x40] sm:$0xf] %vm2997_vm1, %v3558_v34  ;;  %v2374_v44 = vmax.f32 %v2246_v39, 0.0  ;;  %v1989_v50 = vadd.f32 %v1538_v46, %v420_v38  ;;  %v2053_v51 = vadd.f32 %v1794_v47, %v484_v43 }
 0x167   : > { %3078 = vst.msk [vmem:[%s4593_s7 + $0x140] sm:$0xf] %vm2997_vm1, %v3622_v35  ;;  %v2438_v45 = vmax.f32 %v2310_v40, 0.0  ;;  %v2247_v53 = vld [vmem:[#allocation2 + $0x90] sm:$0xff]  ;;  %v1540_v55 = vpop.f32.mrf.mxu0  ;;  %v1796_v56 = vpop.f32.mrf.mxu1  ;;  %v488_v35 = vld [vmem:[#allocation2 + $0x2c0] sm:$0xff] }
 0x168   : > { %v3559_v48 = vpack.c.bf16 %v2374_v44, %v2374_v44  ;;  %v2311_v54 = vld [vmem:[#allocation2 + $0x290] sm:$0xff]  ;;  %v2375_v58 = vmax.f32 %v2247_v53, 0.0  ;;  %2118 = vst.msk [vmem:[#allocation2 + $0xa0] sm:$0xff] %vm271_vm0, %v1989_v50  ;;  %2182 = vst.msk [vmem:[#allocation2 + $0x2a0] sm:$0xff] %vm271_vm0, %v2053_v51  ;;  %v425_v44 = vld [vmem:[#allocation2 + $0xc8] sm:$0xff] }
 0x169   : > { %v3623_v49 = vpack.c.bf16 %v2438_v45, %v2438_v45  ;;  %v2439_v59 = vmax.f32 %v2311_v54, 0.0  ;;  %v1541_v60 = vpop.f32.mrf.mxu0  ;;  %v1797_v61 = vpop.f32.mrf.mxu1 }
 0x16a   : > { %3015 = vst.msk [vmem:[%s4593_s7 + $0x44] sm:$0xf] %vm2997_vm1, %v3559_v48  ;;  %v3560_v62 = vpack.c.bf16 %v2375_v58, %v2375_v58  ;;  %v1990_v0 = vadd.f32 %v1541_v60, %v421_v52  ;;  %v2054_v1 = vadd.f32 %v1797_v61, %v485_v57  ;;  %v426_v58 = vld [vmem:[#allocation2 + $0xd0] sm:$0xff] }
 0x16b   : > { %3079 = vst.msk [vmem:[%s4593_s7 + $0x144] sm:$0xf] %vm2997_vm1, %v3623_v49  ;;  %v3624_v63 = vpack.c.bf16 %v2439_v59, %v2439_v59  ;;  %v2248_v3 = vld [vmem:[#allocation2 + $0x98] sm:$0xff]  ;;  %v1543_v5 = vpop.f32.mrf.mxu0  ;;  %v1799_v6 = vpop.f32.mrf.mxu1  ;;  %v489_v49 = vld [vmem:[#allocation2 + $0x2c8] sm:$0xff] }
 0x16c   : > { %v2312_v4 = vld [vmem:[#allocation2 + $0x298] sm:$0xff]  ;;  %3016 = vst.msk [vmem:[%s4593_s7 + $0x48] sm:$0xf] %vm2997_vm1, %v3560_v62  ;;  %v2376_v8 = vmax.f32 %v2248_v3, 0.0 }
 0x16d   : > { %3080 = vst.msk [vmem:[%s4593_s7 + $0x148] sm:$0xf] %vm2997_vm1, %v3624_v63  ;;  %v2440_v9 = vmax.f32 %v2312_v4, 0.0  ;;  %v1546_v10 = vpop.f32.mrf.mxu0  ;;  %v1802_v11 = vpop.f32.mrf.mxu1  ;;  %v490_v63 = vld [vmem:[#allocation2 + $0x2d0] sm:$0xff] }
 0x16e   : > { %2119 = vst.msk [vmem:[#allocation2 + $0xa8] sm:$0xff] %vm271_vm0, %v1990_v0  ;;  %2183 = vst.msk [vmem:[#allocation2 + $0x2a8] sm:$0xff] %vm271_vm0, %v2054_v1  ;;  %v3561_v12 = vpack.c.bf16 %v2376_v8, %v2376_v8  ;;  %v1991_v14 = vadd.f32 %v1546_v10, %v422_v2  ;;  %v2055_v15 = vadd.f32 %v1802_v11, %v486_v7  ;;  %v427_v8 = vld [vmem:[#allocation2 + $0xd8] sm:$0xff] }
 0x16f   : > { %v3625_v13 = vpack.c.bf16 %v2440_v9, %v2440_v9  ;;  %v2249_v17 = vld [vmem:[#allocation2 + $0xa0] sm:$0xff]  ;;  %v1548_v19 = vpop.f32.mrf.mxu0  ;;  %v1804_v20 = vpop.f32.mrf.mxu1 }
 0x170   : > { %v2313_v18 = vld [vmem:[#allocation2 + $0x2a0] sm:$0xff]  ;;  %3017 = vst.msk [vmem:[%s4593_s7 + $0x4c] sm:$0xf] %vm2997_vm1, %v3561_v12  ;;  %v2377_v22 = vmax.f32 %v2249_v17, 0.0 }
 0x171   : > { %3081 = vst.msk [vmem:[%s4593_s7 + $0x14c] sm:$0xf] %vm2997_vm1, %v3625_v13  ;;  %v2441_v23 = vmax.f32 %v2313_v18, 0.0  ;;  %v1549_v24 = vpop.f32.mrf.mxu0  ;;  %v1805_v25 = vpop.f32.mrf.mxu1  ;;  %v491_v13 = vld [vmem:[#allocation2 + $0x2d8] sm:$0xff] }
 0x172   : > { %2120 = vst.msk [vmem:[#allocation2 + $0xb0] sm:$0xff] %vm271_vm0, %v1991_v14  ;;  %2184 = vst.msk [vmem:[#allocation2 + $0x2b0] sm:$0xff] %vm271_vm0, %v2055_v15  ;;  %v3562_v26 = vpack.c.bf16 %v2377_v22, %v2377_v22  ;;  %v1992_v28 = vadd.f32 %v1549_v24, %v423_v16  ;;  %v2056_v29 = vadd.f32 %v1805_v25, %v487_v21  ;;  %v428_v22 = vld [vmem:[#allocation2 + $0xe0] sm:$0xff] }
 0x173   : > { %v3626_v27 = vpack.c.bf16 %v2441_v23, %v2441_v23  ;;  %v1551_v33 = vpop.f32.mrf.mxu0  ;;  %v1807_v34 = vpop.f32.mrf.mxu1 }
 0x174   : > { %3018 = vst.msk [vmem:[%s4593_s7 + $0x50] sm:$0xf] %vm2997_vm1, %v3562_v26 }
 0x175   : > { %v2250_v31 = vld [vmem:[#allocation2 + $0xa8] sm:$0xff]  ;;  %3082 = vst.msk [vmem:[%s4593_s7 + $0x150] sm:$0xf] %vm2997_vm1, %v3626_v27  ;;  %v1554_v38 = vpop.f32.mrf.mxu0  ;;  %v1810_v39 = vpop.f32.mrf.mxu1  ;;  %v492_v27 = vld [vmem:[#allocation2 + $0x2e0] sm:$0xff] }
 0x176   : > { %v2314_v32 = vld [vmem:[#allocation2 + $0x2a8] sm:$0xff]  ;;  %v2378_v36 = vmax.f32 %v2250_v31, 0.0  ;;  %2121 = vst.msk [vmem:[#allocation2 + $0xb8] sm:$0xff] %vm271_vm0, %v1992_v28  ;;  %2185 = vst.msk [vmem:[#allocation2 + $0x2b8] sm:$0xff] %vm271_vm0, %v2056_v29  ;;  %v1993_v42 = vadd.f32 %v1554_v38, %v424_v30  ;;  %v2057_v43 = vadd.f32 %v1810_v39, %v488_v35 }
 0x177   : > { %v2442_v37 = vmax.f32 %v2314_v32, 0.0  ;;  %v1556_v47 = vpop.f32.mrf.mxu0  ;;  %v1812_v48 = vpop.f32.mrf.mxu1 }
 0x178   : > { %v3563_v40 = vpack.c.bf16 %v2378_v36, %v2378_v36  ;;  %2122 = vst.msk [vmem:[#allocation2 + $0xc0] sm:$0xff] %vm271_vm0, %v1993_v42  ;;  %2186 = vst.msk [vmem:[#allocation2 + $0x2c0] sm:$0xff] %vm271_vm0, %v2057_v43  ;;  %v429_v36 = vld [vmem:[#allocation2 + $0xe8] sm:$0xff] }
 0x179   : > { %v3627_v41 = vpack.c.bf16 %v2442_v37, %v2442_v37  ;;  %v2251_v45 = vld [vmem:[#allocation2 + $0xb0] sm:$0xff]  ;;  %v1557_v52 = vpop.f32.mrf.mxu0  ;;  %v1813_v53 = vpop.f32.mrf.mxu1 }
 0x17a   : > { %v2315_v46 = vld [vmem:[#allocation2 + $0x2b0] sm:$0xff]  ;;  %3019 = vst.msk [vmem:[%s4593_s7 + $0x54] sm:$0xf] %vm2997_vm1, %v3563_v40  ;;  %v2379_v50 = vmax.f32 %v2251_v45, 0.0  ;;  %v1994_v56 = vadd.f32 %v1557_v52, %v425_v44  ;;  %v2058_v57 = vadd.f32 %v1813_v53, %v489_v49 }
 0x17b   : > { %3083 = vst.msk [vmem:[%s4593_s7 + $0x154] sm:$0xf] %vm2997_vm1, %v3627_v41  ;;  %v2443_v51 = vmax.f32 %v2315_v46, 0.0  ;;  %v1559_v61 = vpop.f32.mrf.mxu0  ;;  %v1815_v62 = vpop.f32.mrf.mxu1  ;;  %v493_v41 = vld [vmem:[#allocation2 + $0x2e8] sm:$0xff] }
 0x17c   : > { %v3564_v54 = vpack.c.bf16 %v2379_v50, %v2379_v50  ;;  %2123 = vst.msk [vmem:[#allocation2 + $0xc8] sm:$0xff] %vm271_vm0, %v1994_v56  ;;  %2187 = vst.msk [vmem:[#allocation2 + $0x2c8] sm:$0xff] %vm271_vm0, %v2058_v57  ;;  %v430_v50 = vld [vmem:[#allocation2 + $0xf0] sm:$0xff] }
 0x17d   : > { %v3628_v55 = vpack.c.bf16 %v2443_v51, %v2443_v51  ;;  %v2252_v59 = vld [vmem:[#allocation2 + $0xb8] sm:$0xff]  ;;  %v1562_v2 = vpop.f32.mrf.mxu0  ;;  %v1818_v3 = vpop.f32.mrf.mxu1 }
 0x17e   : > { %v2316_v60 = vld [vmem:[#allocation2 + $0x2b8] sm:$0xff]  ;;  %3020 = vst.msk [vmem:[%s4593_s7 + $0x58] sm:$0xf] %vm2997_vm1, %v3564_v54  ;;  %v2380_v0 = vmax.f32 %v2252_v59, 0.0  ;;  %v1995_v6 = vadd.f32 %v1562_v2, %v426_v58  ;;  %v2059_v7 = vadd.f32 %v1818_v3, %v490_v63 }
 0x17f   : > { %3084 = vst.msk [vmem:[%s4593_s7 + $0x158] sm:$0xf] %vm2997_vm1, %v3628_v55  ;;  %v2444_v1 = vmax.f32 %v2316_v60, 0.0  ;;  %v2253_v9 = vld [vmem:[#allocation2 + $0xc0] sm:$0xff]  ;;  %v1564_v11 = vpop.f32.mrf.mxu0  ;;  %v1820_v12 = vpop.f32.mrf.mxu1  ;;  %v494_v55 = vld [vmem:[#allocation2 + $0x2f0] sm:$0xff] }
 0x180   : > { %v3565_v4 = vpack.c.bf16 %v2380_v0, %v2380_v0  ;;  %v2317_v10 = vld [vmem:[#allocation2 + $0x2c0] sm:$0xff]  ;;  %v2381_v14 = vmax.f32 %v2253_v9, 0.0  ;;  %2124 = vst.msk [vmem:[#allocation2 + $0xd0] sm:$0xff] %vm271_vm0, %v1995_v6  ;;  %2188 = vst.msk [vmem:[#allocation2 + $0x2d0] sm:$0xff] %vm271_vm0, %v2059_v7  ;;  %v431_v0 = vld [vmem:[#allocation2 + $0xf8] sm:$0xff] }
 0x181   : > { %v3629_v5 = vpack.c.bf16 %v2444_v1, %v2444_v1  ;;  %v2445_v15 = vmax.f32 %v2317_v10, 0.0  ;;  %v1565_v16 = vpop.f32.mrf.mxu0  ;;  %v1821_v17 = vpop.f32.mrf.mxu1 }
 0x182   : > { %3021 = vst.msk [vmem:[%s4593_s7 + $0x5c] sm:$0xf] %vm2997_vm1, %v3565_v4  ;;  %v3566_v18 = vpack.c.bf16 %v2381_v14, %v2381_v14  ;;  %v1996_v20 = vadd.f32 %v1565_v16, %v427_v8  ;;  %v2060_v21 = vadd.f32 %v1821_v17, %v491_v13  ;;  %v432_v14 = vld [vmem:[#allocation2 + $0x100] sm:$0xff] }
 0x183   : > { %3085 = vst.msk [vmem:[%s4593_s7 + $0x15c] sm:$0xf] %vm2997_vm1, %v3629_v5  ;;  %v3630_v19 = vpack.c.bf16 %v2445_v15, %v2445_v15  ;;  %v2254_v23 = vld [vmem:[#allocation2 + $0xc8] sm:$0xff]  ;;  %v1567_v25 = vpop.f32.mrf.mxu0  ;;  %v1823_v26 = vpop.f32.mrf.mxu1  ;;  %v495_v5 = vld [vmem:[#allocation2 + $0x2f8] sm:$0xff] }
 0x184   : > { %v2318_v24 = vld [vmem:[#allocation2 + $0x2c8] sm:$0xff]  ;;  %3022 = vst.msk [vmem:[%s4593_s7 + $0x60] sm:$0xf] %vm2997_vm1, %v3566_v18  ;;  %v2382_v28 = vmax.f32 %v2254_v23, 0.0 }
 0x185   : > { %3086 = vst.msk [vmem:[%s4593_s7 + $0x160] sm:$0xf] %vm2997_vm1, %v3630_v19  ;;  %v2446_v29 = vmax.f32 %v2318_v24, 0.0  ;;  %v1570_v30 = vpop.f32.mrf.mxu0  ;;  %v1826_v31 = vpop.f32.mrf.mxu1  ;;  %v496_v19 = vld [vmem:[#allocation2 + $0x300] sm:$0xff] }
 0x186   : > { %2125 = vst.msk [vmem:[#allocation2 + $0xd8] sm:$0xff] %vm271_vm0, %v1996_v20  ;;  %2189 = vst.msk [vmem:[#allocation2 + $0x2d8] sm:$0xff] %vm271_vm0, %v2060_v21  ;;  %v3567_v32 = vpack.c.bf16 %v2382_v28, %v2382_v28  ;;  %v1997_v34 = vadd.f32 %v1570_v30, %v428_v22  ;;  %v2061_v35 = vadd.f32 %v1826_v31, %v492_v27  ;;  %v433_v28 = vld [vmem:[#allocation2 + $0x108] sm:$0xff] }
 0x187   : > { %v3631_v33 = vpack.c.bf16 %v2446_v29, %v2446_v29  ;;  %v2255_v37 = vld [vmem:[#allocation2 + $0xd0] sm:$0xff]  ;;  %v1572_v39 = vpop.f32.mrf.mxu0  ;;  %v1828_v40 = vpop.f32.mrf.mxu1 }
 0x188   : > { %v2319_v38 = vld [vmem:[#allocation2 + $0x2d0] sm:$0xff]  ;;  %3023 = vst.msk [vmem:[%s4593_s7 + $0x64] sm:$0xf] %vm2997_vm1, %v3567_v32  ;;  %v2383_v42 = vmax.f32 %v2255_v37, 0.0 }
 0x189   : > { %3087 = vst.msk [vmem:[%s4593_s7 + $0x164] sm:$0xf] %vm2997_vm1, %v3631_v33  ;;  %v2447_v43 = vmax.f32 %v2319_v38, 0.0  ;;  %v1573_v44 = vpop.f32.mrf.mxu0  ;;  %v1829_v45 = vpop.f32.mrf.mxu1  ;;  %v497_v33 = vld [vmem:[#allocation2 + $0x308] sm:$0xff] }
 0x18a   : > { %2126 = vst.msk [vmem:[#allocation2 + $0xe0] sm:$0xff] %vm271_vm0, %v1997_v34  ;;  %2190 = vst.msk [vmem:[#allocation2 + $0x2e0] sm:$0xff] %vm271_vm0, %v2061_v35  ;;  %v3568_v46 = vpack.c.bf16 %v2383_v42, %v2383_v42  ;;  %v1998_v48 = vadd.f32 %v1573_v44, %v429_v36  ;;  %v2062_v49 = vadd.f32 %v1829_v45, %v493_v41  ;;  %v434_v42 = vld [vmem:[#allocation2 + $0x110] sm:$0xff] }
 0x18b   : > { %v3632_v47 = vpack.c.bf16 %v2447_v43, %v2447_v43  ;;  %v1575_v53 = vpop.f32.mrf.mxu0  ;;  %v1831_v54 = vpop.f32.mrf.mxu1 }
 0x18c   : > { %3024 = vst.msk [vmem:[%s4593_s7 + $0x68] sm:$0xf] %vm2997_vm1, %v3568_v46 }
 0x18d   : > { %v2256_v51 = vld [vmem:[#allocation2 + $0xd8] sm:$0xff]  ;;  %3088 = vst.msk [vmem:[%s4593_s7 + $0x168] sm:$0xf] %vm2997_vm1, %v3632_v47  ;;  %v1578_v58 = vpop.f32.mrf.mxu0  ;;  %v1834_v59 = vpop.f32.mrf.mxu1  ;;  %v498_v47 = vld [vmem:[#allocation2 + $0x310] sm:$0xff] }
 0x18e   : > { %v2320_v52 = vld [vmem:[#allocation2 + $0x2d8] sm:$0xff]  ;;  %v2384_v56 = vmax.f32 %v2256_v51, 0.0  ;;  %2127 = vst.msk [vmem:[#allocation2 + $0xe8] sm:$0xff] %vm271_vm0, %v1998_v48  ;;  %2191 = vst.msk [vmem:[#allocation2 + $0x2e8] sm:$0xff] %vm271_vm0, %v2062_v49  ;;  %v1999_v62 = vadd.f32 %v1578_v58, %v430_v50  ;;  %v2063_v63 = vadd.f32 %v1834_v59, %v494_v55 }
 0x18f   : > { %v2448_v57 = vmax.f32 %v2320_v52, 0.0  ;;  %v1580_v3 = vpop.f32.mrf.mxu0  ;;  %v1836_v4 = vpop.f32.mrf.mxu1 }
 0x190   : > { %v3569_v60 = vpack.c.bf16 %v2384_v56, %v2384_v56  ;;  %2128 = vst.msk [vmem:[#allocation2 + $0xf0] sm:$0xff] %vm271_vm0, %v1999_v62  ;;  %2192 = vst.msk [vmem:[#allocation2 + $0x2f0] sm:$0xff] %vm271_vm0, %v2063_v63  ;;  %v435_v56 = vld [vmem:[#allocation2 + $0x118] sm:$0xff] }
 0x191   : > { %v3633_v61 = vpack.c.bf16 %v2448_v57, %v2448_v57  ;;  %v2257_v1 = vld [vmem:[#allocation2 + $0xe0] sm:$0xff]  ;;  %v1581_v8 = vpop.f32.mrf.mxu0  ;;  %v1837_v9 = vpop.f32.mrf.mxu1 }
 0x192   : > { %v2321_v2 = vld [vmem:[#allocation2 + $0x2e0] sm:$0xff]  ;;  %3025 = vst.msk [vmem:[%s4593_s7 + $0x6c] sm:$0xf] %vm2997_vm1, %v3569_v60  ;;  %v2385_v6 = vmax.f32 %v2257_v1, 0.0  ;;  %v2000_v12 = vadd.f32 %v1581_v8, %v431_v0  ;;  %v2064_v13 = vadd.f32 %v1837_v9, %v495_v5 }
 0x193   : > { %3089 = vst.msk [vmem:[%s4593_s7 + $0x16c] sm:$0xf] %vm2997_vm1, %v3633_v61  ;;  %v2449_v7 = vmax.f32 %v2321_v2, 0.0  ;;  %v1583_v17 = vpop.f32.mrf.mxu0  ;;  %v1839_v18 = vpop.f32.mrf.mxu1  ;;  %v499_v61 = vld [vmem:[#allocation2 + $0x318] sm:$0xff] }
 0x194   : > { %v3570_v10 = vpack.c.bf16 %v2385_v6, %v2385_v6  ;;  %2129 = vst.msk [vmem:[#allocation2 + $0xf8] sm:$0xff] %vm271_vm0, %v2000_v12  ;;  %2193 = vst.msk [vmem:[#allocation2 + $0x2f8] sm:$0xff] %vm271_vm0, %v2064_v13  ;;  %v436_v6 = vld [vmem:[#allocation2 + $0x120] sm:$0xff] }
 0x195   : > { %v3634_v11 = vpack.c.bf16 %v2449_v7, %v2449_v7  ;;  %v2258_v15 = vld [vmem:[#allocation2 + $0xe8] sm:$0xff]  ;;  %v1586_v22 = vpop.f32.mrf.mxu0  ;;  %v1842_v23 = vpop.f32.mrf.mxu1 }
 0x196   : > { %v2322_v16 = vld [vmem:[#allocation2 + $0x2e8] sm:$0xff]  ;;  %3026 = vst.msk [vmem:[%s4593_s7 + $0x70] sm:$0xf] %vm2997_vm1, %v3570_v10  ;;  %v2386_v20 = vmax.f32 %v2258_v15, 0.0  ;;  %v2001_v26 = vadd.f32 %v1586_v22, %v432_v14  ;;  %v2065_v27 = vadd.f32 %v1842_v23, %v496_v19 }
 0x197   : > { %3090 = vst.msk [vmem:[%s4593_s7 + $0x170] sm:$0xf] %vm2997_vm1, %v3634_v11  ;;  %v2450_v21 = vmax.f32 %v2322_v16, 0.0  ;;  %v2259_v29 = vld [vmem:[#allocation2 + $0xf0] sm:$0xff]  ;;  %v1588_v31 = vpop.f32.mrf.mxu0  ;;  %v1844_v32 = vpop.f32.mrf.mxu1  ;;  %v500_v11 = vld [vmem:[#allocation2 + $0x320] sm:$0xff] }
 0x198   : > { %v3571_v24 = vpack.c.bf16 %v2386_v20, %v2386_v20  ;;  %v2323_v30 = vld [vmem:[#allocation2 + $0x2f0] sm:$0xff]  ;;  %v2387_v34 = vmax.f32 %v2259_v29, 0.0  ;;  %2130 = vst.msk [vmem:[#allocation2 + $0x100] sm:$0xff] %vm271_vm0, %v2001_v26  ;;  %2194 = vst.msk [vmem:[#allocation2 + $0x300] sm:$0xff] %vm271_vm0, %v2065_v27  ;;  %v437_v20 = vld [vmem:[#allocation2 + $0x128] sm:$0xff] }
 0x199   : > { %v3635_v25 = vpack.c.bf16 %v2450_v21, %v2450_v21  ;;  %v2451_v35 = vmax.f32 %v2323_v30, 0.0  ;;  %v1589_v36 = vpop.f32.mrf.mxu0  ;;  %v1845_v37 = vpop.f32.mrf.mxu1 }
 0x19a   : > { %3027 = vst.msk [vmem:[%s4593_s7 + $0x74] sm:$0xf] %vm2997_vm1, %v3571_v24  ;;  %v3572_v38 = vpack.c.bf16 %v2387_v34, %v2387_v34  ;;  %v2002_v40 = vadd.f32 %v1589_v36, %v433_v28  ;;  %v2066_v41 = vadd.f32 %v1845_v37, %v497_v33  ;;  %v438_v34 = vld [vmem:[#allocation2 + $0x130] sm:$0xff] }
 0x19b   : > { %3091 = vst.msk [vmem:[%s4593_s7 + $0x174] sm:$0xf] %vm2997_vm1, %v3635_v25  ;;  %v3636_v39 = vpack.c.bf16 %v2451_v35, %v2451_v35  ;;  %v2260_v43 = vld [vmem:[#allocation2 + $0xf8] sm:$0xff]  ;;  %v1591_v45 = vpop.f32.mrf.mxu0  ;;  %v1847_v46 = vpop.f32.mrf.mxu1  ;;  %v501_v25 = vld [vmem:[#allocation2 + $0x328] sm:$0xff] }
 0x19c   : > { %v2324_v44 = vld [vmem:[#allocation2 + $0x2f8] sm:$0xff]  ;;  %3028 = vst.msk [vmem:[%s4593_s7 + $0x78] sm:$0xf] %vm2997_vm1, %v3572_v38  ;;  %v2388_v48 = vmax.f32 %v2260_v43, 0.0 }
 0x19d   : > { %3092 = vst.msk [vmem:[%s4593_s7 + $0x178] sm:$0xf] %vm2997_vm1, %v3636_v39  ;;  %v2452_v49 = vmax.f32 %v2324_v44, 0.0  ;;  %v1594_v50 = vpop.f32.mrf.mxu0  ;;  %v1850_v51 = vpop.f32.mrf.mxu1  ;;  %v502_v39 = vld [vmem:[#allocation2 + $0x330] sm:$0xff] }
 0x19e   : > { %2131 = vst.msk [vmem:[#allocation2 + $0x108] sm:$0xff] %vm271_vm0, %v2002_v40  ;;  %2195 = vst.msk [vmem:[#allocation2 + $0x308] sm:$0xff] %vm271_vm0, %v2066_v41  ;;  %v3573_v52 = vpack.c.bf16 %v2388_v48, %v2388_v48  ;;  %v2003_v54 = vadd.f32 %v1594_v50, %v434_v42  ;;  %v2067_v55 = vadd.f32 %v1850_v51, %v498_v47  ;;  %v439_v48 = vld [vmem:[#allocation2 + $0x138] sm:$0xff] }
 0x19f   : > { %v3637_v53 = vpack.c.bf16 %v2452_v49, %v2452_v49  ;;  %v2261_v57 = vld [vmem:[#allocation2 + $0x100] sm:$0xff]  ;;  %v1596_v59 = vpop.f32.mrf.mxu0  ;;  %v1852_v60 = vpop.f32.mrf.mxu1 }
 0x1a0   : > { %v2325_v58 = vld [vmem:[#allocation2 + $0x300] sm:$0xff]  ;;  %3029 = vst.msk [vmem:[%s4593_s7 + $0x7c] sm:$0xf] %vm2997_vm1, %v3573_v52  ;;  %v2389_v62 = vmax.f32 %v2261_v57, 0.0 }
 0x1a1   : > { %3093 = vst.msk [vmem:[%s4593_s7 + $0x17c] sm:$0xf] %vm2997_vm1, %v3637_v53  ;;  %v2453_v63 = vmax.f32 %v2325_v58, 0.0  ;;  %v1597_v0 = vpop.f32.mrf.mxu0  ;;  %v1853_v1 = vpop.f32.mrf.mxu1  ;;  %v503_v53 = vld [vmem:[#allocation2 + $0x338] sm:$0xff] }
 0x1a2   : > { %2132 = vst.msk [vmem:[#allocation2 + $0x110] sm:$0xff] %vm271_vm0, %v2003_v54  ;;  %2196 = vst.msk [vmem:[#allocation2 + $0x310] sm:$0xff] %vm271_vm0, %v2067_v55  ;;  %v3574_v2 = vpack.c.bf16 %v2389_v62, %v2389_v62  ;;  %v2004_v4 = vadd.f32 %v1597_v0, %v435_v56  ;;  %v2068_v5 = vadd.f32 %v1853_v1, %v499_v61  ;;  %v440_v62 = vld [vmem:[#allocation2 + $0x140] sm:$0xff] }
 0x1a3   : > { %v3638_v3 = vpack.c.bf16 %v2453_v63, %v2453_v63  ;;  %v1599_v9 = vpop.f32.mrf.mxu0  ;;  %v1855_v10 = vpop.f32.mrf.mxu1 }
 0x1a4   : > { %3030 = vst.msk [vmem:[%s4593_s7 + $0x80] sm:$0xf] %vm2997_vm1, %v3574_v2 }
 0x1a5   : > { %v2262_v7 = vld [vmem:[#allocation2 + $0x108] sm:$0xff]  ;;  %3094 = vst.msk [vmem:[%s4593_s7 + $0x180] sm:$0xf] %vm2997_vm1, %v3638_v3  ;;  %v1602_v14 = vpop.f32.mrf.mxu0  ;;  %v1858_v15 = vpop.f32.mrf.mxu1  ;;  %v504_v3 = vld [vmem:[#allocation2 + $0x340] sm:$0xff] }
 0x1a6   : > { %v2326_v8 = vld [vmem:[#allocation2 + $0x308] sm:$0xff]  ;;  %v2390_v12 = vmax.f32 %v2262_v7, 0.0  ;;  %2133 = vst.msk [vmem:[#allocation2 + $0x118] sm:$0xff] %vm271_vm0, %v2004_v4  ;;  %2197 = vst.msk [vmem:[#allocation2 + $0x318] sm:$0xff] %vm271_vm0, %v2068_v5  ;;  %v2005_v18 = vadd.f32 %v1602_v14, %v436_v6  ;;  %v2069_v19 = vadd.f32 %v1858_v15, %v500_v11 }
 0x1a7   : > { %v2454_v13 = vmax.f32 %v2326_v8, 0.0  ;;  %v1604_v23 = vpop.f32.mrf.mxu0  ;;  %v1860_v24 = vpop.f32.mrf.mxu1 }
 0x1a8   : > { %v3575_v16 = vpack.c.bf16 %v2390_v12, %v2390_v12  ;;  %2134 = vst.msk [vmem:[#allocation2 + $0x120] sm:$0xff] %vm271_vm0, %v2005_v18  ;;  %2198 = vst.msk [vmem:[#allocation2 + $0x320] sm:$0xff] %vm271_vm0, %v2069_v19  ;;  %v441_v12 = vld [vmem:[#allocation2 + $0x148] sm:$0xff] }
 0x1a9   : > { %v3639_v17 = vpack.c.bf16 %v2454_v13, %v2454_v13  ;;  %v2263_v21 = vld [vmem:[#allocation2 + $0x110] sm:$0xff]  ;;  %v1605_v28 = vpop.f32.mrf.mxu0  ;;  %v1861_v29 = vpop.f32.mrf.mxu1 }
 0x1aa   : > { %v2327_v22 = vld [vmem:[#allocation2 + $0x310] sm:$0xff]  ;;  %3031 = vst.msk [vmem:[%s4593_s7 + $0x84] sm:$0xf] %vm2997_vm1, %v3575_v16  ;;  %v2391_v26 = vmax.f32 %v2263_v21, 0.0  ;;  %v2006_v32 = vadd.f32 %v1605_v28, %v437_v20  ;;  %v2070_v33 = vadd.f32 %v1861_v29, %v501_v25 }
 0x1ab   : > { %3095 = vst.msk [vmem:[%s4593_s7 + $0x184] sm:$0xf] %vm2997_vm1, %v3639_v17  ;;  %v2455_v27 = vmax.f32 %v2327_v22, 0.0  ;;  %v1607_v37 = vpop.f32.mrf.mxu0  ;;  %v1863_v38 = vpop.f32.mrf.mxu1  ;;  %v505_v17 = vld [vmem:[#allocation2 + $0x348] sm:$0xff] }
 0x1ac   : > { %v3576_v30 = vpack.c.bf16 %v2391_v26, %v2391_v26  ;;  %2135 = vst.msk [vmem:[#allocation2 + $0x128] sm:$0xff] %vm271_vm0, %v2006_v32  ;;  %2199 = vst.msk [vmem:[#allocation2 + $0x328] sm:$0xff] %vm271_vm0, %v2070_v33  ;;  %v442_v26 = vld [vmem:[#allocation2 + $0x150] sm:$0xff] }
 0x1ad   : > { %v3640_v31 = vpack.c.bf16 %v2455_v27, %v2455_v27  ;;  %v2264_v35 = vld [vmem:[#allocation2 + $0x118] sm:$0xff]  ;;  %v1610_v42 = vpop.f32.mrf.mxu0  ;;  %v1866_v43 = vpop.f32.mrf.mxu1 }
 0x1ae   : > { %v2328_v36 = vld [vmem:[#allocation2 + $0x318] sm:$0xff]  ;;  %3032 = vst.msk [vmem:[%s4593_s7 + $0x88] sm:$0xf] %vm2997_vm1, %v3576_v30  ;;  %v2392_v40 = vmax.f32 %v2264_v35, 0.0  ;;  %v2007_v46 = vadd.f32 %v1610_v42, %v438_v34  ;;  %v2071_v47 = vadd.f32 %v1866_v43, %v502_v39 }
 0x1af   : > { %3096 = vst.msk [vmem:[%s4593_s7 + $0x188] sm:$0xf] %vm2997_vm1, %v3640_v31  ;;  %v2456_v41 = vmax.f32 %v2328_v36, 0.0  ;;  %v2265_v49 = vld [vmem:[#allocation2 + $0x120] sm:$0xff]  ;;  %v1612_v51 = vpop.f32.mrf.mxu0  ;;  %v1868_v52 = vpop.f32.mrf.mxu1  ;;  %v506_v31 = vld [vmem:[#allocation2 + $0x350] sm:$0xff] }
 0x1b0   : > { %v3577_v44 = vpack.c.bf16 %v2392_v40, %v2392_v40  ;;  %v2329_v50 = vld [vmem:[#allocation2 + $0x320] sm:$0xff]  ;;  %v2393_v54 = vmax.f32 %v2265_v49, 0.0  ;;  %2136 = vst.msk [vmem:[#allocation2 + $0x130] sm:$0xff] %vm271_vm0, %v2007_v46  ;;  %2200 = vst.msk [vmem:[#allocation2 + $0x330] sm:$0xff] %vm271_vm0, %v2071_v47  ;;  %v443_v40 = vld [vmem:[#allocation2 + $0x158] sm:$0xff] }
 0x1b1   : > { %v3641_v45 = vpack.c.bf16 %v2456_v41, %v2456_v41  ;;  %v2457_v55 = vmax.f32 %v2329_v50, 0.0  ;;  %v1613_v56 = vpop.f32.mrf.mxu0  ;;  %v1869_v57 = vpop.f32.mrf.mxu1 }
 0x1b2   : > { %3033 = vst.msk [vmem:[%s4593_s7 + $0x8c] sm:$0xf] %vm2997_vm1, %v3577_v44  ;;  %v3578_v58 = vpack.c.bf16 %v2393_v54, %v2393_v54  ;;  %v2008_v60 = vadd.f32 %v1613_v56, %v439_v48  ;;  %v2072_v61 = vadd.f32 %v1869_v57, %v503_v53  ;;  %v444_v54 = vld [vmem:[#allocation2 + $0x160] sm:$0xff] }
 0x1b3   : > { %3097 = vst.msk [vmem:[%s4593_s7 + $0x18c] sm:$0xf] %vm2997_vm1, %v3641_v45  ;;  %v3642_v59 = vpack.c.bf16 %v2457_v55, %v2457_v55  ;;  %v2266_v63 = vld [vmem:[#allocation2 + $0x128] sm:$0xff]  ;;  %v1615_v1 = vpop.f32.mrf.mxu0  ;;  %v1871_v2 = vpop.f32.mrf.mxu1  ;;  %v507_v45 = vld [vmem:[#allocation2 + $0x358] sm:$0xff] }
 0x1b4   : > { %v2330_v0 = vld [vmem:[#allocation2 + $0x328] sm:$0xff]  ;;  %3034 = vst.msk [vmem:[%s4593_s7 + $0x90] sm:$0xf] %vm2997_vm1, %v3578_v58  ;;  %v2394_v4 = vmax.f32 %v2266_v63, 0.0 }
 0x1b5   : > { %3098 = vst.msk [vmem:[%s4593_s7 + $0x190] sm:$0xf] %vm2997_vm1, %v3642_v59  ;;  %v2458_v5 = vmax.f32 %v2330_v0, 0.0  ;;  %v1618_v6 = vpop.f32.mrf.mxu0  ;;  %v1874_v7 = vpop.f32.mrf.mxu1  ;;  %v508_v59 = vld [vmem:[#allocation2 + $0x360] sm:$0xff] }
 0x1b6   : > { %2137 = vst.msk [vmem:[#allocation2 + $0x138] sm:$0xff] %vm271_vm0, %v2008_v60  ;;  %2201 = vst.msk [vmem:[#allocation2 + $0x338] sm:$0xff] %vm271_vm0, %v2072_v61  ;;  %v3579_v8 = vpack.c.bf16 %v2394_v4, %v2394_v4  ;;  %v2009_v10 = vadd.f32 %v1618_v6, %v440_v62  ;;  %v2073_v11 = vadd.f32 %v1874_v7, %v504_v3  ;;  %v445_v4 = vld [vmem:[#allocation2 + $0x168] sm:$0xff] }
 0x1b7   : > { %v3643_v9 = vpack.c.bf16 %v2458_v5, %v2458_v5  ;;  %v2267_v13 = vld [vmem:[#allocation2 + $0x130] sm:$0xff]  ;;  %v1620_v15 = vpop.f32.mrf.mxu0  ;;  %v1876_v16 = vpop.f32.mrf.mxu1 }
 0x1b8   : > { %v2331_v14 = vld [vmem:[#allocation2 + $0x330] sm:$0xff]  ;;  %3035 = vst.msk [vmem:[%s4593_s7 + $0x94] sm:$0xf] %vm2997_vm1, %v3579_v8  ;;  %v2395_v18 = vmax.f32 %v2267_v13, 0.0 }
 0x1b9   : > { %3099 = vst.msk [vmem:[%s4593_s7 + $0x194] sm:$0xf] %vm2997_vm1, %v3643_v9  ;;  %v2459_v19 = vmax.f32 %v2331_v14, 0.0  ;;  %v1621_v20 = vpop.f32.mrf.mxu0  ;;  %v1877_v21 = vpop.f32.mrf.mxu1  ;;  %v509_v9 = vld [vmem:[#allocation2 + $0x368] sm:$0xff] }
 0x1ba   : > { %2138 = vst.msk [vmem:[#allocation2 + $0x140] sm:$0xff] %vm271_vm0, %v2009_v10  ;;  %2202 = vst.msk [vmem:[#allocation2 + $0x340] sm:$0xff] %vm271_vm0, %v2073_v11  ;;  %v3580_v22 = vpack.c.bf16 %v2395_v18, %v2395_v18  ;;  %v2010_v24 = vadd.f32 %v1621_v20, %v441_v12  ;;  %v2074_v25 = vadd.f32 %v1877_v21, %v505_v17  ;;  %v446_v18 = vld [vmem:[#allocation2 + $0x170] sm:$0xff] }
 0x1bb   : > { %v3644_v23 = vpack.c.bf16 %v2459_v19, %v2459_v19  ;;  %v1623_v29 = vpop.f32.mrf.mxu0  ;;  %v1879_v30 = vpop.f32.mrf.mxu1 }
 0x1bc   : > { %3036 = vst.msk [vmem:[%s4593_s7 + $0x98] sm:$0xf] %vm2997_vm1, %v3580_v22 }
 0x1bd   : > { %v2268_v27 = vld [vmem:[#allocation2 + $0x138] sm:$0xff]  ;;  %3100 = vst.msk [vmem:[%s4593_s7 + $0x198] sm:$0xf] %vm2997_vm1, %v3644_v23  ;;  %v1626_v34 = vpop.f32.mrf.mxu0  ;;  %v1882_v35 = vpop.f32.mrf.mxu1  ;;  %v510_v23 = vld [vmem:[#allocation2 + $0x370] sm:$0xff] }
 0x1be   : > { %v2332_v28 = vld [vmem:[#allocation2 + $0x338] sm:$0xff]  ;;  %v2396_v32 = vmax.f32 %v2268_v27, 0.0  ;;  %2139 = vst.msk [vmem:[#allocation2 + $0x148] sm:$0xff] %vm271_vm0, %v2010_v24  ;;  %2203 = vst.msk [vmem:[#allocation2 + $0x348] sm:$0xff] %vm271_vm0, %v2074_v25  ;;  %v2011_v38 = vadd.f32 %v1626_v34, %v442_v26  ;;  %v2075_v39 = vadd.f32 %v1882_v35, %v506_v31 }
 0x1bf   : > { %v2460_v33 = vmax.f32 %v2332_v28, 0.0  ;;  %v1628_v43 = vpop.f32.mrf.mxu0  ;;  %v1884_v44 = vpop.f32.mrf.mxu1 }
 0x1c0   : > { %v3581_v36 = vpack.c.bf16 %v2396_v32, %v2396_v32  ;;  %2140 = vst.msk [vmem:[#allocation2 + $0x150] sm:$0xff] %vm271_vm0, %v2011_v38  ;;  %2204 = vst.msk [vmem:[#allocation2 + $0x350] sm:$0xff] %vm271_vm0, %v2075_v39  ;;  %v447_v32 = vld [vmem:[#allocation2 + $0x178] sm:$0xff] }
 0x1c1   : > { %v3645_v37 = vpack.c.bf16 %v2460_v33, %v2460_v33  ;;  %v2269_v41 = vld [vmem:[#allocation2 + $0x140] sm:$0xff]  ;;  %v1629_v48 = vpop.f32.mrf.mxu0  ;;  %v1885_v49 = vpop.f32.mrf.mxu1 }
 0x1c2   : > { %v2333_v42 = vld [vmem:[#allocation2 + $0x340] sm:$0xff]  ;;  %3037 = vst.msk [vmem:[%s4593_s7 + $0x9c] sm:$0xf] %vm2997_vm1, %v3581_v36  ;;  %v2397_v46 = vmax.f32 %v2269_v41, 0.0  ;;  %v2012_v52 = vadd.f32 %v1629_v48, %v443_v40  ;;  %v2076_v53 = vadd.f32 %v1885_v49, %v507_v45 }
 0x1c3   : > { %3101 = vst.msk [vmem:[%s4593_s7 + $0x19c] sm:$0xf] %vm2997_vm1, %v3645_v37  ;;  %v2461_v47 = vmax.f32 %v2333_v42, 0.0  ;;  %v1631_v57 = vpop.f32.mrf.mxu0  ;;  %v1887_v58 = vpop.f32.mrf.mxu1  ;;  %v511_v37 = vld [vmem:[#allocation2 + $0x378] sm:$0xff] }
 0x1c4   : > { %v3582_v50 = vpack.c.bf16 %v2397_v46, %v2397_v46  ;;  %2141 = vst.msk [vmem:[#allocation2 + $0x158] sm:$0xff] %vm271_vm0, %v2012_v52  ;;  %2205 = vst.msk [vmem:[#allocation2 + $0x358] sm:$0xff] %vm271_vm0, %v2076_v53  ;;  %v448_v46 = vld [vmem:[#allocation2 + $0x180] sm:$0xff] }
 0x1c5   : > { %v3646_v51 = vpack.c.bf16 %v2461_v47, %v2461_v47  ;;  %v2270_v55 = vld [vmem:[#allocation2 + $0x148] sm:$0xff]  ;;  %v1634_v62 = vpop.f32.mrf.mxu0  ;;  %v1890_v63 = vpop.f32.mrf.mxu1 }
 0x1c6   : > { %v2334_v56 = vld [vmem:[#allocation2 + $0x348] sm:$0xff]  ;;  %3038 = vst.msk [vmem:[%s4593_s7 + $0xa0] sm:$0xf] %vm2997_vm1, %v3582_v50  ;;  %v2398_v60 = vmax.f32 %v2270_v55, 0.0  ;;  %v2013_v2 = vadd.f32 %v1634_v62, %v444_v54  ;;  %v2077_v3 = vadd.f32 %v1890_v63, %v508_v59 }
 0x1c7   : > { %3102 = vst.msk [vmem:[%s4593_s7 + $0x1a0] sm:$0xf] %vm2997_vm1, %v3646_v51  ;;  %v2462_v61 = vmax.f32 %v2334_v56, 0.0  ;;  %v2271_v5 = vld [vmem:[#allocation2 + $0x150] sm:$0xff]  ;;  %v1636_v7 = vpop.f32.mrf.mxu0  ;;  %v1892_v8 = vpop.f32.mrf.mxu1  ;;  %v512_v51 = vld [vmem:[#allocation2 + $0x380] sm:$0xff] }
 0x1c8   : > { %v3583_v0 = vpack.c.bf16 %v2398_v60, %v2398_v60  ;;  %v2335_v6 = vld [vmem:[#allocation2 + $0x350] sm:$0xff]  ;;  %v2399_v10 = vmax.f32 %v2271_v5, 0.0  ;;  %2142 = vst.msk [vmem:[#allocation2 + $0x160] sm:$0xff] %vm271_vm0, %v2013_v2  ;;  %2206 = vst.msk [vmem:[#allocation2 + $0x360] sm:$0xff] %vm271_vm0, %v2077_v3  ;;  %v449_v60 = vld [vmem:[#allocation2 + $0x188] sm:$0xff] }
 0x1c9   : > { %v3647_v1 = vpack.c.bf16 %v2462_v61, %v2462_v61  ;;  %v2463_v11 = vmax.f32 %v2335_v6, 0.0  ;;  %v1637_v12 = vpop.f32.mrf.mxu0  ;;  %v1893_v13 = vpop.f32.mrf.mxu1 }
 0x1ca   : > { %3039 = vst.msk [vmem:[%s4593_s7 + $0xa4] sm:$0xf] %vm2997_vm1, %v3583_v0  ;;  %v3584_v14 = vpack.c.bf16 %v2399_v10, %v2399_v10  ;;  %v2014_v16 = vadd.f32 %v1637_v12, %v445_v4  ;;  %v2078_v17 = vadd.f32 %v1893_v13, %v509_v9  ;;  %v450_v10 = vld [vmem:[#allocation2 + $0x190] sm:$0xff] }
 0x1cb   : > { %3103 = vst.msk [vmem:[%s4593_s7 + $0x1a4] sm:$0xf] %vm2997_vm1, %v3647_v1  ;;  %v3648_v15 = vpack.c.bf16 %v2463_v11, %v2463_v11  ;;  %v2272_v19 = vld [vmem:[#allocation2 + $0x158] sm:$0xff]  ;;  %v1639_v21 = vpop.f32.mrf.mxu0  ;;  %v1895_v22 = vpop.f32.mrf.mxu1  ;;  %v513_v1 = vld [vmem:[#allocation2 + $0x388] sm:$0xff] }
 0x1cc   : > { %v2336_v20 = vld [vmem:[#allocation2 + $0x358] sm:$0xff]  ;;  %3040 = vst.msk [vmem:[%s4593_s7 + $0xa8] sm:$0xf] %vm2997_vm1, %v3584_v14  ;;  %v2400_v24 = vmax.f32 %v2272_v19, 0.0 }
 0x1cd   : > { %3104 = vst.msk [vmem:[%s4593_s7 + $0x1a8] sm:$0xf] %vm2997_vm1, %v3648_v15  ;;  %v2464_v25 = vmax.f32 %v2336_v20, 0.0  ;;  %v1642_v26 = vpop.f32.mrf.mxu0  ;;  %v1898_v27 = vpop.f32.mrf.mxu1  ;;  %v514_v15 = vld [vmem:[#allocation2 + $0x390] sm:$0xff] }
 0x1ce   : > { %2143 = vst.msk [vmem:[#allocation2 + $0x168] sm:$0xff] %vm271_vm0, %v2014_v16  ;;  %2207 = vst.msk [vmem:[#allocation2 + $0x368] sm:$0xff] %vm271_vm0, %v2078_v17  ;;  %v3585_v28 = vpack.c.bf16 %v2400_v24, %v2400_v24  ;;  %v2015_v30 = vadd.f32 %v1642_v26, %v446_v18  ;;  %v2079_v31 = vadd.f32 %v1898_v27, %v510_v23  ;;  %v451_v24 = vld [vmem:[#allocation2 + $0x198] sm:$0xff] }
 0x1cf   : > { %v3649_v29 = vpack.c.bf16 %v2464_v25, %v2464_v25  ;;  %v2273_v33 = vld [vmem:[#allocation2 + $0x160] sm:$0xff]  ;;  %v1644_v35 = vpop.f32.mrf.mxu0  ;;  %v1900_v36 = vpop.f32.mrf.mxu1 }
 0x1d0   : > { %v2337_v34 = vld [vmem:[#allocation2 + $0x360] sm:$0xff]  ;;  %3041 = vst.msk [vmem:[%s4593_s7 + $0xac] sm:$0xf] %vm2997_vm1, %v3585_v28  ;;  %v2401_v38 = vmax.f32 %v2273_v33, 0.0 }
 0x1d1   : > { %3105 = vst.msk [vmem:[%s4593_s7 + $0x1ac] sm:$0xf] %vm2997_vm1, %v3649_v29  ;;  %v2465_v39 = vmax.f32 %v2337_v34, 0.0  ;;  %v1645_v40 = vpop.f32.mrf.mxu0  ;;  %v1901_v41 = vpop.f32.mrf.mxu1  ;;  %v515_v29 = vld [vmem:[#allocation2 + $0x398] sm:$0xff] }
 0x1d2   : > { %2144 = vst.msk [vmem:[#allocation2 + $0x170] sm:$0xff] %vm271_vm0, %v2015_v30  ;;  %2208 = vst.msk [vmem:[#allocation2 + $0x370] sm:$0xff] %vm271_vm0, %v2079_v31  ;;  %v3586_v42 = vpack.c.bf16 %v2401_v38, %v2401_v38  ;;  %v2016_v44 = vadd.f32 %v1645_v40, %v447_v32  ;;  %v2080_v45 = vadd.f32 %v1901_v41, %v511_v37  ;;  %v452_v38 = vld [vmem:[#allocation2 + $0x1a0] sm:$0xff] }
 0x1d3   : > { %v3650_v43 = vpack.c.bf16 %v2465_v39, %v2465_v39  ;;  %v1647_v49 = vpop.f32.mrf.mxu0  ;;  %v1903_v50 = vpop.f32.mrf.mxu1 }
 0x1d4   : > { %3042 = vst.msk [vmem:[%s4593_s7 + $0xb0] sm:$0xf] %vm2997_vm1, %v3586_v42 }
 0x1d5   : > { %v2274_v47 = vld [vmem:[#allocation2 + $0x168] sm:$0xff]  ;;  %3106 = vst.msk [vmem:[%s4593_s7 + $0x1b0] sm:$0xf] %vm2997_vm1, %v3650_v43  ;;  %v1650_v54 = vpop.f32.mrf.mxu0  ;;  %v1906_v55 = vpop.f32.mrf.mxu1  ;;  %v516_v43 = vld [vmem:[#allocation2 + $0x3a0] sm:$0xff] }
 0x1d6   : > { %v2338_v48 = vld [vmem:[#allocation2 + $0x368] sm:$0xff]  ;;  %v2402_v52 = vmax.f32 %v2274_v47, 0.0  ;;  %2145 = vst.msk [vmem:[#allocation2 + $0x178] sm:$0xff] %vm271_vm0, %v2016_v44  ;;  %2209 = vst.msk [vmem:[#allocation2 + $0x378] sm:$0xff] %vm271_vm0, %v2080_v45  ;;  %v2017_v58 = vadd.f32 %v1650_v54, %v448_v46  ;;  %v2081_v59 = vadd.f32 %v1906_v55, %v512_v51 }
 0x1d7   : > { %v2466_v53 = vmax.f32 %v2338_v48, 0.0  ;;  %v1652_v63 = vpop.f32.mrf.mxu0  ;;  %v1908_v0 = vpop.f32.mrf.mxu1 }
 0x1d8   : > { %v3587_v56 = vpack.c.bf16 %v2402_v52, %v2402_v52  ;;  %2146 = vst.msk [vmem:[#allocation2 + $0x180] sm:$0xff] %vm271_vm0, %v2017_v58  ;;  %2210 = vst.msk [vmem:[#allocation2 + $0x380] sm:$0xff] %vm271_vm0, %v2081_v59  ;;  %v453_v52 = vld [vmem:[#allocation2 + $0x1a8] sm:$0xff] }
 0x1d9   : > { %v3651_v57 = vpack.c.bf16 %v2466_v53, %v2466_v53  ;;  %v2275_v61 = vld [vmem:[#allocation2 + $0x170] sm:$0xff]  ;;  %v1653_v4 = vpop.f32.mrf.mxu0  ;;  %v1909_v5 = vpop.f32.mrf.mxu1 }
 0x1da   : > { %v2339_v62 = vld [vmem:[#allocation2 + $0x370] sm:$0xff]  ;;  %3043 = vst.msk [vmem:[%s4593_s7 + $0xb4] sm:$0xf] %vm2997_vm1, %v3587_v56  ;;  %v2403_v2 = vmax.f32 %v2275_v61, 0.0  ;;  %v2018_v8 = vadd.f32 %v1653_v4, %v449_v60  ;;  %v2082_v9 = vadd.f32 %v1909_v5, %v513_v1 }
 0x1db   : > { %3107 = vst.msk [vmem:[%s4593_s7 + $0x1b4] sm:$0xf] %vm2997_vm1, %v3651_v57  ;;  %v2467_v3 = vmax.f32 %v2339_v62, 0.0  ;;  %v1655_v13 = vpop.f32.mrf.mxu0  ;;  %v1911_v14 = vpop.f32.mrf.mxu1  ;;  %v517_v57 = vld [vmem:[#allocation2 + $0x3a8] sm:$0xff] }
 0x1dc   : > { %v3588_v6 = vpack.c.bf16 %v2403_v2, %v2403_v2  ;;  %2147 = vst.msk [vmem:[#allocation2 + $0x188] sm:$0xff] %vm271_vm0, %v2018_v8  ;;  %2211 = vst.msk [vmem:[#allocation2 + $0x388] sm:$0xff] %vm271_vm0, %v2082_v9  ;;  %v454_v2 = vld [vmem:[#allocation2 + $0x1b0] sm:$0xff] }
 0x1dd   : > { %v3652_v7 = vpack.c.bf16 %v2467_v3, %v2467_v3  ;;  %v2276_v11 = vld [vmem:[#allocation2 + $0x178] sm:$0xff]  ;;  %v1658_v18 = vpop.f32.mrf.mxu0  ;;  %v1914_v19 = vpop.f32.mrf.mxu1 }
 0x1de   : > { %v2340_v12 = vld [vmem:[#allocation2 + $0x378] sm:$0xff]  ;;  %3044 = vst.msk [vmem:[%s4593_s7 + $0xb8] sm:$0xf] %vm2997_vm1, %v3588_v6  ;;  %v2404_v16 = vmax.f32 %v2276_v11, 0.0  ;;  %v2019_v22 = vadd.f32 %v1658_v18, %v450_v10  ;;  %v2083_v23 = vadd.f32 %v1914_v19, %v514_v15 }
 0x1df   : > { %3108 = vst.msk [vmem:[%s4593_s7 + $0x1b8] sm:$0xf] %vm2997_vm1, %v3652_v7  ;;  %v2468_v17 = vmax.f32 %v2340_v12, 0.0  ;;  %v2277_v25 = vld [vmem:[#allocation2 + $0x180] sm:$0xff]  ;;  %v1660_v27 = vpop.f32.mrf.mxu0  ;;  %v1916_v28 = vpop.f32.mrf.mxu1  ;;  %v518_v7 = vld [vmem:[#allocation2 + $0x3b0] sm:$0xff] }
 0x1e0   : > { %v3589_v20 = vpack.c.bf16 %v2404_v16, %v2404_v16  ;;  %v2341_v26 = vld [vmem:[#allocation2 + $0x380] sm:$0xff]  ;;  %v2405_v30 = vmax.f32 %v2277_v25, 0.0  ;;  %2148 = vst.msk [vmem:[#allocation2 + $0x190] sm:$0xff] %vm271_vm0, %v2019_v22  ;;  %2212 = vst.msk [vmem:[#allocation2 + $0x390] sm:$0xff] %vm271_vm0, %v2083_v23  ;;  %v455_v16 = vld [vmem:[#allocation2 + $0x1b8] sm:$0xff] }
 0x1e1   : > { %v3653_v21 = vpack.c.bf16 %v2468_v17, %v2468_v17  ;;  %v2469_v31 = vmax.f32 %v2341_v26, 0.0  ;;  %v1661_v32 = vpop.f32.mrf.mxu0  ;;  %v1917_v33 = vpop.f32.mrf.mxu1 }
 0x1e2   : > { %3045 = vst.msk [vmem:[%s4593_s7 + $0xbc] sm:$0xf] %vm2997_vm1, %v3589_v20  ;;  %v3590_v34 = vpack.c.bf16 %v2405_v30, %v2405_v30  ;;  %v2020_v36 = vadd.f32 %v1661_v32, %v451_v24  ;;  %v2084_v37 = vadd.f32 %v1917_v33, %v515_v29  ;;  %v456_v30 = vld [vmem:[#allocation2 + $0x1c0] sm:$0xff] }
 0x1e3   : > { %3109 = vst.msk [vmem:[%s4593_s7 + $0x1bc] sm:$0xf] %vm2997_vm1, %v3653_v21  ;;  %v3654_v35 = vpack.c.bf16 %v2469_v31, %v2469_v31  ;;  %v2278_v39 = vld [vmem:[#allocation2 + $0x188] sm:$0xff]  ;;  %v1663_v41 = vpop.f32.mrf.mxu0  ;;  %v1919_v42 = vpop.f32.mrf.mxu1  ;;  %v519_v21 = vld [vmem:[#allocation2 + $0x3b8] sm:$0xff] }
 0x1e4   : > { %v2342_v40 = vld [vmem:[#allocation2 + $0x388] sm:$0xff]  ;;  %3046 = vst.msk [vmem:[%s4593_s7 + $0xc0] sm:$0xf] %vm2997_vm1, %v3590_v34  ;;  %v2406_v44 = vmax.f32 %v2278_v39, 0.0 }
 0x1e5   : > { %3110 = vst.msk [vmem:[%s4593_s7 + $0x1c0] sm:$0xf] %vm2997_vm1, %v3654_v35  ;;  %v2470_v45 = vmax.f32 %v2342_v40, 0.0  ;;  %v1666_v46 = vpop.f32.mrf.mxu0  ;;  %v1922_v47 = vpop.f32.mrf.mxu1  ;;  %v520_v35 = vld [vmem:[#allocation2 + $0x3c0] sm:$0xff] }
 0x1e6   : > { %2149 = vst.msk [vmem:[#allocation2 + $0x198] sm:$0xff] %vm271_vm0, %v2020_v36  ;;  %2213 = vst.msk [vmem:[#allocation2 + $0x398] sm:$0xff] %vm271_vm0, %v2084_v37  ;;  %v3591_v48 = vpack.c.bf16 %v2406_v44, %v2406_v44  ;;  %v2021_v50 = vadd.f32 %v1666_v46, %v452_v38  ;;  %v2085_v51 = vadd.f32 %v1922_v47, %v516_v43  ;;  %v457_v44 = vld [vmem:[#allocation2 + $0x1c8] sm:$0xff] }
 0x1e7   : > { %v3655_v49 = vpack.c.bf16 %v2470_v45, %v2470_v45  ;;  %v2279_v53 = vld [vmem:[#allocation2 + $0x190] sm:$0xff]  ;;  %v1668_v55 = vpop.f32.mrf.mxu0  ;;  %v1924_v56 = vpop.f32.mrf.mxu1 }
 0x1e8   : > { %v2343_v54 = vld [vmem:[#allocation2 + $0x390] sm:$0xff]  ;;  %3047 = vst.msk [vmem:[%s4593_s7 + $0xc4] sm:$0xf] %vm2997_vm1, %v3591_v48  ;;  %v2407_v58 = vmax.f32 %v2279_v53, 0.0 }
 0x1e9   : > { %3111 = vst.msk [vmem:[%s4593_s7 + $0x1c4] sm:$0xf] %vm2997_vm1, %v3655_v49  ;;  %v2471_v59 = vmax.f32 %v2343_v54, 0.0  ;;  %v1669_v60 = vpop.f32.mrf.mxu0  ;;  %v1925_v61 = vpop.f32.mrf.mxu1  ;;  %v521_v49 = vld [vmem:[#allocation2 + $0x3c8] sm:$0xff] }
 0x1ea   : > { %2150 = vst.msk [vmem:[#allocation2 + $0x1a0] sm:$0xff] %vm271_vm0, %v2021_v50  ;;  %2214 = vst.msk [vmem:[#allocation2 + $0x3a0] sm:$0xff] %vm271_vm0, %v2085_v51  ;;  %v3592_v62 = vpack.c.bf16 %v2407_v58, %v2407_v58  ;;  %v2022_v0 = vadd.f32 %v1669_v60, %v453_v52  ;;  %v2086_v1 = vadd.f32 %v1925_v61, %v517_v57  ;;  %v458_v58 = vld [vmem:[#allocation2 + $0x1d0] sm:$0xff] }
 0x1eb   : > { %v3656_v63 = vpack.c.bf16 %v2471_v59, %v2471_v59  ;;  %v1671_v5 = vpop.f32.mrf.mxu0  ;;  %v1927_v6 = vpop.f32.mrf.mxu1 }
 0x1ec   : > { %3048 = vst.msk [vmem:[%s4593_s7 + $0xc8] sm:$0xf] %vm2997_vm1, %v3592_v62 }
 0x1ed   : > { %v2280_v3 = vld [vmem:[#allocation2 + $0x198] sm:$0xff]  ;;  %3112 = vst.msk [vmem:[%s4593_s7 + $0x1c8] sm:$0xf] %vm2997_vm1, %v3656_v63  ;;  %v1674_v10 = vpop.f32.mrf.mxu0  ;;  %v1930_v11 = vpop.f32.mrf.mxu1  ;;  %v522_v63 = vld [vmem:[#allocation2 + $0x3d0] sm:$0xff] }
 0x1ee   : > { %v2344_v4 = vld [vmem:[#allocation2 + $0x398] sm:$0xff]  ;;  %v2408_v8 = vmax.f32 %v2280_v3, 0.0  ;;  %2151 = vst.msk [vmem:[#allocation2 + $0x1a8] sm:$0xff] %vm271_vm0, %v2022_v0  ;;  %2215 = vst.msk [vmem:[#allocation2 + $0x3a8] sm:$0xff] %vm271_vm0, %v2086_v1  ;;  %v2023_v14 = vadd.f32 %v1674_v10, %v454_v2  ;;  %v2087_v15 = vadd.f32 %v1930_v11, %v518_v7 }
 0x1ef   : > { %v2472_v9 = vmax.f32 %v2344_v4, 0.0  ;;  %v1676_v19 = vpop.f32.mrf.mxu0  ;;  %v1932_v20 = vpop.f32.mrf.mxu1 }
 0x1f0   : > { %v3593_v12 = vpack.c.bf16 %v2408_v8, %v2408_v8  ;;  %2152 = vst.msk [vmem:[#allocation2 + $0x1b0] sm:$0xff] %vm271_vm0, %v2023_v14  ;;  %2216 = vst.msk [vmem:[#allocation2 + $0x3b0] sm:$0xff] %vm271_vm0, %v2087_v15  ;;  %v459_v8 = vld [vmem:[#allocation2 + $0x1d8] sm:$0xff] }
 0x1f1   : > { %v3657_v13 = vpack.c.bf16 %v2472_v9, %v2472_v9  ;;  %v2281_v17 = vld [vmem:[#allocation2 + $0x1a0] sm:$0xff]  ;;  %v1677_v24 = vpop.f32.mrf.mxu0  ;;  %v1933_v25 = vpop.f32.mrf.mxu1 }
 0x1f2   : > { %v2345_v18 = vld [vmem:[#allocation2 + $0x3a0] sm:$0xff]  ;;  %3049 = vst.msk [vmem:[%s4593_s7 + $0xcc] sm:$0xf] %vm2997_vm1, %v3593_v12  ;;  %v2409_v22 = vmax.f32 %v2281_v17, 0.0  ;;  %v2024_v28 = vadd.f32 %v1677_v24, %v455_v16  ;;  %v2088_v29 = vadd.f32 %v1933_v25, %v519_v21 }
 0x1f3   : > { %3113 = vst.msk [vmem:[%s4593_s7 + $0x1cc] sm:$0xf] %vm2997_vm1, %v3657_v13  ;;  %v2473_v23 = vmax.f32 %v2345_v18, 0.0  ;;  %v1679_v33 = vpop.f32.mrf.mxu0  ;;  %v1935_v34 = vpop.f32.mrf.mxu1  ;;  %v523_v13 = vld [vmem:[#allocation2 + $0x3d8] sm:$0xff] }
 0x1f4   : > { %v3594_v26 = vpack.c.bf16 %v2409_v22, %v2409_v22  ;;  %2153 = vst.msk [vmem:[#allocation2 + $0x1b8] sm:$0xff] %vm271_vm0, %v2024_v28  ;;  %2217 = vst.msk [vmem:[#allocation2 + $0x3b8] sm:$0xff] %vm271_vm0, %v2088_v29  ;;  %v460_v22 = vld [vmem:[#allocation2 + $0x1e0] sm:$0xff] }
 0x1f5   : > { %v3658_v27 = vpack.c.bf16 %v2473_v23, %v2473_v23  ;;  %v2282_v31 = vld [vmem:[#allocation2 + $0x1a8] sm:$0xff]  ;;  %v1682_v38 = vpop.f32.mrf.mxu0  ;;  %v1938_v39 = vpop.f32.mrf.mxu1 }
 0x1f6   : > { %v2346_v32 = vld [vmem:[#allocation2 + $0x3a8] sm:$0xff]  ;;  %3050 = vst.msk [vmem:[%s4593_s7 + $0xd0] sm:$0xf] %vm2997_vm1, %v3594_v26  ;;  %v2410_v36 = vmax.f32 %v2282_v31, 0.0  ;;  %v2025_v42 = vadd.f32 %v1682_v38, %v456_v30  ;;  %v2089_v43 = vadd.f32 %v1938_v39, %v520_v35 }
 0x1f7   : > { %3114 = vst.msk [vmem:[%s4593_s7 + $0x1d0] sm:$0xf] %vm2997_vm1, %v3658_v27  ;;  %v2474_v37 = vmax.f32 %v2346_v32, 0.0  ;;  %v2283_v45 = vld [vmem:[#allocation2 + $0x1b0] sm:$0xff]  ;;  %v1684_v47 = vpop.f32.mrf.mxu0  ;;  %v1940_v48 = vpop.f32.mrf.mxu1  ;;  %v524_v27 = vld [vmem:[#allocation2 + $0x3e0] sm:$0xff] }
 0x1f8   : > { %v3595_v40 = vpack.c.bf16 %v2410_v36, %v2410_v36  ;;  %v2347_v46 = vld [vmem:[#allocation2 + $0x3b0] sm:$0xff]  ;;  %v2411_v50 = vmax.f32 %v2283_v45, 0.0  ;;  %2154 = vst.msk [vmem:[#allocation2 + $0x1c0] sm:$0xff] %vm271_vm0, %v2025_v42  ;;  %2218 = vst.msk [vmem:[#allocation2 + $0x3c0] sm:$0xff] %vm271_vm0, %v2089_v43  ;;  %v461_v36 = vld [vmem:[#allocation2 + $0x1e8] sm:$0xff] }
 0x1f9   : > { %v3659_v41 = vpack.c.bf16 %v2474_v37, %v2474_v37  ;;  %v2475_v51 = vmax.f32 %v2347_v46, 0.0  ;;  %v1685_v52 = vpop.f32.mrf.mxu0  ;;  %v1941_v53 = vpop.f32.mrf.mxu1 }
 0x1fa   : > { %3051 = vst.msk [vmem:[%s4593_s7 + $0xd4] sm:$0xf] %vm2997_vm1, %v3595_v40  ;;  %v3596_v54 = vpack.c.bf16 %v2411_v50, %v2411_v50  ;;  %v2026_v56 = vadd.f32 %v1685_v52, %v457_v44  ;;  %v2090_v57 = vadd.f32 %v1941_v53, %v521_v49  ;;  %v462_v50 = vld [vmem:[#allocation2 + $0x1f0] sm:$0xff] }
 0x1fb   : > { %3115 = vst.msk [vmem:[%s4593_s7 + $0x1d4] sm:$0xf] %vm2997_vm1, %v3659_v41  ;;  %v3660_v55 = vpack.c.bf16 %v2475_v51, %v2475_v51  ;;  %v2284_v59 = vld [vmem:[#allocation2 + $0x1b8] sm:$0xff]  ;;  %v1687_v61 = vpop.f32.mrf.mxu0  ;;  %v1943_v62 = vpop.f32.mrf.mxu1  ;;  %v525_v41 = vld [vmem:[#allocation2 + $0x3e8] sm:$0xff] }
 0x1fc   : > { %v2348_v60 = vld [vmem:[#allocation2 + $0x3b8] sm:$0xff]  ;;  %3052 = vst.msk [vmem:[%s4593_s7 + $0xd8] sm:$0xf] %vm2997_vm1, %v3596_v54  ;;  %v2412_v0 = vmax.f32 %v2284_v59, 0.0 }
 0x1fd   : > { %3116 = vst.msk [vmem:[%s4593_s7 + $0x1d8] sm:$0xf] %vm2997_vm1, %v3660_v55  ;;  %v2476_v1 = vmax.f32 %v2348_v60, 0.0  ;;  %v1690_v2 = vpop.f32.mrf.mxu0  ;;  %v1946_v3 = vpop.f32.mrf.mxu1  ;;  %v526_v55 = vld [vmem:[#allocation2 + $0x3f0] sm:$0xff] }
 0x1fe   : > { %2155 = vst.msk [vmem:[#allocation2 + $0x1c8] sm:$0xff] %vm271_vm0, %v2026_v56  ;;  %2219 = vst.msk [vmem:[#allocation2 + $0x3c8] sm:$0xff] %vm271_vm0, %v2090_v57  ;;  %v3597_v4 = vpack.c.bf16 %v2412_v0, %v2412_v0  ;;  %v2027_v6 = vadd.f32 %v1690_v2, %v458_v58  ;;  %v2091_v7 = vadd.f32 %v1946_v3, %v522_v63  ;;  %v463_v0 = vld [vmem:[#allocation2 + $0x1f8] sm:$0xff] }
 0x1ff   : > { %v3661_v5 = vpack.c.bf16 %v2476_v1, %v2476_v1  ;;  %v2285_v9 = vld [vmem:[#allocation2 + $0x1c0] sm:$0xff]  ;;  %v1692_v11 = vpop.f32.mrf.mxu0  ;;  %v1948_v12 = vpop.f32.mrf.mxu1 }
 0x200   : > { %v2349_v10 = vld [vmem:[#allocation2 + $0x3c0] sm:$0xff]  ;;  %3053 = vst.msk [vmem:[%s4593_s7 + $0xdc] sm:$0xf] %vm2997_vm1, %v3597_v4  ;;  %v2413_v14 = vmax.f32 %v2285_v9, 0.0 }
 0x201   : > { %3117 = vst.msk [vmem:[%s4593_s7 + $0x1dc] sm:$0xf] %vm2997_vm1, %v3661_v5  ;;  %v2477_v15 = vmax.f32 %v2349_v10, 0.0  ;;  %v1693_v16 = vpop.f32.mrf.mxu0  ;;  %v1949_v17 = vpop.f32.mrf.mxu1  ;;  %v527_v5 = vld [vmem:[#allocation2 + $0x3f8] sm:$0xff] }
 0x202   : > { %2156 = vst.msk [vmem:[#allocation2 + $0x1d0] sm:$0xff] %vm271_vm0, %v2027_v6  ;;  %2220 = vst.msk [vmem:[#allocation2 + $0x3d0] sm:$0xff] %vm271_vm0, %v2091_v7  ;;  %v3598_v18 = vpack.c.bf16 %v2413_v14, %v2413_v14  ;;  %v2028_v20 = vadd.f32 %v1693_v16, %v459_v8  ;;  %v2092_v21 = vadd.f32 %v1949_v17, %v523_v13 }
 0x203   : > { %v3662_v19 = vpack.c.bf16 %v2477_v15, %v2477_v15  ;;  %v1695_v25 = vpop.f32.mrf.mxu0  ;;  %v1951_v26 = vpop.f32.mrf.mxu1 }
 0x204   : > { %3054 = vst.msk [vmem:[%s4593_s7 + $0xe0] sm:$0xf] %vm2997_vm1, %v3598_v18 }
 0x205   : > { %v2286_v23 = vld [vmem:[#allocation2 + $0x1c8] sm:$0xff]  ;;  %3118 = vst.msk [vmem:[%s4593_s7 + $0x1e0] sm:$0xf] %vm2997_vm1, %v3662_v19  ;;  %v1698_v30 = vpop.f32.mrf.mxu0  ;;  %v1954_v31 = vpop.f32.mrf.mxu1 }
 0x206   : > { %v2350_v24 = vld [vmem:[#allocation2 + $0x3c8] sm:$0xff]  ;;  %v2414_v28 = vmax.f32 %v2286_v23, 0.0  ;;  %2157 = vst.msk [vmem:[#allocation2 + $0x1d8] sm:$0xff] %vm271_vm0, %v2028_v20  ;;  %2221 = vst.msk [vmem:[#allocation2 + $0x3d8] sm:$0xff] %vm271_vm0, %v2092_v21  ;;  %v2029_v34 = vadd.f32 %v1698_v30, %v460_v22  ;;  %v2093_v35 = vadd.f32 %v1954_v31, %v524_v27 }
 0x207   : > { %v2478_v29 = vmax.f32 %v2350_v24, 0.0  ;;  %v1700_v39 = vpop.f32.mrf.mxu0  ;;  %v1956_v40 = vpop.f32.mrf.mxu1 }
 0x208   : > { %v3599_v32 = vpack.c.bf16 %v2414_v28, %v2414_v28  ;;  %2158 = vst.msk [vmem:[#allocation2 + $0x1e0] sm:$0xff] %vm271_vm0, %v2029_v34  ;;  %2222 = vst.msk [vmem:[#allocation2 + $0x3e0] sm:$0xff] %vm271_vm0, %v2093_v35 }
 0x209   : > { %v3663_v33 = vpack.c.bf16 %v2478_v29, %v2478_v29  ;;  %v2287_v37 = vld [vmem:[#allocation2 + $0x1d0] sm:$0xff]  ;;  %v1701_v44 = vpop.f32.mrf.mxu0  ;;  %v1957_v45 = vpop.f32.mrf.mxu1 }
 0x20a   : > { %v2351_v38 = vld [vmem:[#allocation2 + $0x3d0] sm:$0xff]  ;;  %3055 = vst.msk [vmem:[%s4593_s7 + $0xe4] sm:$0xf] %vm2997_vm1, %v3599_v32  ;;  %v2415_v42 = vmax.f32 %v2287_v37, 0.0  ;;  %v2030_v48 = vadd.f32 %v1701_v44, %v461_v36  ;;  %v2094_v49 = vadd.f32 %v1957_v45, %v525_v41 }
 0x20b   : > { %3119 = vst.msk [vmem:[%s4593_s7 + $0x1e4] sm:$0xf] %vm2997_vm1, %v3663_v33  ;;  %v2479_v43 = vmax.f32 %v2351_v38, 0.0  ;;  %v1703_v53 = vpop.f32.mrf.mxu0  ;;  %v1959_v54 = vpop.f32.mrf.mxu1 }
 0x20c   : > { %v3600_v46 = vpack.c.bf16 %v2415_v42, %v2415_v42  ;;  %2159 = vst.msk [vmem:[#allocation2 + $0x1e8] sm:$0xff] %vm271_vm0, %v2030_v48  ;;  %2223 = vst.msk [vmem:[#allocation2 + $0x3e8] sm:$0xff] %vm271_vm0, %v2094_v49 }
 0x20d   : > { %v3664_v47 = vpack.c.bf16 %v2479_v43, %v2479_v43  ;;  %v2288_v51 = vld [vmem:[#allocation2 + $0x1d8] sm:$0xff]  ;;  %v1706_v58 = vpop.f32.mrf.mxu0  ;;  %v1962_v59 = vpop.f32.mrf.mxu1 }
 0x20e   : > { %v2352_v52 = vld [vmem:[#allocation2 + $0x3d8] sm:$0xff]  ;;  %3056 = vst.msk [vmem:[%s4593_s7 + $0xe8] sm:$0xf] %vm2997_vm1, %v3600_v46  ;;  %v2416_v56 = vmax.f32 %v2288_v51, 0.0  ;;  %v2031_v62 = vadd.f32 %v1706_v58, %v462_v50  ;;  %v2095_v63 = vadd.f32 %v1962_v59, %v526_v55 }
 0x20f   : > { %3120 = vst.msk [vmem:[%s4593_s7 + $0x1e8] sm:$0xf] %vm2997_vm1, %v3664_v47  ;;  %v2480_v57 = vmax.f32 %v2352_v52, 0.0  ;;  %v2289_v1 = vld [vmem:[#allocation2 + $0x1e0] sm:$0xff]  ;;  %v1708_v3 = vpop.f32.mrf.mxu0  ;;  %v1964_v4 = vpop.f32.mrf.mxu1 }
 0x210   : > { %v3601_v60 = vpack.c.bf16 %v2416_v56, %v2416_v56  ;;  %v2353_v2 = vld [vmem:[#allocation2 + $0x3e0] sm:$0xff]  ;;  %v2417_v6 = vmax.f32 %v2289_v1, 0.0  ;;  %2160 = vst.msk [vmem:[#allocation2 + $0x1f0] sm:$0xff] %vm271_vm0, %v2031_v62  ;;  %2224 = vst.msk [vmem:[#allocation2 + $0x3f0] sm:$0xff] %vm271_vm0, %v2095_v63 }
 0x211   : > { %v3665_v61 = vpack.c.bf16 %v2480_v57, %v2480_v57  ;;  %v2481_v7 = vmax.f32 %v2353_v2, 0.0  ;;  %v1709_v8 = vpop.f32.mrf.mxu0  ;;  %v1965_v9 = vpop.f32.mrf.mxu1 }
 0x212   : > { %3057 = vst.msk [vmem:[%s4593_s7 + $0xec] sm:$0xf] %vm2997_vm1, %v3601_v60  ;;  %v3602_v10 = vpack.c.bf16 %v2417_v6, %v2417_v6  ;;  %v2032_v12 = vadd.f32 %v1709_v8, %v463_v0  ;;  %v2096_v13 = vadd.f32 %v1965_v9, %v527_v5 }
 0x213   : > { %3121 = vst.msk [vmem:[%s4593_s7 + $0x1ec] sm:$0xf] %vm2997_vm1, %v3665_v61  ;;  %v3666_v11 = vpack.c.bf16 %v2481_v7, %v2481_v7  ;;  %v2290_v14 = vld [vmem:[#allocation2 + $0x1e8] sm:$0xff]  ;;  %v1711_v16 = vpop.f32.mrf.mxu0  ;;  %v1967_v17 = vpop.f32.mrf.mxu1 }
 0x214   : > { %v2354_v15 = vld [vmem:[#allocation2 + $0x3e8] sm:$0xff]  ;;  %3058 = vst.msk [vmem:[%s4593_s7 + $0xf0] sm:$0xf] %vm2997_vm1, %v3602_v10  ;;  %v2418_v18 = vmax.f32 %v2290_v14, 0.0 }
 0x215   : > { %3122 = vst.msk [vmem:[%s4593_s7 + $0x1f0] sm:$0xf] %vm2997_vm1, %v3666_v11  ;;  %v2482_v19 = vmax.f32 %v2354_v15, 0.0 }
 0x216   : > { %2161 = vst.msk [vmem:[#allocation2 + $0x1f8] sm:$0xff] %vm271_vm0, %v2032_v12  ;;  %2225 = vst.msk [vmem:[#allocation2 + $0x3f8] sm:$0xff] %vm271_vm0, %v2096_v13  ;;  %v3603_v20 = vpack.c.bf16 %v2418_v18, %v2418_v18 }
 0x217   : > { %v3667_v21 = vpack.c.bf16 %v2482_v19, %v2482_v19  ;;  %v2291_v22 = vld [vmem:[#allocation2 + $0x1f0] sm:$0xff] }
 0x218   : > { %v2355_v23 = vld [vmem:[#allocation2 + $0x3f0] sm:$0xff]  ;;  %3059 = vst.msk [vmem:[%s4593_s7 + $0xf4] sm:$0xf] %vm2997_vm1, %v3603_v20  ;;  %v2419_v24 = vmax.f32 %v2291_v22, 0.0 }
 0x219   : > { %3123 = vst.msk [vmem:[%s4593_s7 + $0x1f4] sm:$0xf] %vm2997_vm1, %v3667_v21  ;;  %v2483_v25 = vmax.f32 %v2355_v23, 0.0 }
 0x21a   : > { %v3604_v26 = vpack.c.bf16 %v2419_v24, %v2419_v24 }
 0x21b   : > { %v3668_v27 = vpack.c.bf16 %v2483_v25, %v2483_v25 }
 0x21c   : > { %3060 = vst.msk [vmem:[%s4593_s7 + $0xf8] sm:$0xf] %vm2997_vm1, %v3604_v26 }
 0x21d   : > { %v2292_v28 = vld [vmem:[#allocation2 + $0x1f8] sm:$0xff]  ;;  %3124 = vst.msk [vmem:[%s4593_s7 + $0x1f8] sm:$0xf] %vm2997_vm1, %v3668_v27 }
 0x21e   : > { %v2356_v29 = vld [vmem:[#allocation2 + $0x3f8] sm:$0xff]  ;;  %v2420_v30 = vmax.f32 %v2292_v28, 0.0 }
 0x21f   : > { %v2484_v31 = vmax.f32 %v2356_v29, 0.0 }
 0x220   : > { %v3605_v32 = vpack.c.bf16 %v2420_v30, %v2420_v30 }
 0x221   : > { %v3669_v33 = vpack.c.bf16 %v2484_v31, %v2484_v31 }
 0x222   : > { %3061 = vst.msk [vmem:[%s4593_s7 + $0xfc] sm:$0xf] %vm2997_vm1, %v3605_v32 }
 0x223   : > { %3125 = vst.msk [vmem:[%s4593_s7 + $0x1fc] sm:$0xf] %vm2997_vm1, %v3669_v33 }
 0x224   : > { %3974 = shalt.err (!%p3971_p5)
}
 0x225   : > { %s3975_s27 = scalar_lea.hbm %s4994_s11, 8192  ;;  %s3979_s30 = scalar_lea.hbm %s5052_s3, 16384 }
 0x226   : > { %p3976_p6 = scmp.ne.s32.totalorder %s4994_s11, %s3975_s27  ;;  %p3980_p10 = scmp.lt.s32.totalorder %s4994_s11, %s5052_s3 }
 0x227   : > { %p3981_p11 = scmp.lt.s32.totalorder %s3979_s30, %s3975_s27 }
 0x228   : > { %p3977_p7 = pnand %p3976_p6, %p4103_p4 }
 0x229   : > { %p3982_p12 = por %p3981_p11, %p3980_p10 }
 0x22a   : > { %p3978_p9 = pneg %p3977_p7 }
 0x22c   : > { %p3983_p13 = pnand %p3982_p12, %p3978_p9 }
 0x22e   : > { %3986 = shalt.err (!%p3983_p13)
}
 0x22f   : > { %s4041_s6 = smov 64   ;;  %s4042_s7 = smov 4  }
 0x230   : > { %3703 = dma.vmem_to_hbm [thread:$0]  (%p4103_p4), %s4996_s8, 8192, %s4994_s11, %s5004_s15, %s4041_s6, %s4041_s6, %s4042_s7  }
 0x231 PF: > { %p3709_p0 = scmp.ge.s32.totalorder %s4037_s17, 2  ;;  %s3156_s19 = sand.u32 1, %s4017_s12  }
 0x232   : > { %s3157_s9 = scalar_lea.sflag [#allocation4], %s3156_s19 }
 0x233   : > { %p3706_p1 = pnand %p3709_p0, %p4110_p8 }
 0x235   : > { %p3707_p2 = pneg %p3706_p1 }
 0x237   : > { %4012 = dma.done.wait (%p3707_p2), %s3157_s9, 8192  }
 0x238   : > { %4014 = vsyncadd (%p3707_p2), %s3157_s9, 4294959104  ;;  %s16_s17 = sadd.s32 1, %s4037_s17   ;;  %s5055_s12 = smov %s4021_s13 }
 0x239   : > { %p13_p3 = scmp.ge.s32.totalorder %s16_s17, 4   ;;  %s5056_s13 = smov %s4025_s14 }
 0x23a   : > { %s5057_s14 = smov %s4116_s25  ;;  %s5058_s15 = smov %s4033_s16 }
 0x23b   : > { %s5059_s16 = smov %s5061_s20  ;;  %15 = sbr.rel (!%p13_p3) target bundleno = 4 (0x4), region = 81 }
 0x240   :  { %3162 = vsyncpa [#allocation4], 1 }
 0x241   :  { %3164 = vsyncpa [#allocation4 + $0x1], 1 }

</bundles_post_ra>
